<compile_context>
chip_gen: v7x
topology: tpu7x:2x2x1
jax: 0.10.0
libtpu: 0.0.40
codegen_flags: <defaults>
</compile_context>

<pallas_src>
import functools

import jax
import jax.numpy as jnp
from jax.experimental import pallas as pl
from jax.experimental.pallas import tpu as pltpu


STEM_CH = 32          # efficientnet_b0 stem width
STEM_PAD = 128        # stem width zero-padded to a full lane group
FEAT_CH = 1280        # efficientnet_b0 feature dim (num_classes=0 output)
EMBED_DIM = 512       # projector output (module default embedding_dim=512)


# ----------------------------------------------------------------------------
# Fused Pallas kernel: stem matmul+SiLU -> head matmul+SiLU -> pool acc -> proj
# ----------------------------------------------------------------------------
def _fused_backbone_proj_kernel(cols_ref, sw_ref, sb_ref, hw_ref, hb_ref,
                                pw_ref, pb_ref, o_ref, acc_ref, *, inv_hw):
    t = pl.program_id(1)

    @pl.when(t == 0)
    def _init():
        acc_ref[...] = jnp.zeros_like(acc_ref)

    cols = cols_ref[0]                                            # (THW, K) bf16

    # stem conv3x3/s2 (im2col matmul) + bias + SiLU, f32 MXU accumulate
    stem = jnp.dot(cols, sw_ref[...], preferred_element_type=jnp.float32)
    stem = stem + sb_ref[...]
    stem = stem * jax.nn.sigmoid(stem)                            # SiLU (EUP)

    # TODO(synk): the 16 pretrained MBConv blocks (depthwise convs, SE) of
    # efficientnet_b0 have no synthetic equivalent; skeleton only.

    # conv_head 1x1 -> 1280 + bias + SiLU
    head = jnp.dot(stem.astype(jnp.bfloat16), hw_ref[...],
                   preferred_element_type=jnp.float32)
    head = head + hb_ref[...]
    head = head * jax.nn.sigmoid(head)

    # global-average-pool: accumulate spatial sum in f32 VMEM scratch
    acc_ref[...] += jnp.sum(head, axis=0, keepdims=True)          # (1, 1280)

    @pl.when(t == pl.num_programs(1) - 1)
    def _finalize():
        pooled = acc_ref[...] * inv_hw                            # (1, 1280) f32
        proj = jnp.dot(pooled.astype(jnp.bfloat16), pw_ref[...],
                       preferred_element_type=jnp.float32)
        res = proj + pb_ref[...]                                  # (1, 512)
        o_ref[...] = res.reshape(o_ref.shape).astype(o_ref.dtype)


def _pick_hw_tile(hw, max_tile=512):
    """Largest HW tile <= max_tile that divides HW (multiple of 8 preferred)."""
    if hw <= max_tile:
        return hw
    for t in range(max_tile, 7, -1):
        if hw % t == 0 and t % 8 == 0:
            return t
    return hw  # fallback: single full-extent tile


def fused_backbone_project(params, cols):
    """cols: (B2, HW, 9*C) im2col patches -> (B2, EMBED_DIM) embeddings."""
    B2, HW, K = cols.shape
    THW = _pick_hw_tile(HW)
    assert HW % THW == 0
    n_hw = HW // THW

    # Zero-pad stem channels 32 -> 128 (lane-dense intermediate, exact math:
    # SiLU(0)=0 and the padded head_w rows are zero).
    sw = (jnp.zeros((K, STEM_PAD), jnp.float32)
          .at[:, :STEM_CH].set(params["stem_w"])).astype(jnp.bfloat16)
    sb = (jnp.zeros((1, STEM_PAD), jnp.float32)
          .at[:, :STEM_CH].set(params["stem_b"]))
    hw_w = (jnp.zeros((STEM_PAD, FEAT_CH), jnp.float32)
            .at[:STEM_CH, :].set(params["head_w"])).astype(jnp.bfloat16)
    hb = params["head_b"].reshape(1, FEAT_CH).astype(jnp.float32)
    pw = params["proj_w"].astype(jnp.bfloat16)
    pb = params["proj_b"].reshape(1, EMBED_DIM).astype(jnp.float32)
    cols_bf = cols.astype(jnp.bfloat16)

    kernel = functools.partial(_fused_backbone_proj_kernel, inv_hw=1.0 / HW)

    out = pl.pallas_call(
        kernel,
        out_shape=jax.ShapeDtypeStruct((B2, 1, EMBED_DIM), jnp.float32),
        grid=(B2, n_hw),
        in_specs=[
            pl.BlockSpec((1, THW, K), lambda b, t: (b, t, 0)),        # patches
            pl.BlockSpec((K, STEM_PAD), lambda b, t: (0, 0)),         # stem_w
            pl.BlockSpec((1, STEM_PAD), lambda b, t: (0, 0)),         # stem_b
            pl.BlockSpec((STEM_PAD, FEAT_CH), lambda b, t: (0, 0)),   # head_w
            pl.BlockSpec((1, FEAT_CH), lambda b, t: (0, 0)),          # head_b
            pl.BlockSpec((FEAT_CH, EMBED_DIM), lambda b, t: (0, 0)),  # proj_w
            pl.BlockSpec((1, EMBED_DIM), lambda b, t: (0, 0)),        # proj_b
        ],
        out_specs=pl.BlockSpec((1, 1, EMBED_DIM), lambda b, t: (b, 0, 0)),
        scratch_shapes=[pltpu.VMEM((1, FEAT_CH), jnp.float32)],       # pool acc
        compiler_params=pltpu.CompilerParams(
            dimension_semantics=("parallel", "arbitrary")),
    )(cols_bf, sw, sb, hw_w, hb, pw, pb)
    return out.reshape(B2, EMBED_DIM)


# ----------------------------------------------------------------------------
# Plain-JAX glue: im2col patch extraction (pure data movement / reshapes)
# ----------------------------------------------------------------------------
def _im2col_3x3_s2(x_nhwc):
    """3x3 kernel, stride 2, pad 1 -> (B, Ho*Wo, 9*C) patches, (dh, dw, c) order.

    NOTE: a pretrained PyTorch conv weight (O, I, kh, kw) must be permuted to
    (kh, kw, I, O) then reshaped to (9*I, O) to match this column order.
    """
    B, H, W, C = x_nhwc.shape
    xp = jnp.pad(x_nhwc, ((0, 0), (1, 1), (1, 1), (0, 0)))
    Ho = (H + 2 - 3) // 2 + 1
    Wo = (W + 2 - 3) // 2 + 1
    patches = [xp[:, dh:dh + 2 * Ho:2, dw:dw + 2 * Wo:2, :]
               for dh in range(3) for dw in range(3)]
    cols = jnp.concatenate(patches, axis=-1)                      # (B,Ho,Wo,9C)
    return cols.reshape(B, Ho * Wo, 9 * C), Ho, Wo


# ----------------------------------------------------------------------------
# Parameters (deterministic synthetic init; shapes follow efficientnet_b0)
# ----------------------------------------------------------------------------
def init_params(key, in_ch=3):
    ks = jax.random.split(key, 4)
    return {
        "stem_w": 0.05 * jax.random.normal(ks[0], (9 * in_ch, STEM_CH), jnp.float32),
        "stem_b": jnp.zeros((STEM_CH,), jnp.float32),
        "head_w": 0.05 * jax.random.normal(ks[1], (STEM_CH, FEAT_CH), jnp.float32),
        "head_b": jnp.zeros((FEAT_CH,), jnp.float32),
        "proj_w": 0.02 * jax.random.normal(ks[2], (FEAT_CH, EMBED_DIM), jnp.float32),
        "proj_b": 0.02 * jax.random.normal(ks[3], (EMBED_DIM,), jnp.float32),
    }


# ----------------------------------------------------------------------------
# Forward pass
# ----------------------------------------------------------------------------
def siamese_forward(params, x1, x2):
    """x1, x2: NCHW images. Returns (f1, f2) of shape (B, EMBED_DIM)."""
    B = x1.shape[0]
    x = jnp.concatenate([x1, x2], axis=0)          # share weights, one launch
    x = jnp.transpose(x, (0, 2, 3, 1))             # NCHW -> NHWC
    cols, _, _ = _im2col_3x3_s2(x)                 # (2B, HW, 9C) glue
    emb = fused_backbone_project(params, cols)     # (2B, 512)
    return emb[:B], emb[B:]


# ----------------------------------------------------------------------------
if __name__ == "__main__":
    key = jax.random.PRNGKey(0)
    kp, k1, k2 = jax.random.split(key, 3)

    B, C, H, W = 2, 3, 16, 16   # small image pair, NCHW as in PyTorch
    x1 = jax.random.normal(k1, (B, C, H, W), jnp.float32)
    x2 = jax.random.normal(k2, (B, C, H, W), jnp.float32)

    params = init_params(kp, in_ch=C)

    fwd = jax.jit(siamese_forward)
    f1, f2 = fwd(params, x1, x2)
    jax.block_until_ready((f1, f2))

    assert f1.shape == (B, EMBED_DIM) and f2.shape == (B, EMBED_DIM)
    assert f1.dtype == jnp.float32 and f2.dtype == jnp.float32
    assert bool(jnp.all(jnp.isfinite(f1))) and bool(jnp.all(jnp.isfinite(f2)))
    print("KERNEL_OK")
</pallas_src>

<mosaic_0001>
module attributes {stable_mosaic.version = 11 : i64} {
  func.func @_fused_backbone_proj_kernel(%arg0: i32, %arg1: i32, %arg2: memref<1x64x27xbf16, #tpu.memory_space<vmem>>, %arg3: memref<27x128xbf16, #tpu.memory_space<vmem>>, %arg4: memref<1x128xf32, #tpu.memory_space<vmem>>, %arg5: memref<128x1280xbf16, #tpu.memory_space<vmem>>, %arg6: memref<1x1280xf32, #tpu.memory_space<vmem>>, %arg7: memref<1280x512xbf16, #tpu.memory_space<vmem>>, %arg8: memref<1x512xf32, #tpu.memory_space<vmem>>, %arg9: memref<1x1x512xf32, #tpu.memory_space<vmem>>, %arg10: memref<1x1280xf32, #tpu.memory_space<vmem>>) attributes {dimension_semantics = [#tpu.dimension_semantics<parallel>, #tpu.dimension_semantics<arbitrary>], iteration_bounds = array<i64: 4, 1>, scalar_prefetch = 0 : i64, scratch_operands = 1 : i64, tpu.core_type = #tpu.core_type<tc>, window_params = [{transform_indices = @transform_0, window_bounds = array<i64: 1, 64, 27>}, {pipeline_mode = #tpu.pipeline_mode<synchronous>, transform_indices = @transform_1, window_bounds = array<i64: 27, 128>}, {pipeline_mode = #tpu.pipeline_mode<synchronous>, transform_indices = @transform_2, window_bounds = array<i64: 1, 128>}, {pipeline_mode = #tpu.pipeline_mode<synchronous>, transform_indices = @transform_3, window_bounds = array<i64: 128, 1280>}, {pipeline_mode = #tpu.pipeline_mode<synchronous>, transform_indices = @transform_4, window_bounds = array<i64: 1, 1280>}, {pipeline_mode = #tpu.pipeline_mode<synchronous>, transform_indices = @transform_5, window_bounds = array<i64: 1280, 512>}, {pipeline_mode = #tpu.pipeline_mode<synchronous>, transform_indices = @transform_6, window_bounds = array<i64: 1, 512>}, {transform_indices = @transform_7, window_bounds = array<i64: 1, 1, 512>}]} {
    %c0_i32 = arith.constant 0 : i32
    %0 = arith.cmpi eq, %arg1, %c0_i32 : i32
    %1 = arith.extui %0 : i1 to i32
    %c0_i32_0 = arith.constant 0 : i32
    %2 = arith.cmpi ne, %1, %c0_i32_0 : i32
    scf.if %2 {
      %cst_21 = arith.constant 0.000000e+00 : f32
      %36 = vector.broadcast %cst_21 : f32 to vector<1x1280xf32>
      %c0_22 = arith.constant 0 : index
      %c0_23 = arith.constant 0 : index
      %37 = vector.load %arg10[%c0_22, %c0_23] : memref<1x1280xf32, #tpu.memory_space<vmem>>, vector<1x1280xf32>
      tpu.vector_store %arg10[%c0_22, %c0_23], %36 {strides = array<i32>} : memref<1x1280xf32, #tpu.memory_space<vmem>>, vector<1x1280xf32>,
    } else {
    }
    %c0 = arith.constant 0 : index
    %c0_1 = arith.constant 0 : index
    %c0_2 = arith.constant 0 : index
    %3 = vector.load %arg2[%c0, %c0_1, %c0_2] : memref<1x64x27xbf16, #tpu.memory_space<vmem>>, vector<1x64x27xbf16>
    %4 = vector.shape_cast %3 : vector<1x64x27xbf16> to vector<64x27xbf16>
    %c0_3 = arith.constant 0 : index
    %c0_4 = arith.constant 0 : index
    %5 = vector.load %arg3[%c0_3, %c0_4] : memref<27x128xbf16, #tpu.memory_space<vmem>>, vector<27x128xbf16>
    %cst = arith.constant dense<0.000000e+00> : vector<64x128xf32>
    %6 = tpu.matmul %4, %5, %cst {dimension_numbers = #tpu.dot_dimension_numbers<[1], [0], [0], [1], [0, 0, 1, 1], [], []>} : vector<64x27xbf16>, vector<27x128xbf16>, vector<64x128xf32> -> vector<64x128xf32>
    %c0_5 = arith.constant 0 : index
    %c0_6 = arith.constant 0 : index
    %7 = vector.load %arg4[%c0_5, %c0_6] : memref<1x128xf32, #tpu.memory_space<vmem>>, vector<1x128xf32>
    %8 = vector.broadcast %7 : vector<1x128xf32> to vector<64x128xf32>
    %9 = arith.addf %6, %8 : vector<64x128xf32>
    %10 = arith.negf %9 : vector<64x128xf32>
    %11 = math.exp %10 : vector<64x128xf32>
    %cst_7 = arith.constant 1.000000e+00 : f32
    %12 = vector.broadcast %cst_7 : f32 to vector<64x128xf32>
    %13 = arith.addf %12, %11 : vector<64x128xf32>
    %14 = arith.divf %12, %13 : vector<64x128xf32>
    %15 = arith.mulf %9, %14 : vector<64x128xf32>
    %16 = arith.truncf %15 : vector<64x128xf32> to vector<64x128xbf16>
    %c0_8 = arith.constant 0 : index
    %c0_9 = arith.constant 0 : index
    %17 = vector.load %arg5[%c0_8, %c0_9] : memref<128x1280xbf16, #tpu.memory_space<vmem>>, vector<128x1280xbf16>
    %cst_10 = arith.constant dense<0.000000e+00> : vector<64x1280xf32>
    %18 = tpu.matmul %16, %17, %cst_10 {dimension_numbers = #tpu.dot_dimension_numbers<[1], [0], [0], [1], [0, 0, 1, 1], [], []>} : vector<64x128xbf16>, vector<128x1280xbf16>, vector<64x1280xf32> -> vector<64x1280xf32>
    %c0_11 = arith.constant 0 : index
    %c0_12 = arith.constant 0 : index
    %19 = vector.load %arg6[%c0_11, %c0_12] : memref<1x1280xf32, #tpu.memory_space<vmem>>, vector<1x1280xf32>
    %20 = vector.broadcast %19 : vector<1x1280xf32> to vector<64x1280xf32>
    %21 = arith.addf %18, %20 : vector<64x1280xf32>
    %22 = arith.negf %21 : vector<64x1280xf32>
    %23 = math.exp %22 : vector<64x1280xf32>
    %cst_13 = arith.constant 1.000000e+00 : f32
    %24 = vector.broadcast %cst_13 : f32 to vector<64x1280xf32>
    %25 = arith.addf %24, %23 : vector<64x1280xf32>
    %26 = arith.divf %24, %25 : vector<64x1280xf32>
    %27 = arith.mulf %21, %26 : vector<64x1280xf32>
    %c0_14 = arith.constant 0 : index
    %c0_15 = arith.constant 0 : index
    %28 = vector.load %arg10[%c0_14, %c0_15] : memref<1x1280xf32, #tpu.memory_space<vmem>>, vector<1x1280xf32>
    %cst_16 = arith.constant dense<0.000000e+00> : vector<1280xf32>
    %29 = vector.multi_reduction <add>, %27, %cst_16 [0] : vector<64x1280xf32> to vector<1280xf32>
    %30 = vector.shape_cast %29 : vector<1280xf32> to vector<1x1280xf32>
    %31 = arith.addf %28, %30 : vector<1x1280xf32>
    %c0_17 = arith.constant 0 : index
    %c0_18 = arith.constant 0 : index
    %32 = vector.load %arg10[%c0_17, %c0_18] : memref<1x1280xf32, #tpu.memory_space<vmem>>, vector<1x1280xf32>
    tpu.vector_store %arg10[%c0_17, %c0_18], %31 {strides = array<i32>} : memref<1x1280xf32, #tpu.memory_space<vmem>>, vector<1x1280xf32>,
    %c0_i32_19 = arith.constant 0 : i32
    %33 = arith.cmpi eq, %arg1, %c0_i32_19 : i32
    %34 = arith.extui %33 : i1 to i32
    %c0_i32_20 = arith.constant 0 : i32
    %35 = arith.cmpi ne, %34, %c0_i32_20 : i32
    scf.if %35 {
      %c0_21 = arith.constant 0 : index
      %c0_22 = arith.constant 0 : index
      %36 = vector.load %arg10[%c0_21, %c0_22] : memref<1x1280xf32, #tpu.memory_space<vmem>>, vector<1x1280xf32>
      %cst_23 = arith.constant 1.562500e-02 : f32
      %37 = vector.broadcast %cst_23 : f32 to vector<1x1280xf32>
      %38 = arith.mulf %36, %37 : vector<1x1280xf32>
      %39 = arith.truncf %38 : vector<1x1280xf32> to vector<1x1280xbf16>
      %c0_24 = arith.constant 0 : index
      %c0_25 = arith.constant 0 : index
      %40 = vector.load %arg7[%c0_24, %c0_25] : memref<1280x512xbf16, #tpu.memory_space<vmem>>, vector<1280x512xbf16>
      %cst_26 = arith.constant dense<0.000000e+00> : vector<1x512xf32>
      %41 = tpu.matmul %39, %40, %cst_26 {dimension_numbers = #tpu.dot_dimension_numbers<[1], [0], [0], [1], [0, 0, 1, 1], [], []>} : vector<1x1280xbf16>, vector<1280x512xbf16>, vector<1x512xf32> -> vector<1x512xf32>
      %c0_27 = arith.constant 0 : index
      %c0_28 = arith.constant 0 : index
      %42 = vector.load %arg8[%c0_27, %c0_28] : memref<1x512xf32, #tpu.memory_space<vmem>>, vector<1x512xf32>
      %43 = arith.addf %41, %42 : vector<1x512xf32>
      %44 = vector.shape_cast %43 : vector<1x512xf32> to vector<1x1x512xf32>
      %c0_29 = arith.constant 0 : index
      %c0_30 = arith.constant 0 : index
      %c0_31 = arith.constant 0 : index
      %45 = vector.load %arg9[%c0_29, %c0_30, %c0_31] : memref<1x1x512xf32, #tpu.memory_space<vmem>>, vector<1x1x512xf32>
      tpu.vector_store %arg9[%c0_29, %c0_30, %c0_31], %44 {strides = array<i32>} : memref<1x1x512xf32, #tpu.memory_space<vmem>>, vector<1x1x512xf32>,
    } else {
    }
    return
  }
  func.func @transform_0(%arg0: i32, %arg1: i32) -> (i32, i32, i32) {
    %c0_i32 = arith.constant 0 : i32
    %c0_i32_0 = arith.constant 0 : i32
    return %arg0, %arg1, %c0_i32 : i32, i32, i32
  }
  func.func @transform_1(%arg0: i32, %arg1: i32) -> (i32, i32) {
    %c0_i32 = arith.constant 0 : i32
    %c0_i32_0 = arith.constant 0 : i32
    %c0_i32_1 = arith.constant 0 : i32
    return %c0_i32, %c0_i32_0 : i32, i32
  }
  func.func @transform_2(%arg0: i32, %arg1: i32) -> (i32, i32) {
    %c0_i32 = arith.constant 0 : i32
    %c0_i32_0 = arith.constant 0 : i32
    %c0_i32_1 = arith.constant 0 : i32
    return %c0_i32, %c0_i32_0 : i32, i32
  }
  func.func @transform_3(%arg0: i32, %arg1: i32) -> (i32, i32) {
    %c0_i32 = arith.constant 0 : i32
    %c0_i32_0 = arith.constant 0 : i32
    %c0_i32_1 = arith.constant 0 : i32
    return %c0_i32, %c0_i32_0 : i32, i32
  }
  func.func @transform_4(%arg0: i32, %arg1: i32) -> (i32, i32) {
    %c0_i32 = arith.constant 0 : i32
    %c0_i32_0 = arith.constant 0 : i32
    %c0_i32_1 = arith.constant 0 : i32
    return %c0_i32, %c0_i32_0 : i32, i32
  }
  func.func @transform_5(%arg0: i32, %arg1: i32) -> (i32, i32) {
    %c0_i32 = arith.constant 0 : i32
    %c0_i32_0 = arith.constant 0 : i32
    %c0_i32_1 = arith.constant 0 : i32
    return %c0_i32, %c0_i32_0 : i32, i32
  }
  func.func @transform_6(%arg0: i32, %arg1: i32) -> (i32, i32) {
    %c0_i32 = arith.constant 0 : i32
    %c0_i32_0 = arith.constant 0 : i32
    %c0_i32_1 = arith.constant 0 : i32
    return %c0_i32, %c0_i32_0 : i32, i32
  }
  func.func @transform_7(%arg0: i32, %arg1: i32) -> (i32, i32, i32) {
    %c0_i32 = arith.constant 0 : i32
    %c0_i32_0 = arith.constant 0 : i32
    %c0_i32_1 = arith.constant 0 : i32
    return %arg0, %c0_i32, %c0_i32_0 : i32, i32, i32
  }
}

</mosaic_0001>

<bundles_post_ra>
// kernel: siamese_forward.1
= control target key start
LH: loop header
LB: loop body
LE: loop exit
PB: predicated region body
PF: predicated region fallthrough
CT: control target
= control target key end

     0   :  { %s6324_s24 = smov 0   ;;  %s6326_s25 = smov 0   ;;  %s8441_s0 = inlined_call_operand.vmem [shape: bf16[4,64,27], index: 0, kind: input, shape index: {}]   ;;  %s8442_s1 = inlined_call_operand.vmem [shape: bf16[27,128], index: 1, kind: input, shape index: {}]   ;;  %s8443_s2 = inlined_call_operand.vmem [shape: f32[1,128], index: 2, kind: input, shape index: {}]   ;;  %s8444_s3 = inlined_call_operand.vmem [shape: bf16[128,1280], index: 3, kind: input, shape index: {}]   ;;  %s8445_s4 = inlined_call_operand.vmem [shape: f32[1,1280], index: 4, kind: input, shape index: {}]   ;;  %s8446_s5 = inlined_call_operand.vmem [shape: bf16[1280,512], index: 5, kind: input, shape index: {}]   ;;  %s8447_s6 = inlined_call_operand.vmem [shape: f32[1,512], index: 6, kind: input, shape index: {}]   ;;  %s8448_s7 = inlined_call_operand.vmem [shape: f32[4,1,512], index: 7, kind: output, shape index: {}]  }
   0x1   :  { %s6328_s26 = smov 0  }
   0x2 LB: > { %s29_s27 = sadd.s32 1, %s6274_s25  ;;  %p4710_p0 = scmp.ge.s32.totalorder %s6278_s26, 1  ;;  %s6278_s26 = sphi %s6328_s26, %s17_s26   ;;  %s6274_s25 = sphi %s6326_s25, %s8544_s25   ;;  %s6270_s24 = sphi %s6324_s24, %s8543_s24  }
   0x3   : > { %p31_p1 = scmp.ge.s32.totalorder %s29_s27, 4  ;;  %p256_p2 = scmp.lt.s32.totalorder %s6278_s26, 5 }
   0x5   : > { %s8546_s27 = smov (%p31_p1, %s29_s27), 0  ;;  %p257_p3 = pnand %p4710_p0, %p256_p2 }
   0x7   : > { %260 = sbr.rel (%p257_p3) target bundleno = 1157 (0x485), region = 48 }
   0xe   : > { %v5298_v0 = vld [vmem:[%s8442_s1] sm:$0xff]   ;;  %vm379_vm0 = vcmask 1044480   ;;  %v5299_v1 = vld [vmem:[%s8442_s1 + $0x8] sm:$0x3f]   ;;  %vm380_vm1 = vcmask 1045504   ;;  %p292_p4 = scmp.lt.s32.totalorder %s6270_s24, 3 }
   0xf   : > { %5222 = vmatprep.subr.bf16.mxu0 %v5298_v0  ;;  %v6280_v2 = vmov 65535   ;;  %vm366_vm2 = vcmask 220160   ;;  %v5304_v10 = vld [vmem:[%s8444_s3 + $0x4] ss:$40 sps:$4 sm:$0xff]   ;;  %v5306_v12 = vld [vmem:[%s8444_s3 + $0x8] ss:$40 sps:$4 sm:$0xff]  }
  0x10   : > { %5223 = vmatpush3.bf16.msra.mxu0 %v5298_v0  ;;  %v381_v3 = vsel %vm379_vm0, 4294967295, %v6280_v2  ;;  %s8548_s24 = smov (!%p292_p4, %s6270_s24), 3  ;;  %v5308_v11 = vld [vmem:[%s8444_s3 + $0xc] ss:$40 sps:$4 sm:$0xff]   ;;  %v5309_v13 = vld [vmem:[%s8444_s3] ss:$40 sps:$4 sm:$0xff]   ;;  %1045 = vmatprep.subr.bf16.mxu1 %v5304_v10 }
  0x11   : > { %v382_v4 = vsel %vm380_vm1, %v381_v3, 0  ;;  %s5215_s9 = sshll.u32 %s8548_s24, 5  ;;  %1046 = vmatpush1.bf16.msra.mxu1 %v5309_v13  ;;  %v5310_v14 = vld [vmem:[%s8444_s3 + $0x54] ss:$40 sps:$4 sm:$0xff]   ;;  %v5312_v16 = vld [vmem:[%s8444_s3 + $0x58] ss:$40 sps:$4 sm:$0xff]  }
  0x12   : > { %v384_v5 = vand.u32 %v5299_v1, %v382_v4  ;;  %s299_s12 = scalar_lea.vmem %s8441_s0, %s5215_s9  ;;  %v5314_v15 = vld [vmem:[%s8444_s3 + $0x5c] ss:$40 sps:$4 sm:$0xff]   ;;  %v5315_v17 = vld [vmem:[%s8444_s3 + $0x50] ss:$40 sps:$4 sm:$0xff]   ;;  %1047 = vmatprep.subr.bf16.mxu1 %v5310_v14  ;;  %v5320_v19 = vld [vmem:[%s8444_s3 + $0xac] ss:$40 sps:$4 sm:$0xff]  }
  0x13   : > { %v5300_v6 = vld [vmem:[%s299_s12] sm:$0xff]   ;;  %v5301_v7 = vld [vmem:[%s299_s12 + $0x8] sm:$0xff]   ;;  %v5302_v8 = vld [vmem:[%s299_s12 + $0x10] sm:$0xff]   ;;  %v6281_v44 = vmov 0   ;;  %s4713_s23 = sshll.u32 %s8548_s24, 2 }
  0x14   : > { %5224 = vmatprep.subr.bf16.mxu0 %v384_v5  ;;  %5226 = vmatprep.mubr.msk.bf16.mxu0 %vm366_vm2, %v5300_v6  ;;  %v5303_v9 = vld [vmem:[%s299_s12 + $0x18] sm:$0xff]   ;;  %v5316_v18 = vld [vmem:[%s8444_s3 + $0xa4] ss:$40 sps:$4 sm:$0xff]   ;;  %v5318_v20 = vld [vmem:[%s8444_s3 + $0xa8] ss:$40 sps:$4 sm:$0xff]   ;;  %s304_s30 = scalar_lea.vmem %s8448_s7, %s4713_s23 }
  0x15   : > { %5225 = vmatpush3.bf16.msra.mxu0 %v384_v5  ;;  %1048 = vmatpush1.bf16.msra.mxu1 %v5315_v17  ;;  %v5321_v21 = vld [vmem:[%s8444_s3 + $0xa0] ss:$40 sps:$4 sm:$0xff]   ;;  %v5322_v22 = vld [vmem:[%s8444_s3 + $0xf4] ss:$40 sps:$4 sm:$0xff]   ;;  %v5327_v25 = vld [vmem:[%s8444_s3 + $0xf0] ss:$40 sps:$4 sm:$0xff]  }
  0x16   : > { %1118 = vmatprep.subr.bf16.mxu0 %v5308_v11  ;;  %1049 = vmatprep.subr.bf16.mxu1 %v5316_v18  ;;  %v5326_v23 = vld [vmem:[%s8444_s3 + $0xfc] ss:$40 sps:$4 sm:$0xff]   ;;  %v5324_v24 = vld [vmem:[%s8444_s3 + $0xf8] ss:$40 sps:$4 sm:$0xff]   ;;  %v5332_v27 = vld [vmem:[%s8444_s3 + $0x14c] ss:$40 sps:$4 sm:$0xff]  }
  0x17   : > { %v5328_v26 = vld [vmem:[%s8444_s3 + $0x144] ss:$40 sps:$4 sm:$0xff]   ;;  %v5330_v28 = vld [vmem:[%s8444_s3 + $0x148] ss:$40 sps:$4 sm:$0xff]   ;;  %v5334_v30 = vld [vmem:[%s8444_s3 + $0x194] ss:$40 sps:$4 sm:$0xff]   ;;  %1077 = vmatprep.mubr.bf16.mxu1 %v6281_v44 }
  0x18   : > { %5227 = vmatmul.mubr.msk.bf16.vlgmr.msra.gmra.mrb[0].mxu0 %vm366_vm2, %v5301_v7  ;;  %v5333_v29 = vld [vmem:[%s8444_s3 + $0x140] ss:$40 sps:$4 sm:$0xff]   ;;  %v5338_v31 = vld [vmem:[%s8444_s3 + $0x19c] ss:$40 sps:$4 sm:$0xff]   ;;  %v5339_v33 = vld [vmem:[%s8444_s3 + $0x190] ss:$40 sps:$4 sm:$0xff]  }
  0x19   : > { %5230 = vmatprep.mubr.msk.bf16.mxu0 %vm366_vm2, %v5302_v8  ;;  %1119 = vmatpush1.bf16.msra.mxu0 %v5306_v12  ;;  %v5336_v32 = vld [vmem:[%s8444_s3 + $0x198] ss:$40 sps:$4 sm:$0xff]   ;;  %v5340_v34 = vld [vmem:[%s8444_s3 + $0x1e4] ss:$40 sps:$4 sm:$0xff]   ;;  %v5342_v36 = vld [vmem:[%s8444_s3 + $0x1e8] ss:$40 sps:$4 sm:$0xff]  }
  0x1a   : > { %1120 = vmatprep.subr.bf16.mxu0 %v5314_v15  ;;  %1050 = vmatpush1.bf16.msra.mxu1 %v5321_v21  ;;  %v5344_v35 = vld [vmem:[%s8444_s3 + $0x1ec] ss:$40 sps:$4 sm:$0xff]   ;;  %v5345_v37 = vld [vmem:[%s8444_s3 + $0x1e0] ss:$40 sps:$4 sm:$0xff]   ;;  %v5350_v39 = vld [vmem:[%s8444_s3 + $0x23c] ss:$40 sps:$4 sm:$0xff]  }
  0x1b   : > { %1051 = vmatprep.subr.bf16.mxu1 %v5322_v22  ;;  %v5346_v38 = vld [vmem:[%s8444_s3 + $0x234] ss:$40 sps:$4 sm:$0xff]   ;;  %v5348_v40 = vld [vmem:[%s8444_s3 + $0x238] ss:$40 sps:$4 sm:$0xff]  }
  0x1c   : > { %v5351_v41 = vld [vmem:[%s8444_s3 + $0x230] ss:$40 sps:$4 sm:$0xff]   ;;  %v5354_v42 = vld [vmem:[%s8444_s3 + $0x14] ss:$40 sps:$4 sm:$0xff]   ;;  %v4714_v45 = vld [vmem:[%s8443_s2] ss:$0 sm:$0xff] }
  0x1d   : > { %1121 = vmatpush1.bf16.msra.mxu0 %v5312_v16  ;;  %v5357_v43 = vld [vmem:[%s8444_s3 + $0x1c] ss:$40 sps:$4 sm:$0xff]  }
  0x1e   : > { %1122 = vmatprep.subr.bf16.mxu0 %v5320_v19  ;;  %1052 = vmatpush1.bf16.msra.mxu1 %v5327_v25 }
  0x1f   : > { %1053 = vmatprep.subr.bf16.mxu1 %v5328_v26 }
  0x20   : > { %5231 = vmatmul.mubr.msk.bf16.gmra.mrb[4].mxu0 %vm366_vm2, %v5303_v9 }
  0x21   : > { %1123 = vmatpush1.bf16.msra.mxu0 %v5318_v20  ;;  %1150 = vmatprep.mubr.bf16.mxu0 %v6281_v44 }
  0x22   : > { %1124 = vmatprep.subr.bf16.mxu0 %v5326_v23  ;;  %1054 = vmatpush1.bf16.msra.mxu1 %v5333_v29 }
  0x23   : > { %1055 = vmatprep.subr.bf16.mxu1 %v5334_v30 }
  0x25   : > { %1125 = vmatpush1.bf16.msra.mxu0 %v5324_v24 }
  0x26   : > { %1126 = vmatprep.subr.bf16.mxu0 %v5332_v27  ;;  %1056 = vmatpush1.bf16.msra.mxu1 %v5339_v33 }
  0x27   : > { %1057 = vmatprep.subr.bf16.mxu1 %v5340_v34  ;;  %v5360_v34 = vld [vmem:[%s8444_s3 + $0x64] ss:$40 sps:$4 sm:$0xff]  }
  0x29   : > { %1127 = vmatpush1.bf16.msra.mxu0 %v5330_v28 }
  0x2a   : > { %1128 = vmatprep.subr.bf16.mxu0 %v5338_v31  ;;  %1058 = vmatpush1.bf16.msra.mxu1 %v5345_v37  ;;  %v5352_v31 = vld [vmem:[%s8444_s3 + $0x10] ss:$40 sps:$4 sm:$0xff]  }
  0x2b   : > { %1059 = vmatprep.subr.bf16.mxu1 %v5346_v38  ;;  %v5358_v38 = vld [vmem:[%s8444_s3 + $0x60] ss:$40 sps:$4 sm:$0xff]  }
  0x2d   : > { %1129 = vmatpush1.bf16.msra.mxu0 %v5336_v32  ;;  %v5355_v32 = vld [vmem:[%s8444_s3 + $0x18] ss:$40 sps:$4 sm:$0xff]  }
  0x2e   : > { %1130 = vmatprep.subr.bf16.mxu0 %v5344_v35  ;;  %1060 = vmatpush1.bf16.msra.mxu1 %v5351_v41  ;;  %v5363_v35 = vld [vmem:[%s8444_s3 + $0x6c] ss:$40 sps:$4 sm:$0xff]  }
  0x2f   : > { %1191 = vmatprep.subr.bf16.mxu1 %v5354_v42  ;;  %v5366_v41 = vld [vmem:[%s8444_s3 + $0xb4] ss:$40 sps:$4 sm:$0xff]  }
  0x30   : > { %v5369_v42 = vld [vmem:[%s8444_s3 + $0xbc] ss:$40 sps:$4 sm:$0xff]  }
  0x31   : > { %1131 = vmatpush1.bf16.msra.mxu0 %v5342_v36 }
  0x32   : > { %1132 = vmatprep.subr.bf16.mxu0 %v5350_v39  ;;  %v5361_v39 = vld [vmem:[%s8444_s3 + $0x68] ss:$40 sps:$4 sm:$0xff]  }
  0x35   : > { %1133 = vmatpush1.bf16.msra.mxu0 %v5348_v40 }
  0x36   : > { %1264 = vmatprep.subr.bf16.mxu0 %v5357_v43 }
  0xeb   : > { %v5228_v46 = vpop.f32.mrb[0].mxu0 }
  0xec   : > { %v429_v47 = vadd.f32 %v5228_v46, %v4714_v45  ;;  %v420_v48 = vpop.f32.mrb[1].mxu0 }
  0xed   : > { %v421_v49 = vadd.f32 %v4714_v45, %v420_v48  ;;  %v5229_v50 = vpop.f32.mrb[2].mxu0 }
  0xee   : > { %v4727_v51 = vmul.f32 -1.442695, %v429_v47  ;;  %v432_v52 = vadd.f32 %v5229_v50, %v4714_v45  ;;  %v423_v53 = vpop.f32.mrb[3].mxu0  ;;  %v5364_v50 = vld [vmem:[%s8444_s3 + $0xb0] ss:$40 sps:$4 sm:$0xff]  }
  0xef   : > { %v4725_v54 = vmul.f32 -1.442695, %v421_v49  ;;  %v424_v55 = vadd.f32 %v4714_v45, %v423_v53  ;;  %v5372_v53 = vld [vmem:[%s8444_s3 + $0x104] ss:$40 sps:$4 sm:$0xff]  }
  0xf0   : > { %5904 = vpow2.f32 %v4727_v51  ;;  %v4728_v56 = vmul.f32 -1.442695, %v432_v52  ;;  %v5367_v51 = vld [vmem:[%s8444_s3 + $0xb8] ss:$40 sps:$4 sm:$0xff]  }
  0xf1   : > { %5906 = vpow2.f32 %v4725_v54  ;;  %v4726_v57 = vmul.f32 -1.442695, %v424_v55  ;;  %v5375_v54 = vld [vmem:[%s8444_s3 + $0x10c] ss:$40 sps:$4 sm:$0xff]  }
  0xf2   : > { %5908 = vpow2.f32 %v4728_v56  ;;  %v5373_v56 = vld [vmem:[%s8444_s3 + $0x108] ss:$40 sps:$4 sm:$0xff]  }
  0xf3   : > { %5910 = vpow2.f32 %v4726_v57  ;;  %v5232_v58 = vpop.f32.mrb[4].mxu0  ;;  %v5378_v57 = vld [vmem:[%s8444_s3 + $0x154] ss:$40 sps:$4 sm:$0xff]  }
  0xf4   : > { %v6461_v59 = vadd.f32 %v5232_v58, %v4714_v45  ;;  %v436_v60 = vpop.f32.mrb[5].mxu0  ;;  %v5381_v58 = vld [vmem:[%s8444_s3 + $0x15c] ss:$40 sps:$4 sm:$0xff]  }
  0xf5   : > { %v6463_v61 = vadd.f32 %v4714_v45, %v436_v60  ;;  %v5233_v62 = vpop.f32.mrb[6].mxu0  ;;  %v5379_v60 = vld [vmem:[%s8444_s3 + $0x158] ss:$40 sps:$4 sm:$0xff]  }
  0xf6   : > { %v4731_v63 = vmul.f32 -1.442695, %v6461_v59  ;;  %v6466_v0 = vadd.f32 %v5233_v62, %v4714_v45  ;;  %v439_v1 = vpop.f32.mrb[7].mxu0  ;;  %v5387_v62 = vld [vmem:[%s8444_s3 + $0x1ac] ss:$40 sps:$4 sm:$0xff]  }
  0xf7   : > { %v4729_v2 = vmul.f32 -1.442695, %v6463_v61  ;;  %v6469_v3 = vadd.f32 %v4714_v45, %v439_v1  ;;  %v5390_v1 = vld [vmem:[%s8444_s3 + $0x1f4] ss:$40 sps:$4 sm:$0xff]  }
  0xf8   : > { %5912 = vpow2.f32 %v4731_v63  ;;  %v4732_v4 = vmul.f32 -1.442695, %v6466_v0  ;;  %v5382_v63 = vld [vmem:[%s8444_s3 + $0x1a0] ss:$40 sps:$4 sm:$0xff]  }
  0xf9   : > { %5914 = vpow2.f32 %v4729_v2  ;;  %v4730_v5 = vmul.f32 -1.442695, %v6469_v3  ;;  %v5393_v2 = vld [vmem:[%s8444_s3 + $0x1fc] ss:$40 sps:$4 sm:$0xff]  }
  0xfa   : > { %v5905_v6 = vpop.eup %5904  ;;  %5916 = vpow2.f32 %v4732_v4  ;;  %v5391_v4 = vld [vmem:[%s8444_s3 + $0x1f8] ss:$40 sps:$4 sm:$0xff]  }
  0xfb   : > { %v5907_v7 = vpop.eup %5906  ;;  %v477_v8 = vadd.f32 1.0, %v5905_v6  ;;  %5918 = vpow2.f32 %v4730_v5  ;;  %v5396_v5 = vld [vmem:[%s8444_s3 + $0x244] ss:$40 sps:$4 sm:$0xff]  }
  0xfc   : > { %v5909_v9 = vpop.eup %5908  ;;  %v475_v10 = vadd.f32 1.0, %v5907_v7  ;;  %v5399_v6 = vld [vmem:[%s8444_s3 + $0x24c] ss:$40 sps:$4 sm:$0xff]   ;;  %v5394_v7 = vld [vmem:[%s8444_s3 + $0x240] ss:$40 sps:$4 sm:$0xff]  }
  0xfd   : > { %v5911_v11 = vpop.eup %5910  ;;  %5920 = vrcp.f32 %v477_v8  ;;  %v478_v12 = vadd.f32 1.0, %v5909_v9  ;;  %v5397_v8 = vld [vmem:[%s8444_s3 + $0x248] ss:$40 sps:$4 sm:$0xff]   ;;  %v5402_v9 = vld [vmem:[%s8444_s3 + $0x24] ss:$40 sps:$4 sm:$0xff]  }
  0xfe   : > { %5922 = vrcp.f32 %v475_v10  ;;  %v476_v13 = vadd.f32 1.0, %v5911_v11  ;;  %v5400_v10 = vld [vmem:[%s8444_s3 + $0x20] ss:$40 sps:$4 sm:$0xff]   ;;  %v5405_v11 = vld [vmem:[%s8444_s3 + $0x74] ss:$40 sps:$4 sm:$0xff]  }
  0xff   : > { %5924 = vrcp.f32 %v478_v12  ;;  %v5403_v12 = vld [vmem:[%s8444_s3 + $0x70] ss:$40 sps:$4 sm:$0xff]  }
 0x100   : > { %5926 = vrcp.f32 %v476_v13  ;;  %v5408_v13 = vld [vmem:[%s8444_s3 + $0xc4] ss:$40 sps:$4 sm:$0xff]  }
 0x102   : > { %v5913_v14 = vpop.eup %5912 }
 0x103   : > { %v5915_v15 = vpop.eup %5914  ;;  %v481_v16 = vadd.f32 1.0, %v5913_v14  ;;  %v5406_v14 = vld [vmem:[%s8444_s3 + $0xc0] ss:$40 sps:$4 sm:$0xff]  }
 0x104   : > { %v5917_v17 = vpop.eup %5916  ;;  %v479_v18 = vadd.f32 1.0, %v5915_v15  ;;  %v5411_v15 = vld [vmem:[%s8444_s3 + $0x114] ss:$40 sps:$4 sm:$0xff]  }
 0x105   : > { %v5919_v19 = vpop.eup %5918  ;;  %5928 = vrcp.f32 %v481_v16  ;;  %v482_v20 = vadd.f32 1.0, %v5917_v17  ;;  %v5409_v16 = vld [vmem:[%s8444_s3 + $0x110] ss:$40 sps:$4 sm:$0xff]   ;;  %v5414_v17 = vld [vmem:[%s8444_s3 + $0x164] ss:$40 sps:$4 sm:$0xff]  }
 0x106   : > { %5930 = vrcp.f32 %v479_v18  ;;  %v480_v21 = vadd.f32 1.0, %v5919_v19  ;;  %v5412_v18 = vld [vmem:[%s8444_s3 + $0x160] ss:$40 sps:$4 sm:$0xff]   ;;  %v5417_v19 = vld [vmem:[%s8444_s3 + $0x1b4] ss:$40 sps:$4 sm:$0xff]  }
 0x107   : > { %v5921_v22 = vpop.eup %5920  ;;  %5932 = vrcp.f32 %v482_v20  ;;  %v5415_v20 = vld [vmem:[%s8444_s3 + $0x1b0] ss:$40 sps:$4 sm:$0xff]  }
 0x108   : > { %v5923_v23 = vpop.eup %5922  ;;  %5934 = vrcp.f32 %v480_v21  ;;  %v501_v26 = vmul.f32 %v5921_v22, %v429_v47  ;;  %v5420_v21 = vld [vmem:[%s8444_s3 + $0x204] ss:$40 sps:$4 sm:$0xff]   ;;  %v5418_v22 = vld [vmem:[%s8444_s3 + $0x200] ss:$40 sps:$4 sm:$0xff]  }
 0x109   : > { %v5925_v24 = vpop.eup %5924  ;;  %v499_v28 = vmul.f32 %v5923_v23, %v421_v49  ;;  %v5423_v23 = vld [vmem:[%s8444_s3 + $0x254] ss:$40 sps:$4 sm:$0xff]  }
 0x10a   : > { %v5927_v25 = vpop.eup %5926  ;;  %v502_v27 = vmul.f32 %v5925_v24, %v432_v52  ;;  %v5421_v24 = vld [vmem:[%s8444_s3 + $0x250] ss:$40 sps:$4 sm:$0xff]  }
 0x10b   : > { %v500_v29 = vmul.f32 %v5927_v25, %v424_v55  ;;  %v5370_v55 = vld [vmem:[%s8444_s3 + $0x100] ss:$40 sps:$4 sm:$0xff]   ;;  %v8449_v25 = vlaneseq }
 0x10c   : > { %v6473_v30 = vpack.c.bf16 %v502_v27, %v501_v26 }
 0x10d   : > { %v6481_v33 = vpack.c.bf16 %v500_v29, %v499_v28  ;;  %v6662_v26 = vshrl.u32 %v8449_v25, 7  ;;  %v6673_v29 = vld [vmem:[%s8445_s4] sm:$0xff] }
 0x10f   : > { %v5929_v36 = vpop.eup %5928  ;;  %1078 = vmatmul.mubr.bf16.vlgmr.msra.gmra.mrb[0].mxu1 %v6481_v33  ;;  %1151 = vmatmul.mubr.bf16.vlgmr.msra.gmra.mrb[8].mxu0 %v6481_v33  ;;  %8472 = vst [vmem:[#allocation3_spill] sm:$0xff] %v6662_v26  ;;  %v6665_v27 = vsub.s32 0, %v6662_v26  ;;  %v6668_v28 = vsub.s32 2, %v6662_v26 }
 0x110   : > { %v5931_v37 = vpop.eup %5930  ;;  %1192 = vmatpush1.bf16.msra.mxu1 %v5352_v31  ;;  %1265 = vmatpush1.bf16.msra.mxu0 %v5355_v32  ;;  %v505_v45 = vmul.f32 %v5929_v36, %v6461_v59  ;;  %v5376_v59 = vld [vmem:[%s8444_s3 + $0x150] ss:$40 sps:$4 sm:$0xff]  }
 0x111   : > { %v5933_v40 = vpop.eup %5932  ;;  %1193 = vmatprep.subr.bf16.mxu1 %v5360_v34  ;;  %1266 = vmatprep.subr.bf16.mxu0 %v5363_v35  ;;  %v503_v47 = vmul.f32 %v5931_v37, %v6463_v61  ;;  %v5384_v61 = vld [vmem:[%s8444_s3 + $0x1a4] ss:$40 sps:$4 sm:$0xff]   ;;  %8473 = vst [vmem:[#allocation4_spill] sm:$0xff] %v6665_v27  ;;  %8474 = vst [vmem:[#allocation5_spill] sm:$0xff] %v6668_v28  ;;  %v6683_v31 = vrot.slane %v6673_v29, %v6665_v27  ;;  %v5424_v37 = vld [vmem:[%s8446_s5] ss:$16 sps:$4 sm:$0xff]  }
 0x112   : > { %v5935_v43 = vpop.eup %5934  ;;  %v506_v46 = vmul.f32 %v5933_v40, %v6466_v0  ;;  %1087 = vmatprep.mubr.bf16.mxu1 %v6281_v44  ;;  %1160 = vmatprep.mubr.bf16.mxu0 %v6281_v44  ;;  %v5385_v0 = vld [vmem:[%s8444_s3 + $0x1a8] ss:$40 sps:$4 sm:$0xff]   ;;  %v6687_v32 = vrot.slane %v6673_v29, %v6668_v28  ;;  %v5429_v34 = vld [vmem:[%s8446_s5 + $0xc] ss:$16 sps:$4 sm:$0xff]  }
 0x113   : > { %v504_v48 = vmul.f32 %v5935_v43, %v6469_v3  ;;  %v5388_v3 = vld [vmem:[%s8444_s3 + $0x1f0] ss:$40 sps:$4 sm:$0xff]  }
 0x114   : > { %v6509_v49 = vpack.c.bf16 %v506_v46, %v505_v45  ;;  %1194 = vmatpush1.bf16.msra.mxu1 %v5358_v38  ;;  %1267 = vmatpush1.bf16.msra.mxu0 %v5361_v39  ;;  %v5427_v38 = vld [vmem:[%s8446_s5 + $0x8] ss:$16 sps:$4 sm:$0xff]   ;;  %v5432_v46 = vld [vmem:[%s8446_s5 + $0x24] ss:$16 sps:$4 sm:$0xff]  }
 0x115   : > { %v6517_v52 = vpack.c.bf16 %v504_v48, %v503_v47  ;;  %1195 = vmatprep.subr.bf16.mxu1 %v5366_v41  ;;  %1268 = vmatprep.subr.bf16.mxu0 %v5369_v42  ;;  %v5435_v47 = vld [vmem:[%s8446_s5 + $0x2c] ss:$16 sps:$4 sm:$0xff]  }
 0x117   : > { %1088 = vmatmul.mubr.bf16.gmra.mrb[4].mxu1 %v6473_v30  ;;  %1161 = vmatmul.mubr.bf16.gmra.mrb[12].mxu0 %v6473_v30 }
 0x118   : > { %1196 = vmatpush1.bf16.msra.mxu1 %v5364_v50  ;;  %1269 = vmatpush1.bf16.msra.mxu0 %v5367_v51 }
 0x119   : > { %1197 = vmatprep.subr.bf16.mxu1 %v5372_v53  ;;  %1270 = vmatprep.subr.bf16.mxu0 %v5375_v54  ;;  %v5433_v53 = vld [vmem:[%s8446_s5 + $0x28] ss:$16 sps:$4 sm:$0xff]  }
 0x11a   : > { %1097 = vmatprep.mubr.bf16.mxu1 %v6281_v44  ;;  %1170 = vmatprep.mubr.bf16.mxu0 %v6281_v44 }
 0x11c   : > { %1198 = vmatpush1.bf16.msra.mxu1 %v5370_v55  ;;  %1271 = vmatpush1.bf16.msra.mxu0 %v5373_v56 }
 0x11d   : > { %1199 = vmatprep.subr.bf16.mxu1 %v5378_v57  ;;  %1272 = vmatprep.subr.bf16.mxu0 %v5381_v58 }
 0x11f   : > { %1098 = vmatmul.mubr.bf16.gmra.mrb[8].mxu1 %v6517_v52  ;;  %1171 = vmatmul.mubr.bf16.gmra.mrb[16].mxu0 %v6517_v52 }
 0x120   : > { %1200 = vmatpush1.bf16.msra.mxu1 %v5376_v59  ;;  %1273 = vmatpush1.bf16.msra.mxu0 %v5379_v60 }
 0x121   : > { %1201 = vmatprep.subr.bf16.mxu1 %v5384_v61  ;;  %1274 = vmatprep.subr.bf16.mxu0 %v5387_v62 }
 0x122   : > { %1107 = vmatprep.mubr.bf16.mxu1 %v6281_v44  ;;  %1180 = vmatprep.mubr.bf16.mxu0 %v6281_v44 }
 0x124   : > { %1202 = vmatpush1.bf16.msra.mxu1 %v5382_v63  ;;  %1275 = vmatpush1.bf16.msra.mxu0 %v5385_v0 }
 0x125   : > { %1203 = vmatprep.subr.bf16.mxu1 %v5390_v1  ;;  %1276 = vmatprep.subr.bf16.mxu0 %v5393_v2  ;;  %v5438_v1 = vld [vmem:[%s8446_s5 + $0x44] ss:$16 sps:$4 sm:$0xff]  }
 0x127   : > { %1108 = vmatmul.mubr.bf16.gmra.mrb[12].mxu1 %v6509_v49  ;;  %1181 = vmatmul.mubr.bf16.gmra.mrb[20].mxu0 %v6509_v49 }
 0x128   : > { %1204 = vmatpush1.bf16.msra.mxu1 %v5388_v3  ;;  %1277 = vmatpush1.bf16.msra.mxu0 %v5391_v4  ;;  %v5436_v3 = vld [vmem:[%s8446_s5 + $0x40] ss:$16 sps:$4 sm:$0xff]  }
 0x129   : > { %1205 = vmatprep.subr.bf16.mxu1 %v5396_v5  ;;  %1278 = vmatprep.subr.bf16.mxu0 %v5399_v6  ;;  %v5439_v5 = vld [vmem:[%s8446_s5 + $0x48] ss:$16 sps:$4 sm:$0xff]   ;;  %v5441_v6 = vld [vmem:[%s8446_s5 + $0x4c] ss:$16 sps:$4 sm:$0xff]  }
 0x12a   : > { %1223 = vmatprep.mubr.bf16.mxu1 %v6281_v44  ;;  %1296 = vmatprep.mubr.bf16.mxu0 %v6281_v44 }
 0x12c   : > { %1206 = vmatpush1.bf16.msra.mxu1 %v5394_v7  ;;  %1279 = vmatpush1.bf16.msra.mxu0 %v5397_v8 }
 0x12d   : > { %1337 = vmatprep.subr.bf16.mxu1 %v5402_v9 }
 0x12f   : > { %1224 = vmatmul.mubr.bf16.vlgmr.msra.gmra.mrb[16].mxu1 %v6481_v33  ;;  %1297 = vmatmul.mubr.bf16.vlgmr.msra.gmra.mrb[24].mxu0 %v6481_v33 }
 0x130   : > { %1338 = vmatpush1.bf16.msra.mxu1 %v5400_v10  ;;  %1233 = vmatprep.mubr.bf16.mxu1 %v6281_v44 }
 0x131   : > { %1339 = vmatprep.subr.bf16.mxu1 %v5405_v11  ;;  %1306 = vmatprep.mubr.bf16.mxu0 %v6281_v44 }
 0x134   : > { %1340 = vmatpush1.bf16.msra.mxu1 %v5403_v12 }
 0x135   : > { %1341 = vmatprep.subr.bf16.mxu1 %v5408_v13 }
 0x137   : > { %1234 = vmatmul.mubr.bf16.gmra.mrb[20].mxu1 %v6473_v30  ;;  %1307 = vmatmul.mubr.bf16.gmra.mrb[28].mxu0 %v6473_v30 }
 0x138   : > { %1342 = vmatpush1.bf16.msra.mxu1 %v5406_v14  ;;  %1243 = vmatprep.mubr.bf16.mxu1 %v6281_v44  ;;  %v5444_v14 = vld [vmem:[%s8446_s5 + $0x64] ss:$16 sps:$4 sm:$0xff]  }
 0x139   : > { %1343 = vmatprep.subr.bf16.mxu1 %v5411_v15  ;;  %1316 = vmatprep.mubr.bf16.mxu0 %v6281_v44  ;;  %v5447_v15 = vld [vmem:[%s8446_s5 + $0x6c] ss:$16 sps:$4 sm:$0xff]  }
 0x13c   : > { %1344 = vmatpush1.bf16.msra.mxu1 %v5409_v16 }
 0x13d   : > { %1345 = vmatprep.subr.bf16.mxu1 %v5414_v17 }
 0x13f   : > { %1244 = vmatmul.mubr.bf16.gmra.mrb[24].mxu1 %v6517_v52  ;;  %1317 = vmatmul.mubr.bf16.gmra.mrb[32].mxu0 %v6517_v52 }
 0x140   : > { %1346 = vmatpush1.bf16.msra.mxu1 %v5412_v18  ;;  %1253 = vmatprep.mubr.bf16.mxu1 %v6281_v44 }
 0x141   : > { %1347 = vmatprep.subr.bf16.mxu1 %v5417_v19  ;;  %1326 = vmatprep.mubr.bf16.mxu0 %v6281_v44 }
 0x144   : > { %1348 = vmatpush1.bf16.msra.mxu1 %v5415_v20  ;;  %v5442_v20 = vld [vmem:[%s8446_s5 + $0x60] ss:$16 sps:$4 sm:$0xff]  }
 0x145   : > { %1349 = vmatprep.subr.bf16.mxu1 %v5420_v21  ;;  %v5445_v21 = vld [vmem:[%s8446_s5 + $0x68] ss:$16 sps:$4 sm:$0xff]  }
 0x147   : > { %1254 = vmatmul.mubr.bf16.gmra.mrb[28].mxu1 %v6509_v49  ;;  %1327 = vmatmul.mubr.bf16.gmra.mrb[36].mxu0 %v6509_v49 }
 0x148   : > { %1350 = vmatpush1.bf16.msra.mxu1 %v5418_v22  ;;  %1369 = vmatprep.mubr.bf16.mxu1 %v6281_v44 }
 0x149   : > { %1351 = vmatprep.subr.bf16.mxu1 %v5423_v23 }
 0x14c   : > { %1352 = vmatpush1.bf16.msra.mxu1 %v5421_v24 }
 0x14d   : > { %4402 = vmatprep.subr.bf16.mxu1 %v5429_v34 }
 0x14f   : > { %1370 = vmatmul.mubr.bf16.vlgmr.msra.gmra.mrb[32].mxu1 %v6481_v33  ;;  %v5426_v33 = vld [vmem:[%s8446_s5 + $0x4] ss:$16 sps:$4 sm:$0xff]  }
 0x150   : > { %1379 = vmatprep.mubr.bf16.mxu1 %v6281_v44  ;;  %4197 = vmatprep.subr.bf16.mxu0 %v5426_v33 }
 0x151   : > { %4198 = vmatpush1.bf16.msra.mxu0 %v5424_v37  ;;  %4403 = vmatpush1.bf16.msra.mxu1 %v5427_v38 }
 0x152   : > { %4199 = vmatprep.subr.bf16.mxu0 %v5432_v46  ;;  %4404 = vmatprep.subr.bf16.mxu1 %v5435_v47  ;;  %v5451_v46 = vld [vmem:[%s8446_s5 + $0x88] ss:$16 sps:$4 sm:$0xff]  }
 0x155   : > { %4405 = vmatpush1.bf16.msra.mxu1 %v5433_v53 }
 0x156   : > { %4406 = vmatprep.subr.bf16.mxu1 %v5441_v6 }
 0x157   : > { %1380 = vmatmul.mubr.bf16.gmra.mrb[36].mxu1 %v6473_v30  ;;  %v6676_v30 = vsub.s32 1, %v6662_v26 }
 0x158   : > { %1389 = vmatprep.mubr.bf16.mxu1 %v6281_v44 }
 0x159   : > { %8475 = vst [vmem:[#allocation6_spill] sm:$0xff] %v6676_v30  ;;  %v6697_v35 = vrot.slane %v6673_v29, %v6676_v30  ;;  %4407 = vmatpush1.bf16.msra.mxu1 %v5439_v5 }
 0x15a   : > { %4408 = vmatprep.subr.bf16.mxu1 %v5447_v15 }
 0x15d   : > { %4409 = vmatpush1.bf16.msra.mxu1 %v5445_v21 }
 0x15f   : > { %1390 = vmatmul.mubr.bf16.gmra.mrb[40].mxu1 %v6517_v52  ;;  %v5430_v52 = vld [vmem:[%s8446_s5 + $0x20] ss:$16 sps:$4 sm:$0xff]  }
 0x160   : > { %1399 = vmatprep.mubr.bf16.mxu1 %v6281_v44  ;;  %v6679_v44 = vsub.s32 3, %v6662_v26  ;;  %4200 = vmatpush1.bf16.msra.mxu0 %v5430_v52 }
 0x161   : > { %4201 = vmatprep.subr.bf16.mxu0 %v5438_v1 }
 0x162   : > { %8476 = vst [vmem:[#allocation7_spill] sm:$0xff] %v6679_v44  ;;  %v6701_v36 = vrot.slane %v6673_v29, %v6679_v44 }
 0x164   : > { %4202 = vmatpush1.bf16.msra.mxu0 %v5436_v3 }
 0x165   : > { %4203 = vmatprep.subr.bf16.mxu0 %v5444_v14 }
 0x167   : > { %1400 = vmatmul.mubr.bf16.gmra.mrb[44].mxu1 %v6509_v49 }
 0x168   : > { %4204 = vmatpush1.bf16.msra.mxu0 %v5442_v20 }
 0x1e2   : > { %v1079_v39 = vpop.f32.mrb[0].mxu1  ;;  %v1152_v40 = vpop.f32.mrb[8].mxu0 }
 0x1e3   : > { %v6710_v41 = vadd.f32 %v1079_v39, %v6683_v31  ;;  %v6713_v42 = vadd.f32 %v1152_v40, %v6687_v32  ;;  %v1081_v43 = vpop.f32.mrb[1].mxu1  ;;  %v1154_v45 = vpop.f32.mrb[9].mxu0  ;;  %v5450_v40 = vld [vmem:[%s8446_s5 + $0x84] ss:$16 sps:$4 sm:$0xff]  }
 0x1e4   : > { %v6722_v48 = vadd.f32 %v1081_v43, %v6697_v35  ;;  %v6725_v49 = vadd.f32 %v1154_v45, %v6701_v36  ;;  %v1083_v50 = vpop.f32.mrb[2].mxu1  ;;  %v1156_v51 = vpop.f32.mrb[10].mxu0  ;;  %v5453_v43 = vld [vmem:[%s8446_s5 + $0x8c] ss:$16 sps:$4 sm:$0xff]   ;;  %v5448_v45 = vld [vmem:[%s8446_s5 + $0x80] ss:$16 sps:$4 sm:$0xff]   ;;  %4205 = vmatprep.subr.bf16.mxu0 %v5450_v40 }
 0x1e5   : > { %v4813_v54 = vmul.f32 -1.442695, %v6710_v41  ;;  %v4815_v55 = vmul.f32 -1.442695, %v6713_v42  ;;  %v6736_v56 = vadd.f32 %v1083_v50, %v6683_v31  ;;  %v6739_v57 = vadd.f32 %v1156_v51, %v6687_v32  ;;  %v1085_v58 = vpop.f32.mrb[3].mxu1  ;;  %v1158_v59 = vpop.f32.mrb[11].mxu0  ;;  %4410 = vmatprep.subr.bf16.mxu1 %v5453_v43  ;;  %4206 = vmatpush1.bf16.msra.mxu0 %v5448_v45 }
 0x1e6   : > { %v4814_v60 = vmul.f32 -1.442695, %v6722_v48  ;;  %v4816_v61 = vmul.f32 -1.442695, %v6725_v49  ;;  %v6744_v62 = vadd.f32 %v1085_v58, %v6697_v35  ;;  %v6747_v63 = vadd.f32 %v1158_v59, %v6701_v36  ;;  %4411 = vmatpush1.bf16.msra.mxu1 %v5451_v46 }
 0x1e7   : > { %5936 = vpow2.f32 %v4813_v54  ;;  %v4823_v0 = vmul.f32 -1.442695, %v6736_v56  ;;  %v4825_v2 = vmul.f32 -1.442695, %v6739_v57 }
 0x1e8   : > { %5938 = vpow2.f32 %v4815_v55  ;;  %v4824_v4 = vmul.f32 -1.442695, %v6744_v62  ;;  %v4826_v7 = vmul.f32 -1.442695, %v6747_v63 }
 0x1e9   : > { %5940 = vpow2.f32 %v4814_v60 }
 0x1ea   : > { %5942 = vpow2.f32 %v4816_v61  ;;  %v1089_v8 = vpop.f32.mrb[4].mxu1  ;;  %v1162_v9 = vpop.f32.mrb[12].mxu0 }
 0x1eb   : > { %5944 = vpow2.f32 %v4823_v0  ;;  %v6766_v10 = vadd.f32 %v1089_v8, %v6683_v31  ;;  %v6769_v11 = vadd.f32 %v1162_v9, %v6687_v32  ;;  %v1091_v12 = vpop.f32.mrb[5].mxu1  ;;  %v1164_v13 = vpop.f32.mrb[13].mxu0 }
 0x1ec   : > { %5946 = vpow2.f32 %v4825_v2  ;;  %v6778_v16 = vadd.f32 %v1091_v12, %v6697_v35  ;;  %v6781_v17 = vadd.f32 %v1164_v13, %v6701_v36  ;;  %v1093_v18 = vpop.f32.mrb[6].mxu1  ;;  %v1166_v19 = vpop.f32.mrb[14].mxu0  ;;  %v5456_v2 = vld [vmem:[%s8446_s5 + $0xa4] ss:$16 sps:$4 sm:$0xff]  }
 0x1ed   : > { %5948 = vpow2.f32 %v4824_v4  ;;  %v4833_v22 = vmul.f32 -1.442695, %v6766_v10  ;;  %v4835_v23 = vmul.f32 -1.442695, %v6769_v11  ;;  %v6792_v24 = vadd.f32 %v1093_v18, %v6683_v31  ;;  %v1095_v33 = vpop.f32.mrb[7].mxu1  ;;  %v1168_v34 = vpop.f32.mrb[15].mxu0  ;;  %4207 = vmatprep.subr.bf16.mxu0 %v5456_v2 }
 0x1ee   : > { %5950 = vpow2.f32 %v4826_v7  ;;  %v4834_v37 = vmul.f32 -1.442695, %v6778_v16  ;;  %v4836_v38 = vmul.f32 -1.442695, %v6781_v17  ;;  %v6813_v5 = vadd.f32 %v1166_v19, %v6687_v32  ;;  %v5454_v18 = vld [vmem:[%s8446_s5 + $0xa0] ss:$16 sps:$4 sm:$0xff]  }
 0x1ef   : > { %5952 = vpow2.f32 %v4833_v22  ;;  %v4843_v39 = vmul.f32 -1.442695, %v6792_v24  ;;  %v6816_v6 = vadd.f32 %v1095_v33, %v6697_v35  ;;  %v6819_v12 = vadd.f32 %v1168_v34, %v6701_v36  ;;  %v5457_v19 = vld [vmem:[%s8446_s5 + $0xa8] ss:$16 sps:$4 sm:$0xff]   ;;  %v5462_v33 = vld [vmem:[%s8446_s5 + $0xc4] ss:$16 sps:$4 sm:$0xff]   ;;  %4208 = vmatpush1.bf16.msra.mxu0 %v5454_v18 }
 0x1f0   : > { %5954 = vpow2.f32 %v4835_v23  ;;  %v5459_v23 = vld [vmem:[%s8446_s5 + $0xac] ss:$16 sps:$4 sm:$0xff]   ;;  %4209 = vmatprep.subr.bf16.mxu0 %v5462_v33 }
 0x1f1   : > { %v5937_v47 = vpop.eup %5936  ;;  %5956 = vpow2.f32 %v4834_v37  ;;  %v6841_v45 = vmul.f32 -1.442695, %v6819_v12  ;;  %4412 = vmatprep.subr.bf16.mxu1 %v5459_v23 }
 0x1f2   : > { %v5939_v50 = vpop.eup %5938  ;;  %v1650_v51 = vadd.f32 1.0, %v5937_v47  ;;  %5958 = vpow2.f32 %v4836_v38  ;;  %v1099_v52 = vpop.f32.mrb[8].mxu1  ;;  %v4845_v38 = vmul.f32 -1.442695, %v6813_v5  ;;  %4413 = vmatpush1.bf16.msra.mxu1 %v5457_v19 }
 0x1f3   : > { %v1172_v53 = vpop.f32.mrb[16].mxu0  ;;  %v5941_v54 = vpop.eup %5940  ;;  %v1652_v55 = vadd.f32 1.0, %v5939_v50  ;;  %5960 = vpow2.f32 %v4843_v39  ;;  %v6830_v22 = vadd.f32 %v1099_v52, %v6683_v31  ;;  %v4844_v39 = vmul.f32 -1.442695, %v6816_v6 }
 0x1f4   : > { %v1101_v58 = vpop.f32.mrb[9].mxu1  ;;  %v1174_v59 = vpop.f32.mrb[17].mxu0  ;;  %5962 = vrcp.f32 %v1650_v51  ;;  %v1651_v61 = vadd.f32 1.0, %v5941_v54  ;;  %v6844_v46 = vadd.f32 %v1172_v53, %v6687_v32  ;;  %v5460_v53 = vld [vmem:[%s8446_s5 + $0xc0] ss:$16 sps:$4 sm:$0xff]  }
 0x1f5   : > { %v5943_v60 = vpop.eup %5942  ;;  %v1103_v0 = vpop.f32.mrb[10].mxu1  ;;  %5964 = vrcp.f32 %v1652_v55  ;;  %v6849_v52 = vadd.f32 %v1101_v58, %v6697_v35  ;;  %4210 = vmatpush1.bf16.msra.mxu0 %v5460_v53  ;;  %v5471_v53 = vld [vmem:[%s8446_s5 + $0xec] ss:$16 sps:$4 sm:$0xff]  }
 0x1f6   : > { %v1176_v1 = vpop.f32.mrb[18].mxu0  ;;  %v5945_v3 = vpop.eup %5944  ;;  %v1653_v4 = vadd.f32 1.0, %v5943_v60  ;;  %5966 = vrcp.f32 %v1651_v61  ;;  %v4855_v23 = vmul.f32 -1.442695, %v6844_v46 }
 0x1f7   : > { %v1105_v7 = vpop.f32.mrb[11].mxu1  ;;  %v5947_v8 = vpop.eup %5946  ;;  %v1660_v9 = vadd.f32 1.0, %v5945_v3  ;;  %v4853_v3 = vmul.f32 -1.442695, %v6830_v22  ;;  %v6871_v18 = vadd.f32 %v1176_v1, %v6687_v32 }
 0x1f8   : > { %v6821_v13 = vpop.f32.mrb[19].mxu0  ;;  %v5949_v14 = vpop.eup %5948  ;;  %5968 = vrcp.f32 %v1653_v4  ;;  %v1662_v15 = vadd.f32 1.0, %v5947_v8  ;;  %v6861_v4 = vadd.f32 %v1174_v59, %v6701_v36  ;;  %v6879_v33 = vadd.f32 %v1105_v7, %v6697_v35 }
 0x1f9   : > { %v5951_v20 = vpop.eup %5950  ;;  %5970 = vrcp.f32 %v1660_v9  ;;  %v1661_v21 = vadd.f32 1.0, %v5949_v14  ;;  %8478 = vst [vmem:[#allocation9_spill] sm:$0xff] %v6871_v18  ;;  %v6912_v60 = vadd.f32 %v6821_v13, %v6701_v36 }
 0x1fa   : > { %v5953_v34 = vpop.eup %5952  ;;  %5972 = vrcp.f32 %v1662_v15  ;;  %v1663_v37 = vadd.f32 1.0, %v5951_v20  ;;  %v6846_v47 = vpop.f32.mrb[12].mxu1  ;;  %v6868_v15 = vadd.f32 %v1103_v0, %v6683_v31  ;;  %8479 = vst [vmem:[#allocation10_spill] sm:$0xff] %v6879_v33  ;;  %v5463_v0 = vld [vmem:[%s8446_s5 + $0xc8] ss:$16 sps:$4 sm:$0xff]  }
 0x1fb   : > { %v5955_v40 = vpop.eup %5954  ;;  %5974 = vrcp.f32 %v1661_v21  ;;  %v1670_v43 = vadd.f32 1.0, %v5953_v34  ;;  %v6851_v54 = vpop.f32.mrb[20].mxu0  ;;  %v6908_v25 = vmul.f32 -1.442695, %v6879_v33  ;;  %v6926_v13 = vadd.f32 %v6846_v47, %v6683_v31 }
 0x1fc   : > { %v5957_v50 = vpop.eup %5956  ;;  %5976 = vrcp.f32 %v1663_v37  ;;  %v1672_v51 = vadd.f32 1.0, %v5955_v40  ;;  %v6853_v55 = vpop.f32.mrb[13].mxu1  ;;  %8477 = vst [vmem:[#allocation8_spill] sm:$0xff] %v6868_v15  ;;  %v4854_v37 = vmul.f32 -1.442695, %v6849_v52 }
 0x1fd   : > { %v5959_v61 = vpop.eup %5958  ;;  %5978 = vrcp.f32 %v1670_v43  ;;  %v1671_v2 = vadd.f32 1.0, %v5957_v50  ;;  %v6863_v58 = vpop.f32.mrb[21].mxu0  ;;  %v5465_v40 = vld [vmem:[%s8446_s5 + $0xcc] ss:$16 sps:$4 sm:$0xff]   ;;  %v5466_v43 = vld [vmem:[%s8446_s5 + $0xe0] ss:$16 sps:$4 sm:$0xff]  }
 0x1fe   : > { %v6865_v8 = vpop.f32.mrb[14].mxu1  ;;  %v5961_v9 = vpop.eup %5960  ;;  %5980 = vrcp.f32 %v1672_v51  ;;  %v1673_v14 = vadd.f32 1.0, %v5959_v61  ;;  %v4856_v50 = vmul.f32 -1.442695, %v6861_v4  ;;  %v5468_v51 = vld [vmem:[%s8446_s5 + $0xe4] ss:$16 sps:$4 sm:$0xff]   ;;  %4414 = vmatprep.subr.bf16.mxu1 %v5465_v40 }
 0x1ff   : > { %v6873_v19 = vpop.f32.mrb[22].mxu0  ;;  %v6875_v20 = vpop.f32.mrb[15].mxu1  ;;  %5982 = vrcp.f32 %v1671_v2  ;;  %v1680_v21 = vadd.f32 1.0, %v5961_v9  ;;  %v4863_v2 = vmul.f32 -1.442695, %v6868_v15  ;;  %4415 = vmatpush1.bf16.msra.mxu1 %v5463_v0  ;;  %4211 = vmatprep.subr.bf16.mxu0 %v5468_v51 }
 0x200   : > { %v5963_v59 = vpop.eup %5962  ;;  %v6881_v34 = vpop.f32.mrb[23].mxu0  ;;  %5984 = vrcp.f32 %v1673_v14  ;;  %v6902_v9 = vmul.f32 -1.442695, %v6871_v18  ;;  %v5474_v14 = vld [vmem:[%s8446_s5 + $0x104] ss:$16 sps:$4 sm:$0xff]   ;;  %4416 = vmatprep.subr.bf16.mxu1 %v5471_v53  ;;  %4212 = vmatpush1.bf16.msra.mxu0 %v5466_v43 }
 0x201   : > { %v5965_v1 = vpop.eup %5964  ;;  %5986 = vrcp.f32 %v1680_v21  ;;  %v5469_v40 = vld [vmem:[%s8446_s5 + $0xe8] ss:$16 sps:$4 sm:$0xff]   ;;  %v5472_v0 = vld [vmem:[%s8446_s5 + $0x100] ss:$16 sps:$4 sm:$0xff]   ;;  %4213 = vmatprep.subr.bf16.mxu0 %v5474_v14  ;;  %v5477_v43 = vld [vmem:[%s8446_s5 + $0x10c] ss:$16 sps:$4 sm:$0xff]  }
 0x202   : > { %v5967_v7 = vpop.eup %5966  ;;  %5988 = vpow2.f32 %v4845_v38  ;;  %v6914_v38 = vpop.f32.mrb[16].mxu1 }
 0x203   : > { %v5969_v61 = vpop.eup %5968  ;;  %5990 = vpow2.f32 %v4844_v39  ;;  %v6916_v28 = vpop.f32.mrb[24].mxu0  ;;  %v1890_v39 = vmul.f32 %v5963_v59, %v6710_v41  ;;  %v1892_v41 = vmul.f32 %v5965_v1, %v6713_v42  ;;  %v5480_v42 = vld [vmem:[%s8446_s5 + $0x124] ss:$16 sps:$4 sm:$0xff]   ;;  %4417 = vmatpush1.bf16.msra.mxu1 %v5469_v40 }
 0x204   : > { %v5971_v21 = vpop.eup %5970  ;;  %5992 = vpow2.f32 %v6841_v45  ;;  %v6928_v27 = vpop.f32.mrb[17].mxu1  ;;  %v6939_v45 = vadd.f32 %v6851_v54, %v6687_v32  ;;  %4418 = vmatprep.subr.bf16.mxu1 %v5477_v43  ;;  %4214 = vmatpush1.bf16.msra.mxu0 %v5472_v0 }
 0x205   : > { %v5973_v44 = vpop.eup %5972  ;;  %v1900_v30 = vmul.f32 %v5971_v21, %v6736_v56  ;;  %v6930_v33 = vpop.f32.mrb[25].mxu0  ;;  %5994 = vpow2.f32 %v4853_v3  ;;  %v1893_v21 = vmul.f32 %v5969_v61, %v6725_v49  ;;  %v5478_v49 = vld [vmem:[%s8446_s5 + $0x120] ss:$16 sps:$4 sm:$0xff]   ;;  %4215 = vmatprep.subr.bf16.mxu0 %v5480_v42 }
 0x206   : > { %v5975_v51 = vpop.eup %5974  ;;  %v1902_v56 = vmul.f32 %v5973_v44, %v6739_v57  ;;  %v6941_v47 = vpop.f32.mrb[18].mxu1  ;;  %v1891_v44 = vmul.f32 %v5967_v7, %v6722_v48  ;;  %5996 = vpow2.f32 %v4855_v23  ;;  %v5475_v48 = vld [vmem:[%s8446_s5 + $0x108] ss:$16 sps:$4 sm:$0xff]   ;;  %v4866_v23 = vmul.f32 -1.442695, %v6912_v60 }
 0x207   : > { %v6943_v59 = vpop.f32.mrb[26].mxu0  ;;  %v5977_v1 = vpop.eup %5976  ;;  %v1972_v57 = vadd.f32 %v1900_v30, %v1890_v39  ;;  %v1901_v54 = vmul.f32 %v5975_v51, %v6744_v62  ;;  %5998 = vpow2.f32 %v4854_v37  ;;  %4419 = vmatpush1.bf16.msra.mxu1 %v5475_v48 }
 0x208   : > { %v6953_v3 = vpop.f32.mrb[19].mxu1  ;;  %v6955_v53 = vpop.f32.mrb[27].mxu0  ;;  %v1998_v18 = vadd.f32 %v1902_v56, %v1892_v41  ;;  %v1903_v15 = vmul.f32 %v5977_v1, %v6747_v63  ;;  %6000 = vpow2.f32 %v4856_v50  ;;  %v5483_v63 = vld [vmem:[%s8446_s5 + $0x12c] ss:$16 sps:$4 sm:$0xff]   ;;  %v5486_v50 = vld [vmem:[%s8446_s5 + $0x144] ss:$16 sps:$4 sm:$0xff]   ;;  %4216 = vmatpush1.bf16.msra.mxu0 %v5478_v49 }
 0x209   : > { %v5979_v14 = vpop.eup %5978  ;;  %v1985_v7 = vadd.f32 %v1901_v54, %v1891_v44  ;;  %6002 = vpow2.f32 %v4863_v2  ;;  %v4875_v41 = vmul.f32 -1.442695, %v6939_v45  ;;  %v8462_v2 = vsub.s32 6, %v6662_v26  ;;  %4420 = vmatprep.subr.bf16.mxu1 %v5483_v63  ;;  %v5484_v44 = vld [vmem:[%s8446_s5 + $0x140] ss:$16 sps:$4 sm:$0xff]   ;;  %4217 = vmatprep.subr.bf16.mxu0 %v5486_v50 }
 0x20a   : > { %v5981_v30 = vpop.eup %5980  ;;  %v1910_v62 = vmul.f32 %v5979_v14, %v6766_v10  ;;  %v2011_v61 = vadd.f32 %v1903_v15, %v1893_v21  ;;  %v4873_v10 = vmul.f32 -1.442695, %v6926_v13  ;;  %6004 = vpow2.f32 %v6902_v9  ;;  %v6983_v43 = vpop.f32.mrb[20].mxu1  ;;  %v5487_v50 = vld [vmem:[%s8446_s5 + $0x148] ss:$16 sps:$4 sm:$0xff]  }
 0x20b   : > { %v5983_v37 = vpop.eup %5982  ;;  %v1912_v40 = vmul.f32 %v5981_v30, %v6769_v11  ;;  %6006 = vpow2.f32 %v6908_v25  ;;  %v6985_v42 = vpop.f32.mrb[28].mxu0  ;;  %v7020_v63 = vadd.f32 %v6863_v58, %v6701_v36  ;;  %v8480_v58 = vsub.s32 4, %v6662_v26 }
 0x20c   : > { %v5985_v39 = vpop.eup %5984  ;;  %v1973_v0 = vadd.f32 %v1972_v57, %v1910_v62  ;;  %v1911_v51 = vmul.f32 %v5983_v37, %v6778_v16  ;;  %v5481_v16 = vld [vmem:[%s8446_s5 + $0x128] ss:$16 sps:$4 sm:$0xff]   ;;  %6008 = vpow2.f32 %v4866_v23  ;;  %v6995_v25 = vpop.f32.mrb[29].mxu0  ;;  %v5489_v57 = vld [vmem:[%s8446_s5 + $0x14c] ss:$16 sps:$4 sm:$0xff]   ;;  %4218 = vmatpush1.bf16.msra.mxu0 %v5484_v44 }
 0x20d   : > { %v5987_v56 = vpop.eup %5986  ;;  %v6978_v15 = vadd.f32 %v1998_v18, %v1912_v40  ;;  %v1913_v11 = vmul.f32 %v5985_v39, %v6781_v17  ;;  %v6993_v17 = vpop.f32.mrb[21].mxu1  ;;  %6010 = vpow2.f32 %v4873_v10  ;;  %v8463_v10 = vsub.s32 5, %v6662_v26  ;;  %4421 = vmatpush1.bf16.msra.mxu1 %v5481_v16  ;;  %v5498_v44 = vld [vmem:[%s8446_s5 + $0x184] ss:$16 sps:$4 sm:$0xff]  }
 0x20e   : > { %v5989_v9 = vpop.eup %5988  ;;  %v6990_v1 = vadd.f32 %v1985_v7, %v1911_v51  ;;  %v1920_v18 = vmul.f32 %v5987_v56, %v6792_v24  ;;  %v7007_v24 = vadd.f32 %v6853_v55, %v6697_v35  ;;  %v7009_v48 = vpop.f32.mrb[22].mxu1  ;;  %v5492_v7 = vld [vmem:[%s8446_s5 + $0x164] ss:$16 sps:$4 sm:$0xff]   ;;  %6012 = vpow2.f32 %v4875_v41  ;;  %4422 = vmatprep.subr.bf16.mxu1 %v5489_v57  ;;  %v5490_v56 = vld [vmem:[%s8446_s5 + $0x160] ss:$16 sps:$4 sm:$0xff]  }
 0x20f   : > { %v5991_v54 = vpop.eup %5990  ;;  %v7003_v14 = vadd.f32 %v2011_v61, %v1913_v11  ;;  %v1682_v21 = vadd.f32 1.0, %v5989_v9  ;;  %v7011_v30 = vpop.f32.mrb[30].mxu0  ;;  %v7033_v51 = vrot.slane %v6673_v29, %v8480_v58  ;;  %v7038_v41 = vrot.slane %v6673_v29, %v8462_v2  ;;  %v5495_v11 = vld [vmem:[%s8446_s5 + $0x16c] ss:$16 sps:$4 sm:$0xff]   ;;  %4219 = vmatprep.subr.bf16.mxu0 %v5492_v7 }
 0x210   : > { %v5993_v62 = vpop.eup %5992  ;;  %v7016_v23 = vadd.f32 %v1973_v0, %v1920_v18  ;;  %v1681_v49 = vadd.f32 1.0, %v5991_v54  ;;  %v7022_v55 = vpop.f32.mrb[23].mxu1  ;;  %v7048_v18 = vadd.f32 %v6865_v8, %v6683_v31  ;;  %v7061_v31 = vadd.f32 %v6873_v19, %v6687_v32  ;;  %4220 = vmatpush1.bf16.msra.mxu0 %v5490_v56 }
 0x211   : > { %v7024_v37 = vpop.f32.mrb[31].mxu0  ;;  %v5995_v61 = vpop.eup %5994  ;;  %6014 = vrcp.f32 %v1682_v21  ;;  %v1683_v40 = vadd.f32 1.0, %v5993_v62  ;;  %v7054_v21 = vmul.f32 -1.442695, %v7007_v24  ;;  %v7057_v62 = vmul.f32 -1.442695, %v7020_v63  ;;  %4423 = vmatpush1.bf16.msra.mxu1 %v5487_v50  ;;  %4221 = vmatprep.subr.bf16.mxu0 %v5498_v44 }
 0x212   : > { %v5997_v39 = vpop.eup %5996  ;;  %6016 = vrcp.f32 %v1681_v49  ;;  %v1690_v0 = vadd.f32 1.0, %v5995_v61  ;;  %v7064_v7 = vpop.f32.mrb[24].mxu1  ;;  %v7078_v32 = vrot.slane %v6673_v29, %v8463_v10  ;;  %4424 = vmatprep.subr.bf16.mxu1 %v5495_v11  ;;  %v5496_v50 = vld [vmem:[%s8446_s5 + $0x180] ss:$16 sps:$4 sm:$0xff]   ;;  %v7100_v10 = vadd.f32 %v6914_v38, %v7033_v51  ;;  %v5499_v38 = vld [vmem:[%s8446_s5 + $0x188] ss:$16 sps:$4 sm:$0xff]  }
 0x213   : > { %v5999_v16 = vpop.eup %5998  ;;  %6018 = vrcp.f32 %v1683_v40  ;;  %v1692_v9 = vadd.f32 1.0, %v5997_v39  ;;  %v7066_v40 = vpop.f32.mrb[32].mxu0  ;;  %v5493_v39 = vld [vmem:[%s8446_s5 + $0x168] ss:$16 sps:$4 sm:$0xff]   ;;  %v7111_v44 = vmul.f32 -1.442695, %v7061_v31 }
 0x214   : > { %v6001_v57 = vpop.eup %6000  ;;  %6020 = vrcp.f32 %v1690_v0  ;;  %v1691_v54 = vadd.f32 1.0, %v5999_v16  ;;  %v7073_v16 = vadd.f32 %v6875_v20, %v6697_v35  ;;  %v7080_v19 = vpop.f32.mrb[25].mxu1  ;;  %v7088_v35 = vmul.f32 -1.442695, %v7048_v18  ;;  %8485 = vst [vmem:[#allocation15_spill] sm:$0xff] %v7100_v10  ;;  %4222 = vmatpush1.bf16.msra.mxu0 %v5496_v50 }
 0x215   : > { %v6003_v49 = vpop.eup %6002  ;;  %6022 = vrcp.f32 %v1692_v9  ;;  %v1693_v61 = vadd.f32 1.0, %v6001_v57  ;;  %v7082_v9 = vpop.f32.mrb[33].mxu0  ;;  %v7092_v20 = vadd.f32 %v6881_v34, %v6701_v36  ;;  %4425 = vmatpush1.bf16.msra.mxu1 %v5493_v39  ;;  %v7139_v50 = vmul.f32 -1.442695, %v7100_v10 }
 0x216   : > { %v6005_v0 = vpop.eup %6004  ;;  %6024 = vrcp.f32 %v1691_v54  ;;  %v1700_v58 = vadd.f32 1.0, %v6003_v49  ;;  %8481 = vst [vmem:[#allocation11_spill] sm:$0xff] %v7073_v16  ;;  %v7094_v49 = vpop.f32.mrb[26].mxu1 }
 0x217   : > { %v6007_v57 = vpop.eup %6006  ;;  %6026 = vrcp.f32 %v1693_v61  ;;  %v1702_v54 = vadd.f32 1.0, %v6005_v0  ;;  %8482 = vst [vmem:[#allocation12_spill] sm:$0xff] %v7092_v20  ;;  %8483 = vst [vmem:[#allocation13_spill] sm:$0xff] %v7094_v49  ;;  %v7096_v2 = vpop.f32.mrb[34].mxu0  ;;  %v7104_v61 = vadd.f32 %v6916_v28, %v7038_v41  ;;  %v7117_v28 = vmul.f32 -1.442695, %v7073_v16 }
 0x218   : > { %8484 = vst [vmem:[#allocation14_spill] sm:$0xff] %v7096_v2  ;;  %v6009_v56 = vpop.eup %6008  ;;  %6028 = vrcp.f32 %v1700_v58  ;;  %v1701_v11 = vadd.f32 1.0, %v6007_v57  ;;  %v7106_v0 = vpop.f32.mrb[27].mxu1 }
 0x219   : > { %8486 = vst [vmem:[#allocation16_spill] sm:$0xff] %v7104_v61  ;;  %8487 = vst [vmem:[#allocation17_spill] sm:$0xff] %v7106_v0  ;;  %v7108_v36 = vpop.f32.mrb[35].mxu0  ;;  %v6011_v34 = vpop.eup %6010  ;;  %6030 = vrcp.f32 %v1702_v54  ;;  %v1703_v8 = vadd.f32 1.0, %v6009_v56  ;;  %v5501_v54 = vld [vmem:[%s8446_s5 + $0x18c] ss:$16 sps:$4 sm:$0xff]  }
 0x21a   : > { %8488 = vst [vmem:[#allocation18_spill] sm:$0xff] %v7108_v36  ;;  %v6013_v58 = vpop.eup %6012  ;;  %6032 = vrcp.f32 %v1701_v11  ;;  %v1710_v57 = vadd.f32 1.0, %v6011_v34  ;;  %v7121_v36 = vadd.f32 %v6928_v27, %v7078_v32  ;;  %v7127_v0 = vmul.f32 -1.442695, %v7092_v20  ;;  %v5502_v27 = vld [vmem:[%s8446_s5 + $0x1a0] ss:$16 sps:$4 sm:$0xff]   ;;  %4426 = vmatprep.subr.bf16.mxu1 %v5501_v54 }
 0x21b   : > { %v6015_v39 = vpop.eup %6014  ;;  %6034 = vrcp.f32 %v1703_v8  ;;  %v1712_v56 = vadd.f32 1.0, %v6013_v58  ;;  %v8489_v11 = vsub.s32 7, %v6662_v26  ;;  %v7142_v8 = vmul.f32 -1.442695, %v7104_v61  ;;  %4427 = vmatpush1.bf16.msra.mxu1 %v5499_v38  ;;  %v5505_v54 = vld [vmem:[%s8446_s5 + $0x1a8] ss:$16 sps:$4 sm:$0xff]  }
 0x21c   : > { %v6017_v2 = vpop.eup %6016  ;;  %v1922_v49 = vmul.f32 %v6015_v39, %v6813_v5  ;;  %6036 = vrcp.f32 %v1710_v57  ;;  %v6282_v20 = vmov 1966171168   ;;  %v7150_v5 = vpop.f32.mrb[28].mxu1  ;;  %v5507_v39 = vld [vmem:[%s8446_s5 + $0x1ac] ss:$16 sps:$4 sm:$0xff]  }
 0x21d   : > { %v7132_v34 = vrot.slane %v6673_v29, %v8489_v11  ;;  %v5504_v29 = vld [vmem:[%s8446_s5 + $0x1a4] ss:$16 sps:$4 sm:$0xff]   ;;  %v6019_v58 = vpop.eup %6018  ;;  %v1921_v11 = vmul.f32 %v6017_v2, %v6816_v6  ;;  %6038 = vrcp.f32 %v1712_v56  ;;  %v7148_v16 = vunpack.c.l.s4 %v6282_v20  ;;  %8490 = vst [vmem:[#allocation19_spill] sm:$0xff] %v7150_v5  ;;  %v7152_v57 = vpop.f32.mrb[36].mxu0  ;;  %4428 = vmatprep.subr.bf16.mxu1 %v5507_v39 }
 0x21e   : > { %8491 = vst [vmem:[#allocation20_spill] sm:$0xff] %v7152_v57  ;;  %v6021_v61 = vpop.eup %6020  ;;  %v2000_v6 = vadd.f32 %v6978_v15, %v1922_v49  ;;  %v1923_v2 = vmul.f32 %v6019_v58, %v6819_v12  ;;  %6040 = vpow2.f32 %v7054_v21  ;;  %v7164_v20 = vmul.f32 -1.442695, %v7121_v36  ;;  %v7166_v56 = vpop.f32.mrb[29].mxu1  ;;  %4223 = vmatprep.subr.bf16.mxu0 %v5504_v29  ;;  %v5508_v49 = vld [vmem:[%s8446_s5 + $0x1c0] ss:$16 sps:$4 sm:$0xff]  }
 0x21f   : > { %v7168_v38 = vpop.f32.mrb[37].mxu0  ;;  %v6023_v57 = vpop.eup %6022  ;;  %v1987_v5 = vadd.f32 %v6990_v1, %v1921_v11  ;;  %v1930_v10 = vmul.f32 %v6021_v61, %v6830_v22  ;;  %6042 = vpow2.f32 %v7057_v62  ;;  %v7175_v12 = vadd.f32 %v6930_v33, %v7132_v34  ;;  %4224 = vmatpush1.bf16.msra.mxu0 %v5502_v27  ;;  %v5510_v22 = vld [vmem:[%s8446_s5 + $0x1c4] ss:$16 sps:$4 sm:$0xff]   ;;  %v5513_v58 = vld [vmem:[%s8446_s5 + $0x1cc] ss:$16 sps:$4 sm:$0xff]   ;;  %4429 = vmatpush1.bf16.msra.mxu1 %v5505_v54 }
 0x220   : > { %v7177_v15 = vpop.f32.mrb[30].mxu1  ;;  %v7179_v21 = vpop.f32.mrb[38].mxu0  ;;  %v2013_v62 = vadd.f32 %v7003_v14, %v1923_v2  ;;  %v1932_v33 = vmul.f32 %v6023_v57, %v6844_v46  ;;  %6044 = vpow2.f32 %v7088_v35  ;;  %v7192_v61 = vadd.f32 %v6941_v47, %v7033_v51  ;;  %4225 = vmatprep.subr.bf16.mxu0 %v5510_v22  ;;  %v5511_v47 = vld [vmem:[%s8446_s5 + $0x1c8] ss:$16 sps:$4 sm:$0xff]   ;;  %v5516_v35 = vld [vmem:[%s8446_s5 + $0x1e4] ss:$16 sps:$4 sm:$0xff]   ;;  %4430 = vmatprep.subr.bf16.mxu1 %v5513_v58 }
 0x221   : > { %v6025_v1 = vpop.eup %6024  ;;  %v7194_v27 = vpop.f32.mrb[31].mxu1  ;;  %v1975_v39 = vadd.f32 %v7016_v23, %v1930_v10  ;;  %6046 = vpow2.f32 %v7111_v44  ;;  %v7206_v46 = vadd.f32 %v6943_v59, %v7038_v41  ;;  %v7218_v59 = vadd.f32 %v6953_v3, %v7078_v32  ;;  %v5519_v10 = vld [vmem:[%s8446_s5 + $0x1ec] ss:$16 sps:$4 sm:$0xff]   ;;  %v8492_v2 = vld [vmem:[#allocation8_spill] sm:$0xff] }
 0x222   : > { %v7196_v29 = vpop.f32.mrb[39].mxu0  ;;  %v6027_v11 = vpop.eup %6026  ;;  %v1931_v14 = vmul.f32 %v6025_v1, %v6849_v52  ;;  %v2001_v23 = vadd.f32 %v2000_v6, %v1932_v33  ;;  %6048 = vpow2.f32 %v7117_v28  ;;  %v4820_v6 = vmul.f32 -1.442695, %v7175_v12  ;;  %v8493_v1 = vld [vmem:[#allocation9_spill] sm:$0xff] }
 0x223   : > { %v6029_v57 = vpop.eup %6028  ;;  %v1933_v52 = vmul.f32 %v6027_v11, %v6861_v4  ;;  %6050 = vpow2.f32 %v7127_v0  ;;  %4226 = vmatpush1.bf16.msra.mxu0 %v5508_v49  ;;  %v5514_v4 = vld [vmem:[%s8446_s5 + $0x1e0] ss:$16 sps:$4 sm:$0xff]   ;;  %v4827_v58 = vmul.f32 -1.442695, %v7192_v61  ;;  %v5522_v0 = vld [vmem:[%s8446_s5 + $0x204] ss:$16 sps:$4 sm:$0xff]   ;;  %4431 = vmatpush1.bf16.msra.mxu1 %v5511_v47 }
 0x224   : > { %v6031_v44 = vpop.eup %6030  ;;  %v1988_v54 = vadd.f32 %v1987_v5, %v1931_v14  ;;  %v1940_v22 = vmul.f32 %v6029_v57, %v8492_v2  ;;  %6052 = vpow2.f32 %v7139_v50  ;;  %4227 = vmatprep.subr.bf16.mxu0 %v5516_v35  ;;  %v8494_v49 = vld [vmem:[#allocation10_spill] sm:$0xff]  ;;  %v4829_v57 = vmul.f32 -1.442695, %v7206_v46  ;;  %4432 = vmatprep.subr.bf16.mxu1 %v5519_v10 }
 0x225   : > { %v6033_v3 = vpop.eup %6032  ;;  %v2014_v28 = vadd.f32 %v2013_v62, %v1933_v52  ;;  %v1942_v33 = vmul.f32 %v6031_v44, %v8493_v1  ;;  %6054 = vpow2.f32 %v7142_v8  ;;  %v7238_v62 = vpop.f32.mrb[32].mxu1  ;;  %v5517_v50 = vld [vmem:[%s8446_s5 + $0x1e8] ss:$16 sps:$4 sm:$0xff]   ;;  %v5525_v8 = vld [vmem:[%s8446_s5 + $0x20c] ss:$16 sps:$4 sm:$0xff]  }
 0x226   : > { %v6035_v5 = vpop.eup %6034  ;;  %v1976_v11 = vadd.f32 %v1975_v39, %v1940_v22  ;;  %v1941_v14 = vmul.f32 %v6033_v3, %v8494_v49  ;;  %6056 = vpow2.f32 %v7164_v20  ;;  %v4828_v39 = vmul.f32 -1.442695, %v7218_v59  ;;  %v7246_v2 = vpop.f32.mrb[33].mxu1 }
 0x227   : > { %v6037_v35 = vpop.eup %6036  ;;  %v2002_v52 = vadd.f32 %v2001_v23, %v1942_v33  ;;  %v1943_v44 = vmul.f32 %v6035_v5, %v6912_v60  ;;  %6058 = vpow2.f32 %v4820_v6  ;;  %v7254_v23 = vpop.f32.mrb[34].mxu1  ;;  %4228 = vmatpush1.bf16.msra.mxu0 %v5514_v4  ;;  %4433 = vmatpush1.bf16.msra.mxu1 %v5517_v50  ;;  %v2118_v4 = vunpack.c.0.s8 %v7148_v16 }
 0x228   : > { %v6039_v47 = vpop.eup %6038  ;;  %v7251_v22 = vadd.f32 %v1988_v54, %v1941_v14  ;;  %v1950_v3 = vmul.f32 %v6037_v35, %v6926_v13  ;;  %6060 = vpow2.f32 %v4827_v58  ;;  %v7259_v10 = vpop.f32.mrb[35].mxu1  ;;  %4238 = vmatprep.subr.bf16.mxu0 %v5522_v0  ;;  %4443 = vmatprep.subr.bf16.mxu1 %v5525_v8  ;;  %v7268_v58 = vadd.f32 %v6955_v53, %v7132_v34 }
 0x229   : > { %v6041_v60 = vpop.eup %6040  ;;  %v7256_v20 = vadd.f32 %v2014_v28, %v1943_v44  ;;  %v1952_v1 = vmul.f32 %v6039_v47, %v6939_v45  ;;  %6062 = vpow2.f32 %v4829_v57  ;;  %v7272_v0 = vadd.f32 %v6983_v43, %v7033_v51 }
 0x22a   : > { %v6043_v33 = vpop.eup %6042  ;;  %v7261_v5 = vadd.f32 %v1976_v11, %v1950_v3  ;;  %v1711_v54 = vadd.f32 1.0, %v6041_v60  ;;  %6064 = vpow2.f32 %v4828_v39  ;;  %v7276_v57 = vadd.f32 %v6985_v42, %v7038_v41  ;;  %v7278_v35 = vpop.f32.mrb[36].mxu1 }
 0x22b   : > { %v6045_v13 = vpop.eup %6044  ;;  %v7263_v6 = vadd.f32 %v2002_v52, %v1952_v1  ;;  %v1713_v49 = vadd.f32 1.0, %v6043_v33  ;;  %8495 = vst [vmem:[#allocation8_spill] sm:$0xff] %v7278_v35  ;;  %v7281_v53 = vsub.s32 %v2118_v4, %v6662_v26  ;;  %v7285_v43 = vadd.f32 %v6993_v17, %v7078_v32  ;;  %v7287_v39 = vpop.f32.mrb[37].mxu1 }
 0x22c   : > { %v6047_v28 = vpop.eup %6046  ;;  %6066 = vrcp.f32 %v1711_v54  ;;  %v1720_v45 = vadd.f32 1.0, %v6045_v13  ;;  %8496 = vst [vmem:[#allocation9_spill] sm:$0xff] %v7287_v39  ;;  %v4830_v47 = vmul.f32 -1.442695, %v7268_v58  ;;  %v4837_v3 = vmul.f32 -1.442695, %v7272_v0 }
 0x22d   : > { %v6049_v11 = vpop.eup %6048  ;;  %6068 = vrcp.f32 %v1713_v49  ;;  %v1722_v14 = vadd.f32 1.0, %v6047_v28  ;;  %v7291_v60 = vpop.f32.mrb[38].mxu1  ;;  %v4839_v54 = vmul.f32 -1.442695, %v7276_v57  ;;  %v7296_v17 = vadd.f32 %v6995_v25, %v7132_v34 }
 0x22e   : > { %v6051_v16 = vpop.eup %6050  ;;  %6070 = vrcp.f32 %v1720_v45  ;;  %v1721_v50 = vadd.f32 1.0, %v6049_v11  ;;  %8497 = vst [vmem:[#allocation10_spill] sm:$0xff] %v7291_v60  ;;  %v7298_v13 = vpop.f32.mrb[39].mxu1  ;;  %v7302_v28 = vadd.f32 %v7009_v48, %v7033_v51  ;;  %v7306_v45 = vadd.f32 %v7011_v30, %v7038_v41 }
 0x22f   : > { %v6053_v52 = vpop.eup %6052  ;;  %6072 = vrcp.f32 %v1722_v14  ;;  %v1723_v44 = vadd.f32 1.0, %v6051_v16  ;;  %8498 = vst [vmem:[#allocation21_spill] sm:$0xff] %v7298_v13  ;;  %v4838_v16 = vmul.f32 -1.442695, %v7285_v43  ;;  %v7311_v25 = vadd.f32 %v7022_v55, %v7078_v32 }
 0x230   : > { %v6055_v8 = vpop.eup %6054  ;;  %6074 = vrcp.f32 %v1721_v50  ;;  %v1654_v42 = vadd.f32 1.0, %v6053_v52  ;;  %v7315_v48 = vadd.f32 %v7024_v37, %v7132_v34  ;;  %v7319_v30 = vadd.f32 %v7064_v7, %v7033_v51 }
 0x231   : > { %v6057_v1 = vpop.eup %6056  ;;  %6076 = vrcp.f32 %v1723_v44  ;;  %v1656_v33 = vadd.f32 1.0, %v6055_v8  ;;  %v7324_v55 = vadd.f32 %v7066_v40, %v7038_v41  ;;  %v4849_v37 = vmul.f32 -1.442695, %v7306_v45 }
 0x232   : > { %v6059_v49 = vpop.eup %6058  ;;  %6078 = vrcp.f32 %v1654_v42  ;;  %v1655_v4 = vadd.f32 1.0, %v6057_v1  ;;  %v4840_v42 = vmul.f32 -1.442695, %v7296_v17  ;;  %v4850_v26 = vmul.f32 -1.442695, %v7315_v48 }
 0x233   : > { %v6061_v11 = vpop.eup %6060  ;;  %6080 = vrcp.f32 %v1656_v33  ;;  %v1657_v14 = vadd.f32 1.0, %v6059_v49  ;;  %8499 = vst [vmem:[#allocation22_spill] sm:$0xff] %v7324_v55  ;;  %v4847_v49 = vmul.f32 -1.442695, %v7302_v28 }
 0x234   : > { %v6063_v50 = vpop.eup %6062  ;;  %6082 = vrcp.f32 %v1655_v4  ;;  %v1664_v52 = vadd.f32 1.0, %v6061_v11  ;;  %v7328_v4 = vpop.f32.mrb[40].mxu1 }
 0x235   : > { %v6065_v44 = vpop.eup %6064  ;;  %6084 = vrcp.f32 %v1657_v14  ;;  %v1666_v8 = vadd.f32 1.0, %v6063_v50  ;;  %8500 = vst [vmem:[#allocation23_spill] sm:$0xff] %v7328_v4  ;;  %v4848_v14 = vmul.f32 -1.442695, %v7311_v25  ;;  %v7334_v50 = vadd.f32 %v7080_v19, %v7078_v32  ;;  %v7336_v40 = vpop.f32.mrb[41].mxu1 }
 0x236   : > { %v6067_v1 = vpop.eup %6066  ;;  %6086 = vrcp.f32 %v1664_v52  ;;  %v1665_v33 = vadd.f32 1.0, %v6065_v44  ;;  %8502 = vst [vmem:[#allocation25_spill] sm:$0xff] %v7336_v40  ;;  %v4857_v4 = vmul.f32 -1.442695, %v7319_v30  ;;  %v7341_v13 = vpop.f32.mrb[42].mxu1 }
 0x237   : > { %v6069_v7 = vpop.eup %6068  ;;  %v1951_v11 = vmul.f32 %v6067_v1, %v7007_v24  ;;  %6088 = vrcp.f32 %v1666_v8  ;;  %8501 = vst [vmem:[#allocation24_spill] sm:$0xff] %v7334_v50  ;;  %8503 = vst [vmem:[#allocation26_spill] sm:$0xff] %v7341_v13  ;;  %v7346_v19 = vmul.f32 -1.442695, %v7324_v55  ;;  %v7348_v40 = vpop.f32.mrb[43].mxu1 }
 0x238   : > { %v6071_v52 = vpop.eup %6070  ;;  %v1953_v44 = vmul.f32 %v6069_v7, %v7020_v63  ;;  %6090 = vrcp.f32 %v1665_v33  ;;  %8504 = vst [vmem:[#allocation27_spill] sm:$0xff] %v7348_v40  ;;  %v7354_v7 = vadd.f32 %v7082_v9, %v7132_v34 }
 0x239   : > { %v6073_v24 = vpop.eup %6072  ;;  %v1990_v8 = vadd.f32 %v7251_v22, %v1951_v11  ;;  %v1960_v1 = vmul.f32 %v6071_v52, %v7048_v18  ;;  %6092 = vpow2.f32 %v4830_v47  ;;  %v8505_v18 = vld [vmem:[#allocation11_spill] sm:$0xff]  ;;  %v7359_v11 = vmul.f32 -1.442695, %v7334_v50 }
 0x23a   : > { %v6075_v60 = vpop.eup %6074  ;;  %v2016_v63 = vadd.f32 %v7256_v20, %v1953_v44  ;;  %v1962_v33 = vmul.f32 %v6073_v24, %v7061_v31  ;;  %6094 = vpow2.f32 %v4837_v3  ;;  %v8506_v20 = vld [vmem:[#allocation12_spill] sm:$0xff]  ;;  %v8507_v31 = vld [vmem:[#allocation13_spill] sm:$0xff]  ;;  %v8509_v50 = vld [vmem:[#allocation15_spill] sm:$0xff] }
 0x23b   : > { %v6077_v13 = vpop.eup %6076  ;;  %v1978_v22 = vadd.f32 %v7261_v5, %v1960_v1  ;;  %v1961_v47 = vmul.f32 %v6075_v60, %v8505_v18  ;;  %6096 = vpow2.f32 %v4839_v54  ;;  %v7365_v3 = vadd.f32 %v8507_v31, %v7033_v51  ;;  %v8508_v5 = vld [vmem:[#allocation14_spill] sm:$0xff]  ;;  %v8510_v31 = vld [vmem:[#allocation16_spill] sm:$0xff] }
 0x23c   : > { %v6079_v52 = vpop.eup %6078  ;;  %v2004_v40 = vadd.f32 %v7263_v6, %v1962_v33  ;;  %v1963_v44 = vmul.f32 %v6077_v13, %v8506_v20  ;;  %6098 = vpow2.f32 %v4838_v16  ;;  %v7369_v60 = vadd.f32 %v8508_v5, %v7038_v41  ;;  %v7372_v13 = vpop.f32.mrb[44].mxu1 }
 0x23d   : > { %v6081_v9 = vpop.eup %6080  ;;  %v1979_v24 = vrot.slane %v1978_v22, 4  ;;  %v1991_v55 = vadd.f32 %v1990_v8, %v1961_v47  ;;  %6100 = vpow2.f32 %v4840_v42  ;;  %v1894_v6 = vmul.f32 %v6079_v52, %v8509_v50  ;;  %v7377_v42 = vpop.f32.mrb[45].mxu1 }
 0x23e   : > { %v6083_v54 = vpop.eup %6082  ;;  %v2005_v1 = vrot.slane %v2004_v40, 4  ;;  %v2017_v18 = vadd.f32 %v2016_v63, %v1963_v44  ;;  %6102 = vpow2.f32 %v4847_v49  ;;  %v1896_v39 = vmul.f32 %v6081_v9, %v8510_v31  ;;  %8511 = vst [vmem:[#allocation11_spill] sm:$0xff] %v7377_v42  ;;  %v7380_v63 = vpop.f32.mrb[46].mxu1 }
 0x23f   : > { %v7374_v16 = vpop.eup %6084  ;;  %v1980_v33 = vadd.f32 %v1979_v24, %v1978_v22  ;;  %v1992_v20 = vrot.slane %v1991_v55, 4  ;;  %6104 = vpow2.f32 %v4849_v37  ;;  %v1895_v35 = vmul.f32 %v6083_v54, %v7121_v36  ;;  %8512 = vst [vmem:[#allocation12_spill] sm:$0xff] %v7380_v63  ;;  %v7383_v22 = vpop.f32.mrb[47].mxu1 }
 0x240   : > { %v6087_v8 = vpop.eup %6086  ;;  %v2006_v47 = vadd.f32 %v2005_v1, %v2004_v40  ;;  %v2018_v5 = vrot.slane %v2017_v18, 4  ;;  %6106 = vpow2.f32 %v4848_v14  ;;  %8513 = vst [vmem:[#allocation13_spill] sm:$0xff] %v7383_v22 }
 0x241   : > { %v6089_v49 = vpop.eup %6088  ;;  %v1981_v50 = vrot.slane %v1980_v33, 2  ;;  %v1993_v52 = vadd.f32 %v1992_v20, %v1991_v55  ;;  %v1904_v44 = vmul.f32 %v6087_v8, %v7192_v61  ;;  %6108 = vpow2.f32 %v4850_v26 }
 0x242   : > { %v6091_v9 = vpop.eup %6090  ;;  %v2007_v37 = vrot.slane %v2006_v47, 2  ;;  %v2019_v24 = vadd.f32 %v2018_v5, %v2017_v18  ;;  %v1906_v31 = vmul.f32 %v6089_v49, %v7206_v46  ;;  %6110 = vpow2.f32 %v4857_v4 }
 0x243   : > { %v6093_v40 = vpop.eup %6092  ;;  %v1982_v1 = vadd.f32 %v1981_v50, %v1980_v33  ;;  %v1994_v36 = vrot.slane %v1993_v52, 2  ;;  %v7386_v14 = vadd.f32 %v1904_v44, %v1894_v6  ;;  %v1905_v54 = vmul.f32 %v6091_v9, %v7218_v59 }
 0x244   : > { %v6095_v63 = vpop.eup %6094  ;;  %v2008_v55 = vadd.f32 %v2007_v37, %v2006_v47  ;;  %v2020_v20 = vrot.slane %v2019_v24, 2  ;;  %v7389_v61 = vadd.f32 %v1906_v31, %v1896_v39  ;;  %v1667_v26 = vadd.f32 1.0, %v6093_v40 }
 0x245   : > { %v6097_v8 = vpop.eup %6096  ;;  %v1983_v22 = vrot.slane %v1982_v1, 1  ;;  %v1995_v42 = vadd.f32 %v1994_v36, %v1993_v52  ;;  %v7391_v18 = vadd.f32 %v1905_v54, %v1895_v35  ;;  %v1674_v46 = vadd.f32 1.0, %v6095_v63  ;;  %v8514_v63 = vld [vmem:[#allocation17_spill] sm:$0xff] }
 0x246   : > { %v6099_v4 = vpop.eup %6098  ;;  %v2009_v5 = vrot.slane %v2008_v55, 1  ;;  %v2021_v33 = vadd.f32 %v2020_v20, %v2019_v24  ;;  %6112 = vrcp.f32 %v1667_v26  ;;  %v1676_v6 = vadd.f32 1.0, %v6097_v8 }
 0x247   : > { %v6101_v49 = vpop.eup %6100  ;;  %v1984_v50 = vadd.f32 %v1983_v22, %v1982_v1  ;;  %v1996_v59 = vrot.slane %v1995_v42, 1  ;;  %6114 = vrcp.f32 %v1674_v46  ;;  %v1675_v47 = vadd.f32 1.0, %v6099_v4  ;;  %v8515_v1 = vld [vmem:[#allocation18_spill] sm:$0xff] }
 0x248   : > { %v6103_v44 = vpop.eup %6102  ;;  %v2010_v39 = vadd.f32 %v2009_v5, %v2008_v55  ;;  %v2022_v9 = vrot.slane %v2021_v33, 1  ;;  %6116 = vrcp.f32 %v1676_v6  ;;  %v1677_v37 = vadd.f32 1.0, %v6101_v49 }
 0x249   : > { %v6105_v31 = vpop.eup %6104  ;;  %v1997_v52 = vadd.f32 %v1996_v59, %v1995_v42  ;;  %6118 = vrcp.f32 %v1675_v47  ;;  %v1684_v35 = vadd.f32 1.0, %v6103_v44  ;;  %v7395_v40 = vadd.f32 %v8514_v63, %v7078_v32  ;;  %v8516_v42 = vld [vmem:[#allocation19_spill] sm:$0xff]  ;;  %v8517_v44 = vld [vmem:[#allocation20_spill] sm:$0xff] }
 0x24a   : > { %v6107_v24 = vpop.eup %6106  ;;  %v2023_v36 = vadd.f32 %v2022_v9, %v2021_v33  ;;  %6120 = vrcp.f32 %v1677_v37  ;;  %v1686_v22 = vadd.f32 1.0, %v6105_v31  ;;  %v7399_v54 = vadd.f32 %v8515_v1, %v7132_v34 }
 0x24b   : > { %v6109_v55 = vpop.eup %6108  ;;  %v2112_v20 = vcombine.low %v1984_v50, %v1997_v52  ;;  %6122 = vrcp.f32 %v1684_v35  ;;  %v1685_v26 = vadd.f32 1.0, %v6107_v24  ;;  %v7403_v8 = vadd.f32 %v8516_v42, %v7033_v51  ;;  %v5559_v24 = vld [vmem:[%s8446_s5 + $0x2c8] ss:$16 sps:$4 sm:$0xff]  }
 0x24c   : > { %v6111_v46 = vpop.eup %6110  ;;  %v2113_v4 = vcombine.low %v2010_v39, %v2023_v36  ;;  %6124 = vrcp.f32 %v1686_v22  ;;  %v1687_v5 = vadd.f32 1.0, %v6109_v55  ;;  %v4860_v33 = vmul.f32 -1.442695, %v7354_v7 }
 0x24d   : > { %v7407_v6 = vrot.slane %v2112_v20, %v7281_v53  ;;  %6126 = vrcp.f32 %v1685_v26  ;;  %v1694_v49 = vadd.f32 1.0, %v6111_v46  ;;  %v4867_v59 = vmul.f32 -1.442695, %v7365_v3 }
 0x24e   : > { %v7411_v50 = vrot.slane %v2113_v4, %v7281_v53  ;;  %6128 = vrcp.f32 %v1687_v5  ;;  %v4869_v47 = vmul.f32 -1.442695, %v7369_v60  ;;  %v7416_v39 = vadd.f32 %v8517_v44, %v7038_v41 }
 0x24f   : > { %6130 = vrcp.f32 %v1694_v49  ;;  %v4868_v9 = vmul.f32 -1.442695, %v7395_v40  ;;  %v4870_v37 = vmul.f32 -1.442695, %v7399_v54  ;;  %v4877_v31 = vmul.f32 -1.442695, %v7403_v8 }
 0x250   : > { %v6113_v52 = vpop.eup %6112  ;;  %v2144_v35 = vcombine.low %v7407_v6, %v7411_v50  ;;  %6132 = vpow2.f32 %v7346_v19  ;;  %v8518_v63 = vlaneseq  ;;  %v1897_v22 = vmul.f32 %v7374_v16, %v7175_v12 }
 0x251   : > { %v6115_v36 = vpop.eup %6114  ;;  %v1907_v1 = vmul.f32 %v6113_v52, %v7268_v58  ;;  %6134 = vpow2.f32 %v7359_v11  ;;  %v7435_v55 = vadd.f32 %v7166_v56, %v7078_v32  ;;  %v6283_v20 = vmov 0.0  }
 0x252   : > { %vm7425_vm3 = vcmp.lt.s32.totalorder %v8518_v63, 256  ;;  %v6117_v19 = vpop.eup %6116  ;;  %v1914_v26 = vmul.f32 %v6115_v36, %v7272_v0  ;;  %6136 = vpow2.f32 %v4860_v33  ;;  %v4879_v42 = vmul.f32 -1.442695, %v7416_v39 }
 0x253   : > { %315 = vst.msk [vmem:[#allocation2 + $0x8] sm:$0x3] %vm7425_vm3, %v6283_v20  ;;  %v7443_v12 = vadd.f32 %v7168_v38, %v7132_v34  ;;  %v6119_v58 = vpop.eup %6118  ;;  %v2063_v11 = vadd.f32 %v1907_v1, %v1897_v22  ;;  %v1916_v16 = vmul.f32 %v6117_v19, %v7276_v57  ;;  %6138 = vpow2.f32 %v4867_v59 }
 0x254   : > { %v7448_v56 = vadd.f32 %v7177_v15, %v7033_v51  ;;  %v6121_v46 = vpop.eup %6120  ;;  %v2025_v4 = vadd.f32 %v7386_v14, %v1914_v26  ;;  %v1915_v0 = vmul.f32 %v6119_v58, %v7285_v43  ;;  %6140 = vpow2.f32 %v4869_v47 }
 0x255   : > { %v7454_v5 = vadd.f32 %v7179_v21, %v7038_v41  ;;  %v6123_v38 = vpop.eup %6122  ;;  %v2051_v33 = vadd.f32 %v7389_v61, %v1916_v16  ;;  %v1917_v57 = vmul.f32 %v6121_v46, %v7296_v17  ;;  %6142 = vpow2.f32 %v4868_v9 }
 0x256   : > { %v4878_v49 = vmul.f32 -1.442695, %v7435_v55  ;;  %v6125_v51 = vpop.eup %6124  ;;  %v2038_v15 = vadd.f32 %v7391_v18, %v1915_v0  ;;  %v1924_v14 = vmul.f32 %v6123_v38, %v7302_v28  ;;  %6144 = vpow2.f32 %v4870_v37  ;;  %v8522_v38 = vld [vmem:[#allocation6_spill] sm:$0xff] }
 0x257   : > { %v4880_v43 = vmul.f32 -1.442695, %v7443_v12  ;;  %v6127_v59 = vpop.eup %6126  ;;  %v2064_v47 = vadd.f32 %v2063_v11, %v1917_v57  ;;  %v1926_v41 = vmul.f32 %v6125_v51, %v7306_v45  ;;  %6146 = vpow2.f32 %v4877_v31 }
 0x258   : > { %v4887_v21 = vmul.f32 -1.442695, %v7448_v56  ;;  %v6129_v61 = vpop.eup %6128  ;;  %v2026_v17 = vadd.f32 %v2025_v4, %v1924_v14  ;;  %v1925_v44 = vmul.f32 %v6127_v59, %v7311_v25  ;;  %6148 = vpow2.f32 %v4879_v42  ;;  %v8521_v4 = vld [vmem:[#allocation4_spill] sm:$0xff] }
 0x259   : > { %v4889_v9 = vmul.f32 -1.442695, %v7454_v5  ;;  %v6131_v18 = vpop.eup %6130  ;;  %v7466_v52 = vadd.f32 %v2051_v33, %v1926_v41  ;;  %v1927_v28 = vmul.f32 %v6129_v61, %v7315_v48  ;;  %6150 = vpow2.f32 %v4878_v49  ;;  %v592_v48 = vld [vmem:[%s8445_s4 + $0x8] sm:$0x3] }
 0x25a   : > { %v6133_v37 = vpop.eup %6132  ;;  %v7469_v36 = vadd.f32 %v2038_v15, %v1925_v44  ;;  %v1934_v45 = vmul.f32 %v6131_v18, %v7319_v30  ;;  %6152 = vpow2.f32 %v4880_v43  ;;  %v7481_v11 = vadd.f32 %v7194_v27, %v7078_v32 }
 0x25b   : > { %v6135_v31 = vpop.eup %6134  ;;  %v7472_v22 = vadd.f32 %v2064_v47, %v1927_v28  ;;  %v1696_v1 = vadd.f32 1.0, %v6133_v37  ;;  %6154 = vpow2.f32 %v4887_v21  ;;  %v7484_v0 = vrot.slane %v592_v48, %v8521_v4 }
 0x25c   : > { %v6137_v25 = vpop.eup %6136  ;;  %v7474_v20 = vadd.f32 %v2026_v17, %v1934_v45  ;;  %v1695_v19 = vadd.f32 1.0, %v6135_v31  ;;  %6156 = vpow2.f32 %v4889_v9  ;;  %v7487_v33 = vrot.slane %v592_v48, %v8522_v38  ;;  %v8525_v31 = vld [vmem:[#allocation10_spill] sm:$0xff] }
 0x25d   : > { %v6139_v26 = vpop.eup %6138  ;;  %6158 = vrcp.f32 %v1696_v1  ;;  %v1697_v42 = vadd.f32 1.0, %v6137_v25  ;;  %v4888_v32 = vmul.f32 -1.442695, %v7481_v11  ;;  %v7492_v27 = vadd.f32 %v7196_v29, %v7132_v34 }
 0x25e   : > { %v6141_v58 = vpop.eup %6140  ;;  %6160 = vrcp.f32 %v1695_v19  ;;  %v1704_v30 = vadd.f32 1.0, %v6139_v26  ;;  %v7496_v41 = vadd.f32 %v7238_v62, %v7484_v0  ;;  %v7500_v21 = vadd.f32 %v7246_v2, %v7487_v33  ;;  %v8523_v62 = vld [vmem:[#allocation8_spill] sm:$0xff]  ;;  %v8524_v2 = vld [vmem:[#allocation9_spill] sm:$0xff] }
 0x25f   : > { %v6143_v16 = vpop.eup %6142  ;;  %6162 = vrcp.f32 %v1697_v42  ;;  %v1706_v46 = vadd.f32 1.0, %v6141_v58  ;;  %v7504_v44 = vadd.f32 %v7254_v23, %v7484_v0  ;;  %v7508_v34 = vadd.f32 %v7259_v10, %v7487_v33  ;;  %v8526_v42 = vld [vmem:[#allocation22_spill] sm:$0xff] }
 0x260   : > { %v6145_v57 = vpop.eup %6144  ;;  %6164 = vrcp.f32 %v1704_v30  ;;  %v1705_v49 = vadd.f32 1.0, %v6143_v16  ;;  %v7512_v18 = vadd.f32 %v8523_v62, %v7484_v0  ;;  %v7516_v28 = vadd.f32 %v8524_v2, %v7487_v33 }
 0x261   : > { %v6147_v51 = vpop.eup %6146  ;;  %6166 = vrcp.f32 %v1706_v46  ;;  %v1707_v15 = vadd.f32 1.0, %v6145_v57  ;;  %v4890_v23 = vmul.f32 -1.442695, %v7492_v27  ;;  %v7521_v10 = vadd.f32 %v8525_v31, %v7484_v0  ;;  %v8527_v57 = vld [vmem:[#allocation24_spill] sm:$0xff] }
 0x262   : > { %v6149_v14 = vpop.eup %6148  ;;  %6168 = vrcp.f32 %v1705_v49  ;;  %v1714_v43 = vadd.f32 1.0, %v6147_v51  ;;  %v4821_v19 = vmul.f32 -1.442695, %v7496_v41  ;;  %v4822_v48 = vmul.f32 -1.442695, %v7500_v21 }
 0x263   : > { %v6151_v59 = vpop.eup %6150  ;;  %6170 = vrcp.f32 %v1707_v15  ;;  %v1716_v47 = vadd.f32 1.0, %v6149_v14  ;;  %v4831_v30 = vmul.f32 -1.442695, %v7504_v44  ;;  %v4832_v16 = vmul.f32 -1.442695, %v7508_v34 }
 0x264   : > { %v6153_v61 = vpop.eup %6152  ;;  %6172 = vrcp.f32 %v1714_v43  ;;  %v1715_v17 = vadd.f32 1.0, %v6151_v59  ;;  %v4841_v51 = vmul.f32 -1.442695, %v7512_v18  ;;  %v4842_v15 = vmul.f32 -1.442695, %v7516_v28 }
 0x265   : > { %v6155_v29 = vpop.eup %6154  ;;  %6174 = vrcp.f32 %v1716_v47  ;;  %v1717_v9 = vadd.f32 1.0, %v6153_v61  ;;  %v4851_v47 = vmul.f32 -1.442695, %v7521_v10  ;;  %vm4636_vm4 = vcmp.lt.s32.totalorder %v8518_v63, 512 }
 0x266   : > { %v6157_v37 = vpop.eup %6156  ;;  %6176 = vrcp.f32 %v1715_v17  ;;  %v1724_v45 = vadd.f32 1.0, %v6155_v29 }
 0x267   : > { %v6159_v1 = vpop.eup %6158  ;;  %6178 = vrcp.f32 %v1717_v9  ;;  %v1726_v25 = vadd.f32 1.0, %v6157_v37  ;;  %v8528_v9 = vld [vmem:[#allocation21_spill] sm:$0xff] }
 0x268   : > { %v6161_v26 = vpop.eup %6160  ;;  %v1936_v58 = vmul.f32 %v6159_v1, %v8526_v42  ;;  %6180 = vrcp.f32 %v1724_v45  ;;  %v7538_v62 = vadd.f32 %v8528_v9, %v7487_v33 }
 0x269   : > { %v6163_v46 = vpop.eup %6162  ;;  %v1935_v49 = vmul.f32 %v6161_v26, %v8527_v57  ;;  %6182 = vrcp.f32 %v1726_v25 }
 0x26a   : > { %v6165_v14 = vpop.eup %6164  ;;  %v2053_v43 = vadd.f32 %v7466_v52, %v1936_v58  ;;  %v1937_v59 = vmul.f32 %v6163_v46, %v7354_v7  ;;  %6184 = vpow2.f32 %v4888_v32  ;;  %v8529_v7 = vld [vmem:[#allocation23_spill] sm:$0xff] }
 0x26b   : > { %v6167_v61 = vpop.eup %6166  ;;  %v2040_v17 = vadd.f32 %v7469_v36, %v1935_v49  ;;  %v1944_v29 = vmul.f32 %v6165_v14, %v7365_v3  ;;  %6186 = vpow2.f32 %v4890_v23  ;;  %v7544_v32 = vadd.f32 %v8529_v7, %v7484_v0  ;;  %v8530_v23 = vld [vmem:[#allocation25_spill] sm:$0xff] }
 0x26c   : > { %v6169_v2 = vpop.eup %6168  ;;  %v2066_v37 = vadd.f32 %v7472_v22, %v1937_v59  ;;  %v1946_v52 = vmul.f32 %v6167_v61, %v7369_v60  ;;  %6188 = vpow2.f32 %v4821_v19  ;;  %v7550_v31 = vadd.f32 %v8530_v23, %v7487_v33  ;;  %v8531_v60 = vld [vmem:[#allocation26_spill] sm:$0xff] }
 0x26d   : > { %v6171_v45 = vpop.eup %6170  ;;  %v2028_v36 = vadd.f32 %v7474_v20, %v1944_v29  ;;  %v1945_v3 = vmul.f32 %v6169_v2, %v7395_v40  ;;  %6190 = vpow2.f32 %v4822_v48  ;;  %v7555_v19 = vadd.f32 %v8531_v60, %v7484_v0 }
 0x26e   : > { %v6173_v1 = vpop.eup %6172  ;;  %v2054_v25 = vadd.f32 %v2053_v43, %v1946_v52  ;;  %v1947_v22 = vmul.f32 %v6171_v45, %v7399_v54  ;;  %6192 = vpow2.f32 %v4831_v30  ;;  %v4852_v40 = vmul.f32 -1.442695, %v7538_v62 }
 0x26f   : > { %v6175_v26 = vpop.eup %6174  ;;  %v2041_v42 = vadd.f32 %v2040_v17, %v1945_v3  ;;  %v1954_v20 = vmul.f32 %v6173_v1, %v7403_v8  ;;  %6194 = vpow2.f32 %v4832_v16  ;;  %v4861_v57 = vmul.f32 -1.442695, %v7544_v32 }
 0x270   : > { %v6177_v48 = vpop.eup %6176  ;;  %v2067_v58 = vadd.f32 %v2066_v37, %v1947_v22  ;;  %v1956_v46 = vmul.f32 %v6175_v26, %v7416_v39  ;;  %6196 = vpow2.f32 %v4841_v51  ;;  %v4862_v14 = vmul.f32 -1.442695, %v7550_v31  ;;  %v8532_v26 = vld [vmem:[#allocation27_spill] sm:$0xff] }
 0x271   : > { %v6179_v54 = vpop.eup %6178  ;;  %v2029_v30 = vadd.f32 %v2028_v36, %v1954_v20  ;;  %v1955_v49 = vmul.f32 %v6177_v48, %v7435_v55  ;;  %6198 = vpow2.f32 %v4842_v15  ;;  %v4871_v16 = vmul.f32 -1.442695, %v7555_v19 }
 0x272   : > { %v6181_v43 = vpop.eup %6180  ;;  %v2055_v59 = vadd.f32 %v2054_v25, %v1956_v46  ;;  %v1957_v8 = vmul.f32 %v6179_v54, %v7443_v12  ;;  %6200 = vpow2.f32 %v4851_v47  ;;  %v7577_v48 = vadd.f32 %v7372_v13, %v7484_v0  ;;  %v8534_v13 = vld [vmem:[#allocation12_spill] sm:$0xff] }
 0x273   : > { %v6183_v61 = vpop.eup %6182  ;;  %v7565_v17 = vadd.f32 %v2041_v42, %v1955_v49  ;;  %v1964_v39 = vmul.f32 %v6181_v43, %v7448_v56  ;;  %6202 = vpow2.f32 %v4852_v40  ;;  %v7573_v42 = vadd.f32 %v8532_v26, %v7487_v33 }
 0x274   : > { %v6185_v51 = vpop.eup %6184  ;;  %v7568_v29 = vadd.f32 %v2067_v58, %v1957_v8  ;;  %v1966_v55 = vmul.f32 %v6183_v61, %v7454_v5  ;;  %6204 = vpow2.f32 %v4861_v57  ;;  %v7586_v61 = vadd.f32 %v8534_v13, %v7484_v0 }
 0x275   : > { %v6187_v15 = vpop.eup %6186  ;;  %v2030_v9 = vadd.f32 %v2029_v30, %v1964_v39  ;;  %v1725_v2 = vadd.f32 1.0, %v6185_v51  ;;  %6206 = vpow2.f32 %v4862_v14  ;;  %v8533_v14 = vld [vmem:[#allocation11_spill] sm:$0xff] }
 0x276   : > { %v6189_v12 = vpop.eup %6188  ;;  %v2056_v47 = vadd.f32 %v2055_v59, %v1966_v55  ;;  %v1727_v37 = vadd.f32 1.0, %v6187_v15  ;;  %6208 = vpow2.f32 %v4871_v16  ;;  %v7581_v43 = vadd.f32 %v8533_v14, %v7487_v33  ;;  %v8535_v15 = vld [vmem:[#allocation13_spill] sm:$0xff] }
 0x277   : > { %v6191_v52 = vpop.eup %6190  ;;  %6210 = vrcp.f32 %v1725_v2  ;;  %v1658_v7 = vadd.f32 1.0, %v6189_v12  ;;  %v2031_v3 = vrot.slane %v2030_v9, 4  ;;  %v4872_v16 = vmul.f32 -1.442695, %v7573_v42 }
 0x278   : > { %v6193_v45 = vpop.eup %6192  ;;  %6212 = vrcp.f32 %v1727_v37  ;;  %v1659_v56 = vadd.f32 1.0, %v6191_v52  ;;  %v2057_v23 = vrot.slane %v2056_v47, 4  ;;  %v4881_v55 = vmul.f32 -1.442695, %v7577_v48 }
 0x279   : > { %v6195_v36 = vpop.eup %6194  ;;  %6214 = vrcp.f32 %v1658_v7  ;;  %v1668_v5 = vadd.f32 1.0, %v6193_v45  ;;  %v2032_v46 = vadd.f32 %v2031_v3, %v2030_v9  ;;  %v7591_v9 = vadd.f32 %v8535_v15, %v7487_v33 }
 0x27a   : > { %v6197_v1 = vpop.eup %6196  ;;  %6216 = vrcp.f32 %v1659_v56  ;;  %v1669_v25 = vadd.f32 1.0, %v6195_v36  ;;  %v2058_v57 = vadd.f32 %v2057_v23, %v2056_v47  ;;  %v4882_v0 = vmul.f32 -1.442695, %v7581_v43 }
 0x27b   : > { %v6199_v22 = vpop.eup %6198  ;;  %6218 = vrcp.f32 %v1668_v5  ;;  %v1678_v60 = vadd.f32 1.0, %v6197_v1  ;;  %v2033_v12 = vrot.slane %v2032_v46, 2  ;;  %v4891_v36 = vmul.f32 -1.442695, %v7586_v61 }
 0x27c   : > { %v6201_v20 = vpop.eup %6200  ;;  %6220 = vrcp.f32 %v1669_v25  ;;  %v1679_v40 = vadd.f32 1.0, %v6199_v22  ;;  %v2059_v47 = vrot.slane %v2058_v57, 2  ;;  %v4892_v23 = vmul.f32 -1.442695, %v7591_v9 }
 0x27d   : > { %v6203_v58 = vpop.eup %6202  ;;  %6222 = vrcp.f32 %v1678_v60  ;;  %v1688_v54 = vadd.f32 1.0, %v6201_v20  ;;  %v2034_v1 = vadd.f32 %v2033_v12, %v2032_v46 }
 0x27e   : > { %v6205_v30 = vpop.eup %6204  ;;  %6224 = vrcp.f32 %v1679_v40  ;;  %v1689_v49 = vadd.f32 1.0, %v6203_v58  ;;  %v2060_v25 = vadd.f32 %v2059_v47, %v2058_v57 }
 0x27f   : > { %v6207_v59 = vpop.eup %6206  ;;  %6226 = vrcp.f32 %v1688_v54  ;;  %v1698_v8 = vadd.f32 1.0, %v6205_v30 }
 0x280   : > { %v6209_v39 = vpop.eup %6208  ;;  %6228 = vrcp.f32 %v1689_v49  ;;  %v1699_v51 = vadd.f32 1.0, %v6207_v59  ;;  %v2035_v59 = vrot.slane %v2034_v1, 1 }
 0x281   : > { %v6211_v2 = vpop.eup %6210  ;;  %6230 = vrcp.f32 %v1698_v8  ;;  %v1708_v37 = vadd.f32 1.0, %v6209_v39 }
 0x282   : > { %v6213_v52 = vpop.eup %6212  ;;  %v1965_v7 = vmul.f32 %v6211_v2, %v7481_v11  ;;  %6232 = vrcp.f32 %v1699_v51 }
 0x283   : > { %v6215_v45 = vpop.eup %6214  ;;  %v1967_v56 = vmul.f32 %v6213_v52, %v7492_v27  ;;  %6234 = vrcp.f32 %v1708_v37 }
 0x284   : > { %v6217_v3 = vpop.eup %6216  ;;  %v2043_v33 = vadd.f32 %v7565_v17, %v1965_v7  ;;  %6236 = vpow2.f32 %v4872_v16  ;;  %v1898_v26 = vmul.f32 %v6215_v45, %v7496_v41 }
 0x285   : > { %v6219_v5 = vpop.eup %6218  ;;  %v2069_v11 = vadd.f32 %v7568_v29, %v1967_v56  ;;  %6238 = vpow2.f32 %v4881_v55  ;;  %v1899_v17 = vmul.f32 %v6217_v3, %v7500_v21 }
 0x286   : > { %v6221_v22 = vpop.eup %6220  ;;  %v2044_v60 = vrot.slane %v2043_v33, 4  ;;  %v1908_v27 = vmul.f32 %v6219_v5, %v7504_v44  ;;  %6240 = vpow2.f32 %v4882_v0  ;;  %v2036_v0 = vadd.f32 %v2035_v59, %v2034_v1 }
 0x287   : > { %v6223_v20 = vpop.eup %6222  ;;  %v2070_v40 = vrot.slane %v2069_v11, 4  ;;  %v1909_v58 = vmul.f32 %v6221_v22, %v7508_v34  ;;  %6242 = vpow2.f32 %v4891_v36  ;;  %v2061_v34 = vrot.slane %v2060_v25, 1 }
 0x288   : > { %v6225_v54 = vpop.eup %6224  ;;  %v2045_v46 = vadd.f32 %v2044_v60, %v2043_v33  ;;  %v2076_v57 = vadd.f32 %v1908_v27, %v1898_v26  ;;  %v1918_v29 = vmul.f32 %v6223_v20, %v7512_v18  ;;  %6244 = vpow2.f32 %v4892_v23 }
 0x289   : > { %v6227_v30 = vpop.eup %6226  ;;  %v2071_v49 = vadd.f32 %v2070_v40, %v2069_v11  ;;  %v2089_v14 = vadd.f32 %v1909_v58, %v1899_v17  ;;  %v1919_v41 = vmul.f32 %v6225_v54, %v7516_v28  ;;  %v2062_v3 = vadd.f32 %v2061_v34, %v2060_v25 }
 0x28a   : > { %v6229_v44 = vpop.eup %6228  ;;  %v2046_v8 = vrot.slane %v2045_v46, 2  ;;  %v2077_v16 = vadd.f32 %v2076_v57, %v1918_v29  ;;  %v1928_v21 = vmul.f32 %v6227_v30, %v7521_v10  ;;  %v2152_v54 = vrot.slane %v2144_v35, %v7281_v53 }
 0x28b   : > { %v6231_v13 = vpop.eup %6230  ;;  %v2072_v39 = vrot.slane %v2071_v49, 2  ;;  %v2090_v51 = vadd.f32 %v2089_v14, %v1919_v41  ;;  %v1929_v55 = vmul.f32 %v6229_v44, %v7538_v62 }
 0x28c   : > { %v6233_v15 = vpop.eup %6232  ;;  %v2047_v18 = vadd.f32 %v2046_v8, %v2045_v46  ;;  %v2078_v2 = vadd.f32 %v2077_v16, %v1928_v21  ;;  %v1938_v12 = vmul.f32 %v6231_v13, %v7544_v32 }
 0x28d   : > { %v6235_v47 = vpop.eup %6234  ;;  %v2073_v37 = vadd.f32 %v2072_v39, %v2071_v49  ;;  %v2091_v28 = vadd.f32 %v2090_v51, %v1929_v55  ;;  %v1939_v52 = vmul.f32 %v6233_v15, %v7550_v31  ;;  %v8536_v51 = vld [vmem:[#allocation7_spill] sm:$0xff] }
 0x28e   : > { %v6237_v7 = vpop.eup %6236  ;;  %v2048_v45 = vrot.slane %v2047_v18, 1  ;;  %v2079_v10 = vadd.f32 %v2078_v2, %v1938_v12  ;;  %v1948_v56 = vmul.f32 %v6235_v47, %v7555_v19  ;;  %v5528_v47 = vld [vmem:[%s8446_s5 + $0x224] ss:$16 sps:$4 sm:$0xff]  }
 0x28f   : > { %v6239_v36 = vpop.eup %6238  ;;  %v2074_v33 = vrot.slane %v2073_v37, 1  ;;  %v2092_v62 = vadd.f32 %v2091_v28, %v1939_v52  ;;  %v1709_v23 = vadd.f32 1.0, %v6237_v7 }
 0x290   : > { %v6241_v5 = vpop.eup %6240  ;;  %v2049_v11 = vadd.f32 %v2048_v45, %v2047_v18  ;;  %v2080_v22 = vadd.f32 %v2079_v10, %v1948_v56  ;;  %v1718_v32 = vadd.f32 1.0, %v6239_v36  ;;  %v5529_v45 = vld [vmem:[%s8446_s5 + $0x228] ss:$16 sps:$4 sm:$0xff]   ;;  %v5534_v56 = vld [vmem:[%s8446_s5 + $0x244] ss:$16 sps:$4 sm:$0xff]  }
 0x291   : > { %v6243_v60 = vpop.eup %6242  ;;  %v2075_v26 = vadd.f32 %v2074_v33, %v2073_v37  ;;  %6246 = vrcp.f32 %v1709_v23  ;;  %v1719_v27 = vadd.f32 1.0, %v6241_v5  ;;  %v5531_v37 = vld [vmem:[%s8446_s5 + $0x22c] ss:$16 sps:$4 sm:$0xff]   ;;  %v5532_v23 = vld [vmem:[%s8446_s5 + $0x240] ss:$16 sps:$4 sm:$0xff]  }
 0x292   : > { %v6245_v31 = vpop.eup %6244  ;;  %v2114_v20 = vcombine.low %v2036_v0, %v2049_v11  ;;  %6248 = vrcp.f32 %v1718_v32  ;;  %v1728_v1 = vadd.f32 1.0, %v6243_v60  ;;  %v5526_v0 = vld [vmem:[%s8446_s5 + $0x220] ss:$16 sps:$4 sm:$0xff]   ;;  %v5537_v36 = vld [vmem:[%s8446_s5 + $0x24c] ss:$16 sps:$4 sm:$0xff]  }
 0x293   : > { %v2115_v40 = vcombine.low %v2062_v3, %v2075_v26  ;;  %6250 = vrcp.f32 %v1719_v27  ;;  %v1729_v19 = vadd.f32 1.0, %v6245_v31  ;;  %v5535_v5 = vld [vmem:[%s8446_s5 + $0x248] ss:$16 sps:$4 sm:$0xff]   ;;  %v5543_v32 = vld [vmem:[%s8446_s5 + $0x26c] ss:$16 sps:$4 sm:$0xff]  }
 0x294   : > { %v2136_v25 = vrot.slane %v2114_v20, %v7281_v53  ;;  %6252 = vrcp.f32 %v1728_v1  ;;  %v5538_v27 = vld [vmem:[%s8446_s5 + $0x260] ss:$16 sps:$4 sm:$0xff]   ;;  %v5541_v31 = vld [vmem:[%s8446_s5 + $0x268] ss:$16 sps:$4 sm:$0xff]   ;;  %v5546_v1 = vld [vmem:[%s8446_s5 + $0x284] ss:$16 sps:$4 sm:$0xff]  }
 0x295   : > { %v2143_v17 = vrot.slane %v2115_v40, %v7281_v53  ;;  %6254 = vrcp.f32 %v1729_v19  ;;  %v5549_v40 = vld [vmem:[%s8446_s5 + $0x28c] ss:$16 sps:$4 sm:$0xff]  }
 0x297   : > { %v2145_v58 = vcombine.low %v2136_v25, %v2143_v17  ;;  %v1971_v25 = vld [vmem:[#allocation2 + $0x8] sm:$0x3]  ;;  %v5544_v17 = vld [vmem:[%s8446_s5 + $0x280] ss:$16 sps:$4 sm:$0xff]  }
 0x299   : > { %v2159_v46 = vrot.slane %v2145_v58, %v7281_v53  ;;  %v5547_v58 = vld [vmem:[%s8446_s5 + $0x288] ss:$16 sps:$4 sm:$0xff]  }
 0x29b   : > { %v6247_v57 = vpop.eup %6246  ;;  %v2160_v29 = vcombine.low %v2152_v54, %v2159_v46  ;;  %v5552_v46 = vld [vmem:[%s8446_s5 + $0x2a4] ss:$16 sps:$4 sm:$0xff]  }
 0x29c   : > { %v6249_v30 = vpop.eup %6248  ;;  %v1949_v49 = vmul.f32 %v6247_v57, %v7573_v42  ;;  %v5555_v57 = vld [vmem:[%s8446_s5 + $0x2ac] ss:$16 sps:$4 sm:$0xff]  }
 0x29d   : > { %v6251_v14 = vpop.eup %6250  ;;  %v1958_v41 = vmul.f32 %v6249_v30, %v7577_v48  ;;  %v7622_v6 = vmul.f32 0.015625, %v2160_v29  ;;  %v5550_v30 = vld [vmem:[%s8446_s5 + $0x2a0] ss:$16 sps:$4 sm:$0xff]  }
 0x29e   : > { %v6253_v44 = vpop.eup %6252  ;;  %v2093_v59 = vadd.f32 %v2092_v62, %v1949_v49  ;;  %v1959_v8 = vmul.f32 %v6251_v14, %v7581_v43  ;;  %v5553_v49 = vld [vmem:[%s8446_s5 + $0x2a8] ss:$16 sps:$4 sm:$0xff]   ;;  %v5558_v14 = vld [vmem:[%s8446_s5 + $0x2c4] ss:$16 sps:$4 sm:$0xff]  }
 0x29f   : > { %v6255_v16 = vpop.eup %6254  ;;  %v2081_v21 = vadd.f32 %v2080_v22, %v1958_v41  ;;  %v1968_v13 = vmul.f32 %v6253_v44, %v7586_v61  ;;  %v2202_v42 = vrot.slane %v7622_v6, %v8522_v38  ;;  %v2198_v48 = vrot.slane %v7622_v6, %v8521_v4  ;;  %v5520_v61 = vld [vmem:[%s8446_s5 + $0x200] ss:$16 sps:$4 sm:$0xff]   ;;  %v5540_v22 = vld [vmem:[%s8446_s5 + $0x264] ss:$16 sps:$4 sm:$0xff]   ;;  %v5561_v41 = vld [vmem:[%s8446_s5 + $0x2cc] ss:$16 sps:$4 sm:$0xff]  }
 0x2a0   : > { %v2094_v50 = vadd.f32 %v2093_v59, %v1959_v8  ;;  %v1969_v35 = vmul.f32 %v6255_v16, %v7591_v9  ;;  %v2210_v43 = vrot.slane %v7622_v6, %v8536_v51  ;;  %v5523_v9 = vld [vmem:[%s8446_s5 + $0x208] ss:$16 sps:$4 sm:$0xff]   ;;  %v5556_v44 = vld [vmem:[%s8446_s5 + $0x2c0] ss:$16 sps:$4 sm:$0xff]   ;;  %v5564_v59 = vld [vmem:[%s8446_s5 + $0x2e4] ss:$16 sps:$4 sm:$0xff]  }
 0x2a1   : > { %v2082_v34 = vadd.f32 %v2081_v21, %v1968_v13  ;;  %v2246_v15 = vpack.c.bf16 %v2202_v42, %v2202_v42  ;;  %v2245_v18 = vpack.c.bf16 %v2198_v48, %v2198_v48  ;;  %v5567_v8 = vld [vmem:[%s8446_s5 + $0x2ec] ss:$16 sps:$4 sm:$0xff]   ;;  %v5562_v16 = vld [vmem:[%s8446_s5 + $0x2e0] ss:$16 sps:$4 sm:$0xff]   ;;  %v5565_v21 = vld [vmem:[%s8446_s5 + $0x2e8] ss:$16 sps:$4 sm:$0xff]  }
 0x2a2   : > { %v2095_v39 = vadd.f32 %v2094_v50, %v1969_v35  ;;  %v2248_v52 = vpack.c.bf16 %v2210_v43, %v2210_v43  ;;  %v5570_v13 = vld [vmem:[%s8446_s5 + $0x304] ss:$16 sps:$4 sm:$0xff]   ;;  %v5573_v50 = vld [vmem:[%s8446_s5 + $0x30c] ss:$16 sps:$4 sm:$0xff]   ;;  %v5568_v35 = vld [vmem:[%s8446_s5 + $0x300] ss:$16 sps:$4 sm:$0xff]  }
 0x2a3   : > { %v2083_v55 = vrot.slane %v2082_v34, 4  ;;  %4229 = vmatprep.mubr.bf16.mxu0 %v2246_v15  ;;  %4434 = vmatprep.mubr.bf16.mxu1 %v2246_v15  ;;  %v5576_v42 = vld [vmem:[%s8446_s5 + $0x324] ss:$16 sps:$4 sm:$0xff]   ;;  %v5579_v48 = vld [vmem:[%s8446_s5 + $0x32c] ss:$16 sps:$4 sm:$0xff]  }
 0x2a4   : > { %v2096_v2 = vrot.slane %v2095_v39, 4  ;;  %4230 = vmatmul.mubr.bf16.vlgmr.msra.gmra.mrb[40].mxu0 %v2245_v18  ;;  %4435 = vmatmul.mubr.bf16.vlgmr.msra.gmra.mrb[48].mxu1 %v2245_v18  ;;  %v5577_v43 = vld [vmem:[%s8446_s5 + $0x328] ss:$16 sps:$4 sm:$0xff]   ;;  %v5585_v15 = vld [vmem:[%s8446_s5 + $0x34c] ss:$16 sps:$4 sm:$0xff]  }
 0x2a5   : > { %v2084_v12 = vadd.f32 %v2083_v55, %v2082_v34  ;;  %4239 = vmatpush1.bf16.msra.mxu0 %v5520_v61  ;;  %4444 = vmatpush1.bf16.msra.mxu1 %v5523_v9  ;;  %v5571_v34 = vld [vmem:[%s8446_s5 + $0x308] ss:$16 sps:$4 sm:$0xff]   ;;  %v5582_v55 = vld [vmem:[%s8446_s5 + $0x344] ss:$16 sps:$4 sm:$0xff]   ;;  %v5580_v61 = vld [vmem:[%s8446_s5 + $0x340] ss:$16 sps:$4 sm:$0xff]  }
 0x2a6   : > { %v2097_v28 = vadd.f32 %v2096_v2, %v2095_v39  ;;  %4270 = vmatprep.mubr.bf16.mxu0 %v2248_v52  ;;  %4475 = vmatprep.mubr.bf16.mxu1 %v2248_v52  ;;  %v5574_v39 = vld [vmem:[%s8446_s5 + $0x320] ss:$16 sps:$4 sm:$0xff]   ;;  %v5583_v9 = vld [vmem:[%s8446_s5 + $0x348] ss:$16 sps:$4 sm:$0xff]   ;;  %v5588_v18 = vld [vmem:[%s8446_s5 + $0x364] ss:$16 sps:$4 sm:$0xff]  }
 0x2a7   : > { %v2085_v7 = vrot.slane %v2084_v12, 2  ;;  %4240 = vmatprep.subr.bf16.mxu0 %v5528_v47  ;;  %4445 = vmatprep.subr.bf16.mxu1 %v5531_v37  ;;  %v5591_v2 = vld [vmem:[%s8446_s5 + $0x36c] ss:$16 sps:$4 sm:$0xff]   ;;  %v5589_v47 = vld [vmem:[%s8446_s5 + $0x368] ss:$16 sps:$4 sm:$0xff]  }
 0x2a8   : > { %v2098_v10 = vrot.slane %v2097_v28, 2  ;;  %v5594_v37 = vld [vmem:[%s8446_s5 + $0x384] ss:$16 sps:$4 sm:$0xff]   ;;  %v5592_v52 = vld [vmem:[%s8446_s5 + $0x380] ss:$16 sps:$4 sm:$0xff]  }
 0x2a9   : > { %v2086_v3 = vadd.f32 %v2085_v7, %v2084_v12  ;;  %4241 = vmatpush1.bf16.msra.mxu0 %v5526_v0  ;;  %4446 = vmatpush1.bf16.msra.mxu1 %v5529_v45  ;;  %v5586_v12 = vld [vmem:[%s8446_s5 + $0x360] ss:$16 sps:$4 sm:$0xff]   ;;  %v5595_v7 = vld [vmem:[%s8446_s5 + $0x388] ss:$16 sps:$4 sm:$0xff]   ;;  %v5600_v0 = vld [vmem:[%s8446_s5 + $0x3a4] ss:$16 sps:$4 sm:$0xff]  }
 0x2aa   : > { %v2099_v33 = vadd.f32 %v2098_v10, %v2097_v28  ;;  %4242 = vmatprep.subr.bf16.mxu0 %v5534_v56  ;;  %4447 = vmatprep.subr.bf16.mxu1 %v5537_v36  ;;  %v5597_v28 = vld [vmem:[%s8446_s5 + $0x38c] ss:$16 sps:$4 sm:$0xff]   ;;  %v5598_v10 = vld [vmem:[%s8446_s5 + $0x3a0] ss:$16 sps:$4 sm:$0xff]   ;;  %v5601_v56 = vld [vmem:[%s8446_s5 + $0x3a8] ss:$16 sps:$4 sm:$0xff]  }
 0x2ab   : > { %v2087_v62 = vrot.slane %v2086_v3, 1  ;;  %v5603_v45 = vld [vmem:[%s8446_s5 + $0x3ac] ss:$16 sps:$4 sm:$0xff]   ;;  %v5606_v36 = vld [vmem:[%s8446_s5 + $0x3c4] ss:$16 sps:$4 sm:$0xff]  }
 0x2ac   : > { %v2100_v11 = vrot.slane %v2099_v33, 1 }
 0x2ad   : > { %v2088_v60 = vadd.f32 %v2087_v62, %v2086_v3  ;;  %4243 = vmatpush1.bf16.msra.mxu0 %v5532_v23  ;;  %4448 = vmatpush1.bf16.msra.mxu1 %v5535_v5  ;;  %v5609_v3 = vld [vmem:[%s8446_s5 + $0x3cc] ss:$16 sps:$4 sm:$0xff]   ;;  %v5607_v62 = vld [vmem:[%s8446_s5 + $0x3c8] ss:$16 sps:$4 sm:$0xff]   ;;  %v5612_v23 = vld [vmem:[%s8446_s5 + $0x3e4] ss:$16 sps:$4 sm:$0xff]  }
 0x2ae   : > { %v2101_v26 = vadd.f32 %v2100_v11, %v2099_v33  ;;  %4244 = vmatprep.subr.bf16.mxu0 %v5540_v22  ;;  %4449 = vmatprep.subr.bf16.mxu1 %v5543_v32  ;;  %v5604_v33 = vld [vmem:[%s8446_s5 + $0x3c0] ss:$16 sps:$4 sm:$0xff]   ;;  %v5615_v5 = vld [vmem:[%s8446_s5 + $0x3ec] ss:$16 sps:$4 sm:$0xff]   ;;  %v5613_v22 = vld [vmem:[%s8446_s5 + $0x3e8] ss:$16 sps:$4 sm:$0xff]  }
 0x2af   : > { %v5610_v11 = vld [vmem:[%s8446_s5 + $0x3e0] ss:$16 sps:$4 sm:$0xff]  }
 0x2b0   : > { %v2161_v20 = vcombine.low %v2088_v60, %v2101_v26  ;;  %v8537_v32 = vld [vmem:[#allocation5_spill] sm:$0xff]  ;;  %v5618_v26 = vld [vmem:[%s8446_s5 + $0x404] ss:$16 sps:$4 sm:$0xff]  }
 0x2b1   : > { %4245 = vmatpush1.bf16.msra.mxu0 %v5538_v27  ;;  %4450 = vmatpush1.bf16.msra.mxu1 %v5541_v31  ;;  %v2206_v60 = vrot.slane %v7622_v6, %v8537_v32  ;;  %v5621_v27 = vld [vmem:[%s8446_s5 + $0x40c] ss:$16 sps:$4 sm:$0xff]  }
 0x2b2   : > { %v2168_v19 = vrot.slane %v2161_v20, %v7281_v53  ;;  %4246 = vmatprep.subr.bf16.mxu0 %v5546_v1  ;;  %4451 = vmatprep.subr.bf16.mxu1 %v5549_v40  ;;  %v8538_v31 = vld [vmem:[#allocation3_spill] sm:$0xff] }
 0x2b3   : > { %v8539_v20 = vsub.s32 5, %v8538_v31  ;;  %v5616_v40 = vld [vmem:[%s8446_s5 + $0x400] ss:$16 sps:$4 sm:$0xff]  }
 0x2b4   : > { %v2175_v54 = vrot.slane %v2168_v19, %v7281_v53  ;;  %v2247_v19 = vpack.c.bf16 %v2206_v60, %v2206_v60  ;;  %v5691_v60 = vld [vmem:[%s8446_s5 + $0x588] ss:$16 sps:$4 sm:$0xff]  }
 0x2b5   : > { %4247 = vmatpush1.bf16.msra.mxu0 %v5544_v17  ;;  %4452 = vmatpush1.bf16.msra.mxu1 %v5547_v58  ;;  %v2218_v1 = vrot.slane %v7622_v6, %v8539_v20  ;;  %v5624_v58 = vld [vmem:[%s8446_s5 + $0x424] ss:$16 sps:$4 sm:$0xff]   ;;  %v5694_v20 = vld [vmem:[%s8446_s5 + $0x5a0] ss:$16 sps:$4 sm:$0xff]  }
 0x2b6   : > { %v2179_v29 = vadd.f32 %v2175_v54, %v1971_v25  ;;  %4248 = vmatprep.subr.bf16.mxu0 %v5552_v46  ;;  %4453 = vmatprep.subr.bf16.mxu1 %v5555_v57  ;;  %v5619_v25 = vld [vmem:[%s8446_s5 + $0x408] ss:$16 sps:$4 sm:$0xff]   ;;  %v5627_v54 = vld [vmem:[%s8446_s5 + $0x42c] ss:$16 sps:$4 sm:$0xff]   ;;  %v5622_v46 = vld [vmem:[%s8446_s5 + $0x420] ss:$16 sps:$4 sm:$0xff]  }
 0x2b7   : > { %v2250_v17 = vpack.c.bf16 %v2218_v1, %v2218_v1  ;;  %v5625_v57 = vld [vmem:[%s8446_s5 + $0x428] ss:$16 sps:$4 sm:$0xff]  }
 0x2b8   : > { %2185 = vst.msk [vmem:[#allocation2 + $0x8] sm:$0x3] %vm7425_vm3, %v2179_v29  ;;  %v5630_v29 = vld [vmem:[%s8446_s5 + $0x444] ss:$16 sps:$4 sm:$0xff]   ;;  %v5697_v1 = vld [vmem:[%s8446_s5 + $0x5a8] ss:$16 sps:$4 sm:$0xff]  }
 0x2b9   : > { %4249 = vmatpush1.bf16.msra.mxu0 %v5550_v30  ;;  %4454 = vmatpush1.bf16.msra.mxu1 %v5553_v49  ;;  %v5633_v30 = vld [vmem:[%s8446_s5 + $0x44c] ss:$16 sps:$4 sm:$0xff]   ;;  %v5628_v49 = vld [vmem:[%s8446_s5 + $0x440] ss:$16 sps:$4 sm:$0xff]  }
 0x2ba   : > { %4250 = vmatprep.subr.bf16.mxu0 %v5558_v14  ;;  %4455 = vmatprep.subr.bf16.mxu1 %v5561_v41  ;;  %v5631_v14 = vld [vmem:[%s8446_s5 + $0x448] ss:$16 sps:$4 sm:$0xff]   ;;  %v5636_v41 = vld [vmem:[%s8446_s5 + $0x464] ss:$16 sps:$4 sm:$0xff]  }
 0x2bd   : > { %4251 = vmatpush1.bf16.msra.mxu0 %v5556_v44  ;;  %4456 = vmatpush1.bf16.msra.mxu1 %v5559_v24  ;;  %v5639_v44 = vld [vmem:[%s8446_s5 + $0x46c] ss:$16 sps:$4 sm:$0xff]   ;;  %v5634_v24 = vld [vmem:[%s8446_s5 + $0x460] ss:$16 sps:$4 sm:$0xff]  }
 0x2be   : > { %4252 = vmatprep.subr.bf16.mxu0 %v5564_v59  ;;  %4457 = vmatprep.subr.bf16.mxu1 %v5567_v8  ;;  %v5637_v59 = vld [vmem:[%s8446_s5 + $0x468] ss:$16 sps:$4 sm:$0xff]   ;;  %v5642_v8 = vld [vmem:[%s8446_s5 + $0x484] ss:$16 sps:$4 sm:$0xff]  }
 0x2c1   : > { %4253 = vmatpush1.bf16.msra.mxu0 %v5562_v16  ;;  %4458 = vmatpush1.bf16.msra.mxu1 %v5565_v21  ;;  %v5645_v16 = vld [vmem:[%s8446_s5 + $0x48c] ss:$16 sps:$4 sm:$0xff]   ;;  %v5640_v21 = vld [vmem:[%s8446_s5 + $0x480] ss:$16 sps:$4 sm:$0xff]  }
 0x2c2   : > { %4254 = vmatprep.subr.bf16.mxu0 %v5570_v13  ;;  %4459 = vmatprep.subr.bf16.mxu1 %v5573_v50  ;;  %v5643_v13 = vld [vmem:[%s8446_s5 + $0x488] ss:$16 sps:$4 sm:$0xff]   ;;  %v5648_v50 = vld [vmem:[%s8446_s5 + $0x4a4] ss:$16 sps:$4 sm:$0xff]  }
 0x2c5   : > { %4255 = vmatpush1.bf16.msra.mxu0 %v5568_v35  ;;  %4460 = vmatpush1.bf16.msra.mxu1 %v5571_v34  ;;  %v5651_v35 = vld [vmem:[%s8446_s5 + $0x4ac] ss:$16 sps:$4 sm:$0xff]   ;;  %v5646_v34 = vld [vmem:[%s8446_s5 + $0x4a0] ss:$16 sps:$4 sm:$0xff]  }
 0x2c6   : > { %4256 = vmatprep.subr.bf16.mxu0 %v5576_v42  ;;  %4461 = vmatprep.subr.bf16.mxu1 %v5579_v48  ;;  %v5649_v42 = vld [vmem:[%s8446_s5 + $0x4a8] ss:$16 sps:$4 sm:$0xff]   ;;  %v5654_v48 = vld [vmem:[%s8446_s5 + $0x4c4] ss:$16 sps:$4 sm:$0xff]  }
 0x2c9   : > { %4257 = vmatpush1.bf16.msra.mxu0 %v5574_v39  ;;  %4462 = vmatpush1.bf16.msra.mxu1 %v5577_v43  ;;  %v5657_v39 = vld [vmem:[%s8446_s5 + $0x4cc] ss:$16 sps:$4 sm:$0xff]   ;;  %v5652_v43 = vld [vmem:[%s8446_s5 + $0x4c0] ss:$16 sps:$4 sm:$0xff]  }
 0x2ca   : > { %4258 = vmatprep.subr.bf16.mxu0 %v5582_v55  ;;  %4463 = vmatprep.subr.bf16.mxu1 %v5585_v15  ;;  %v5655_v55 = vld [vmem:[%s8446_s5 + $0x4c8] ss:$16 sps:$4 sm:$0xff]   ;;  %v5660_v15 = vld [vmem:[%s8446_s5 + $0x4e4] ss:$16 sps:$4 sm:$0xff]  }
 0x2cd   : > { %4259 = vmatpush1.bf16.msra.mxu0 %v5580_v61  ;;  %4464 = vmatpush1.bf16.msra.mxu1 %v5583_v9  ;;  %v5663_v61 = vld [vmem:[%s8446_s5 + $0x4ec] ss:$16 sps:$4 sm:$0xff]   ;;  %v5658_v9 = vld [vmem:[%s8446_s5 + $0x4e0] ss:$16 sps:$4 sm:$0xff]  }
 0x2ce   : > { %4260 = vmatprep.subr.bf16.mxu0 %v5588_v18  ;;  %4465 = vmatprep.subr.bf16.mxu1 %v5591_v2  ;;  %v5661_v18 = vld [vmem:[%s8446_s5 + $0x4e8] ss:$16 sps:$4 sm:$0xff]   ;;  %v5666_v2 = vld [vmem:[%s8446_s5 + $0x504] ss:$16 sps:$4 sm:$0xff]  }
 0x2d1   : > { %4261 = vmatpush1.bf16.msra.mxu0 %v5586_v12  ;;  %4466 = vmatpush1.bf16.msra.mxu1 %v5589_v47  ;;  %v5669_v12 = vld [vmem:[%s8446_s5 + $0x50c] ss:$16 sps:$4 sm:$0xff]   ;;  %v5664_v47 = vld [vmem:[%s8446_s5 + $0x500] ss:$16 sps:$4 sm:$0xff]  }
 0x2d2   : > { %4262 = vmatprep.subr.bf16.mxu0 %v5594_v37  ;;  %4467 = vmatprep.subr.bf16.mxu1 %v5597_v28  ;;  %v5667_v37 = vld [vmem:[%s8446_s5 + $0x508] ss:$16 sps:$4 sm:$0xff]   ;;  %v5672_v28 = vld [vmem:[%s8446_s5 + $0x524] ss:$16 sps:$4 sm:$0xff]  }
 0x2d5   : > { %4263 = vmatpush1.bf16.msra.mxu0 %v5592_v52  ;;  %4468 = vmatpush1.bf16.msra.mxu1 %v5595_v7  ;;  %v5675_v52 = vld [vmem:[%s8446_s5 + $0x52c] ss:$16 sps:$4 sm:$0xff]   ;;  %v5670_v7 = vld [vmem:[%s8446_s5 + $0x520] ss:$16 sps:$4 sm:$0xff]  }
 0x2d6   : > { %4264 = vmatprep.subr.bf16.mxu0 %v5600_v0  ;;  %4469 = vmatprep.subr.bf16.mxu1 %v5603_v45  ;;  %v5673_v0 = vld [vmem:[%s8446_s5 + $0x528] ss:$16 sps:$4 sm:$0xff]   ;;  %v5678_v45 = vld [vmem:[%s8446_s5 + $0x544] ss:$16 sps:$4 sm:$0xff]  }
 0x2d9   : > { %4265 = vmatpush1.bf16.msra.mxu0 %v5598_v10  ;;  %4470 = vmatpush1.bf16.msra.mxu1 %v5601_v56  ;;  %v5681_v10 = vld [vmem:[%s8446_s5 + $0x54c] ss:$16 sps:$4 sm:$0xff]   ;;  %v5676_v56 = vld [vmem:[%s8446_s5 + $0x540] ss:$16 sps:$4 sm:$0xff]  }
 0x2da   : > { %4266 = vmatprep.subr.bf16.mxu0 %v5606_v36  ;;  %4471 = vmatprep.subr.bf16.mxu1 %v5609_v3  ;;  %v5679_v36 = vld [vmem:[%s8446_s5 + $0x548] ss:$16 sps:$4 sm:$0xff]   ;;  %v5684_v3 = vld [vmem:[%s8446_s5 + $0x564] ss:$16 sps:$4 sm:$0xff]  }
 0x2dd   : > { %4267 = vmatpush1.bf16.msra.mxu0 %v5604_v33  ;;  %4472 = vmatpush1.bf16.msra.mxu1 %v5607_v62  ;;  %v5687_v33 = vld [vmem:[%s8446_s5 + $0x56c] ss:$16 sps:$4 sm:$0xff]   ;;  %v5682_v62 = vld [vmem:[%s8446_s5 + $0x560] ss:$16 sps:$4 sm:$0xff]  }
 0x2de   : > { %4268 = vmatprep.subr.bf16.mxu0 %v5612_v23  ;;  %4473 = vmatprep.subr.bf16.mxu1 %v5615_v5  ;;  %v5685_v23 = vld [vmem:[%s8446_s5 + $0x568] ss:$16 sps:$4 sm:$0xff]   ;;  %v5690_v5 = vld [vmem:[%s8446_s5 + $0x584] ss:$16 sps:$4 sm:$0xff]  }
 0x2e1   : > { %4269 = vmatpush1.bf16.msra.mxu0 %v5610_v11  ;;  %4474 = vmatpush1.bf16.msra.mxu1 %v5613_v22  ;;  %v5693_v11 = vld [vmem:[%s8446_s5 + $0x58c] ss:$16 sps:$4 sm:$0xff]   ;;  %v5688_v22 = vld [vmem:[%s8446_s5 + $0x580] ss:$16 sps:$4 sm:$0xff]  }
 0x2e2   : > { %4279 = vmatprep.subr.bf16.mxu0 %v5618_v26  ;;  %4484 = vmatprep.subr.bf16.mxu1 %v5621_v27  ;;  %v5696_v26 = vld [vmem:[%s8446_s5 + $0x5a4] ss:$16 sps:$4 sm:$0xff]   ;;  %v5699_v27 = vld [vmem:[%s8446_s5 + $0x5ac] ss:$16 sps:$4 sm:$0xff]  }
 0x2e4   : > { %4271 = vmatmul.mubr.bf16.vlgmr.msra.gmra.mrb[40].mxu0 %v2247_v19  ;;  %4476 = vmatmul.mubr.bf16.vlgmr.msra.gmra.mrb[48].mxu1 %v2247_v19  ;;  %v5705_v19 = vld [vmem:[%s8446_s5 + $0x5cc] ss:$16 sps:$4 sm:$0xff]  }
 0x2e5   : > { %4280 = vmatpush1.bf16.msra.mxu0 %v5616_v40  ;;  %4311 = vmatprep.mubr.bf16.mxu0 %v2250_v17  ;;  %v5702_v40 = vld [vmem:[%s8446_s5 + $0x5c4] ss:$16 sps:$4 sm:$0xff]  }
 0x2e6   : > { %4485 = vmatpush1.bf16.msra.mxu1 %v5619_v25  ;;  %4516 = vmatprep.mubr.bf16.mxu1 %v2250_v17  ;;  %v5700_v25 = vld [vmem:[%s8446_s5 + $0x5c0] ss:$16 sps:$4 sm:$0xff]   ;;  %v5703_v17 = vld [vmem:[%s8446_s5 + $0x5c8] ss:$16 sps:$4 sm:$0xff]  }
 0x2e7   : > { %4281 = vmatprep.subr.bf16.mxu0 %v5624_v58  ;;  %4486 = vmatprep.subr.bf16.mxu1 %v5627_v54  ;;  %v5708_v58 = vld [vmem:[%s8446_s5 + $0x5e4] ss:$16 sps:$4 sm:$0xff]   ;;  %v5711_v54 = vld [vmem:[%s8446_s5 + $0x5ec] ss:$16 sps:$4 sm:$0xff]  }
 0x2e9   : > { %4282 = vmatpush1.bf16.msra.mxu0 %v5622_v46  ;;  %v5706_v46 = vld [vmem:[%s8446_s5 + $0x5e0] ss:$16 sps:$4 sm:$0xff]  }
 0x2ea   : > { %4487 = vmatpush1.bf16.msra.mxu1 %v5625_v57  ;;  %4283 = vmatprep.subr.bf16.mxu0 %v5630_v29  ;;  %v5709_v57 = vld [vmem:[%s8446_s5 + $0x5e8] ss:$16 sps:$4 sm:$0xff]   ;;  %v8540_v29 = vsub.s32 4, %v8538_v31 }
 0x2eb   : > { %4488 = vmatprep.subr.bf16.mxu1 %v5633_v30 }
 0x2ec   : > { %v2214_v30 = vrot.slane %v7622_v6, %v8540_v29  ;;  %v5784_v29 = vld [vmem:[%s8446_s5 + $0x780] ss:$16 sps:$4 sm:$0xff]  }
 0x2ed   : > { %4284 = vmatpush1.bf16.msra.mxu0 %v5628_v49  ;;  %v5714_v49 = vld [vmem:[%s8446_s5 + $0x604] ss:$16 sps:$4 sm:$0xff]  }
 0x2ee   : > { %4489 = vmatpush1.bf16.msra.mxu1 %v5631_v14  ;;  %4285 = vmatprep.subr.bf16.mxu0 %v5636_v41  ;;  %v5717_v14 = vld [vmem:[%s8446_s5 + $0x60c] ss:$16 sps:$4 sm:$0xff]   ;;  %v8541_v41 = vsub.s32 7, %v8538_v31 }
 0x2ef   : > { %4490 = vmatprep.subr.bf16.mxu1 %v5639_v44 }
 0x2f0   : > { %v2226_v44 = vrot.slane %v7622_v6, %v8541_v41  ;;  %v5790_v41 = vld [vmem:[%s8446_s5 + $0x7a0] ss:$16 sps:$4 sm:$0xff]  }
 0x2f1   : > { %4286 = vmatpush1.bf16.msra.mxu0 %v5634_v24  ;;  %v5712_v24 = vld [vmem:[%s8446_s5 + $0x600] ss:$16 sps:$4 sm:$0xff]  }
 0x2f2   : > { %4491 = vmatpush1.bf16.msra.mxu1 %v5637_v59  ;;  %4287 = vmatprep.subr.bf16.mxu0 %v5642_v8  ;;  %v2249_v59 = vpack.c.bf16 %v2214_v30, %v2214_v30  ;;  %v5715_v8 = vld [vmem:[%s8446_s5 + $0x608] ss:$16 sps:$4 sm:$0xff]  }
 0x2f3   : > { %4492 = vmatprep.subr.bf16.mxu1 %v5645_v16  ;;  %v5720_v16 = vld [vmem:[%s8446_s5 + $0x624] ss:$16 sps:$4 sm:$0xff]   ;;  %v5787_v30 = vld [vmem:[%s8446_s5 + $0x788] ss:$16 sps:$4 sm:$0xff]  }
 0x2f5   : > { %4288 = vmatpush1.bf16.msra.mxu0 %v5640_v21  ;;  %v2252_v21 = vpack.c.bf16 %v2226_v44, %v2226_v44  ;;  %v5793_v44 = vld [vmem:[%s8446_s5 + $0x7a8] ss:$16 sps:$4 sm:$0xff]  }
 0x2f6   : > { %4493 = vmatpush1.bf16.msra.mxu1 %v5643_v13  ;;  %4289 = vmatprep.subr.bf16.mxu0 %v5648_v50  ;;  %v5723_v13 = vld [vmem:[%s8446_s5 + $0x62c] ss:$16 sps:$4 sm:$0xff]   ;;  %v5718_v50 = vld [vmem:[%s8446_s5 + $0x620] ss:$16 sps:$4 sm:$0xff]  }
 0x2f7   : > { %4494 = vmatprep.subr.bf16.mxu1 %v5651_v35  ;;  %v5721_v35 = vld [vmem:[%s8446_s5 + $0x628] ss:$16 sps:$4 sm:$0xff]  }
 0x2f9   : > { %4290 = vmatpush1.bf16.msra.mxu0 %v5646_v34  ;;  %v5726_v34 = vld [vmem:[%s8446_s5 + $0x644] ss:$16 sps:$4 sm:$0xff]  }
 0x2fa   : > { %4495 = vmatpush1.bf16.msra.mxu1 %v5649_v42  ;;  %4291 = vmatprep.subr.bf16.mxu0 %v5654_v48  ;;  %v5729_v42 = vld [vmem:[%s8446_s5 + $0x64c] ss:$16 sps:$4 sm:$0xff]   ;;  %v5724_v48 = vld [vmem:[%s8446_s5 + $0x640] ss:$16 sps:$4 sm:$0xff]  }
 0x2fb   : > { %4496 = vmatprep.subr.bf16.mxu1 %v5657_v39  ;;  %v5727_v39 = vld [vmem:[%s8446_s5 + $0x648] ss:$16 sps:$4 sm:$0xff]  }
 0x2fd   : > { %4292 = vmatpush1.bf16.msra.mxu0 %v5652_v43  ;;  %v5732_v43 = vld [vmem:[%s8446_s5 + $0x664] ss:$16 sps:$4 sm:$0xff]  }
 0x2fe   : > { %4497 = vmatpush1.bf16.msra.mxu1 %v5655_v55  ;;  %4293 = vmatprep.subr.bf16.mxu0 %v5660_v15  ;;  %v5735_v55 = vld [vmem:[%s8446_s5 + $0x66c] ss:$16 sps:$4 sm:$0xff]   ;;  %v5730_v15 = vld [vmem:[%s8446_s5 + $0x660] ss:$16 sps:$4 sm:$0xff]  }
 0x2ff   : > { %4498 = vmatprep.subr.bf16.mxu1 %v5663_v61  ;;  %v5733_v61 = vld [vmem:[%s8446_s5 + $0x668] ss:$16 sps:$4 sm:$0xff]  }
 0x301   : > { %4294 = vmatpush1.bf16.msra.mxu0 %v5658_v9  ;;  %v5738_v9 = vld [vmem:[%s8446_s5 + $0x684] ss:$16 sps:$4 sm:$0xff]  }
 0x302   : > { %4499 = vmatpush1.bf16.msra.mxu1 %v5661_v18  ;;  %4295 = vmatprep.subr.bf16.mxu0 %v5666_v2  ;;  %v5741_v18 = vld [vmem:[%s8446_s5 + $0x68c] ss:$16 sps:$4 sm:$0xff]   ;;  %v5736_v2 = vld [vmem:[%s8446_s5 + $0x680] ss:$16 sps:$4 sm:$0xff]  }
 0x303   : > { %4500 = vmatprep.subr.bf16.mxu1 %v5669_v12  ;;  %v5739_v12 = vld [vmem:[%s8446_s5 + $0x688] ss:$16 sps:$4 sm:$0xff]  }
 0x305   : > { %4296 = vmatpush1.bf16.msra.mxu0 %v5664_v47  ;;  %v5744_v47 = vld [vmem:[%s8446_s5 + $0x6a4] ss:$16 sps:$4 sm:$0xff]  }
 0x306   : > { %4501 = vmatpush1.bf16.msra.mxu1 %v5667_v37  ;;  %4297 = vmatprep.subr.bf16.mxu0 %v5672_v28  ;;  %v5747_v37 = vld [vmem:[%s8446_s5 + $0x6ac] ss:$16 sps:$4 sm:$0xff]   ;;  %v5742_v28 = vld [vmem:[%s8446_s5 + $0x6a0] ss:$16 sps:$4 sm:$0xff]  }
 0x307   : > { %4502 = vmatprep.subr.bf16.mxu1 %v5675_v52  ;;  %v5745_v52 = vld [vmem:[%s8446_s5 + $0x6a8] ss:$16 sps:$4 sm:$0xff]  }
 0x309   : > { %4298 = vmatpush1.bf16.msra.mxu0 %v5670_v7  ;;  %v5750_v7 = vld [vmem:[%s8446_s5 + $0x6c4] ss:$16 sps:$4 sm:$0xff]  }
 0x30a   : > { %4503 = vmatpush1.bf16.msra.mxu1 %v5673_v0  ;;  %4299 = vmatprep.subr.bf16.mxu0 %v5678_v45  ;;  %v5753_v0 = vld [vmem:[%s8446_s5 + $0x6cc] ss:$16 sps:$4 sm:$0xff]   ;;  %v5748_v45 = vld [vmem:[%s8446_s5 + $0x6c0] ss:$16 sps:$4 sm:$0xff]  }
 0x30b   : > { %4504 = vmatprep.subr.bf16.mxu1 %v5681_v10  ;;  %v5751_v10 = vld [vmem:[%s8446_s5 + $0x6c8] ss:$16 sps:$4 sm:$0xff]  }
 0x30d   : > { %4300 = vmatpush1.bf16.msra.mxu0 %v5676_v56  ;;  %v5756_v56 = vld [vmem:[%s8446_s5 + $0x6e4] ss:$16 sps:$4 sm:$0xff]  }
 0x30e   : > { %4505 = vmatpush1.bf16.msra.mxu1 %v5679_v36  ;;  %4301 = vmatprep.subr.bf16.mxu0 %v5684_v3  ;;  %v5759_v36 = vld [vmem:[%s8446_s5 + $0x6ec] ss:$16 sps:$4 sm:$0xff]   ;;  %v5754_v3 = vld [vmem:[%s8446_s5 + $0x6e0] ss:$16 sps:$4 sm:$0xff]  }
 0x30f   : > { %4506 = vmatprep.subr.bf16.mxu1 %v5687_v33  ;;  %v5757_v33 = vld [vmem:[%s8446_s5 + $0x6e8] ss:$16 sps:$4 sm:$0xff]  }
 0x311   : > { %4302 = vmatpush1.bf16.msra.mxu0 %v5682_v62  ;;  %v5762_v62 = vld [vmem:[%s8446_s5 + $0x704] ss:$16 sps:$4 sm:$0xff]  }
 0x312   : > { %4507 = vmatpush1.bf16.msra.mxu1 %v5685_v23  ;;  %4303 = vmatprep.subr.bf16.mxu0 %v5690_v5  ;;  %v5765_v23 = vld [vmem:[%s8446_s5 + $0x70c] ss:$16 sps:$4 sm:$0xff]   ;;  %v5760_v5 = vld [vmem:[%s8446_s5 + $0x700] ss:$16 sps:$4 sm:$0xff]  }
 0x313   : > { %4508 = vmatprep.subr.bf16.mxu1 %v5693_v11  ;;  %v5763_v11 = vld [vmem:[%s8446_s5 + $0x708] ss:$16 sps:$4 sm:$0xff]  }
 0x315   : > { %4304 = vmatpush1.bf16.msra.mxu0 %v5688_v22  ;;  %v5768_v22 = vld [vmem:[%s8446_s5 + $0x724] ss:$16 sps:$4 sm:$0xff]  }
 0x316   : > { %4509 = vmatpush1.bf16.msra.mxu1 %v5691_v60  ;;  %4305 = vmatprep.subr.bf16.mxu0 %v5696_v26  ;;  %v5771_v60 = vld [vmem:[%s8446_s5 + $0x72c] ss:$16 sps:$4 sm:$0xff]   ;;  %v5766_v26 = vld [vmem:[%s8446_s5 + $0x720] ss:$16 sps:$4 sm:$0xff]  }
 0x317   : > { %4510 = vmatprep.subr.bf16.mxu1 %v5699_v27  ;;  %v5769_v27 = vld [vmem:[%s8446_s5 + $0x728] ss:$16 sps:$4 sm:$0xff]  }
 0x319   : > { %4306 = vmatpush1.bf16.msra.mxu0 %v5694_v20  ;;  %v5774_v20 = vld [vmem:[%s8446_s5 + $0x744] ss:$16 sps:$4 sm:$0xff]  }
 0x31a   : > { %4511 = vmatpush1.bf16.msra.mxu1 %v5697_v1  ;;  %4307 = vmatprep.subr.bf16.mxu0 %v5702_v40  ;;  %v5777_v1 = vld [vmem:[%s8446_s5 + $0x74c] ss:$16 sps:$4 sm:$0xff]   ;;  %v5772_v40 = vld [vmem:[%s8446_s5 + $0x740] ss:$16 sps:$4 sm:$0xff]  }
 0x31b   : > { %4512 = vmatprep.subr.bf16.mxu1 %v5705_v19  ;;  %v5775_v19 = vld [vmem:[%s8446_s5 + $0x748] ss:$16 sps:$4 sm:$0xff]  }
 0x31d   : > { %4308 = vmatpush1.bf16.msra.mxu0 %v5700_v25  ;;  %v5780_v25 = vld [vmem:[%s8446_s5 + $0x764] ss:$16 sps:$4 sm:$0xff]  }
 0x31e   : > { %4513 = vmatpush1.bf16.msra.mxu1 %v5703_v17  ;;  %4309 = vmatprep.subr.bf16.mxu0 %v5708_v58  ;;  %v5783_v17 = vld [vmem:[%s8446_s5 + $0x76c] ss:$16 sps:$4 sm:$0xff]   ;;  %v5778_v58 = vld [vmem:[%s8446_s5 + $0x760] ss:$16 sps:$4 sm:$0xff]  }
 0x31f   : > { %4514 = vmatprep.subr.bf16.mxu1 %v5711_v54  ;;  %v5781_v54 = vld [vmem:[%s8446_s5 + $0x768] ss:$16 sps:$4 sm:$0xff]  }
 0x321   : > { %4310 = vmatpush1.bf16.msra.mxu0 %v5706_v46  ;;  %v5786_v46 = vld [vmem:[%s8446_s5 + $0x784] ss:$16 sps:$4 sm:$0xff]  }
 0x322   : > { %4515 = vmatpush1.bf16.msra.mxu1 %v5709_v57  ;;  %4320 = vmatprep.subr.bf16.mxu0 %v5714_v49  ;;  %v5789_v57 = vld [vmem:[%s8446_s5 + $0x78c] ss:$16 sps:$4 sm:$0xff]   ;;  %v5792_v49 = vld [vmem:[%s8446_s5 + $0x7a4] ss:$16 sps:$4 sm:$0xff]  }
 0x323   : > { %4525 = vmatprep.subr.bf16.mxu1 %v5717_v14  ;;  %v5795_v14 = vld [vmem:[%s8446_s5 + $0x7ac] ss:$16 sps:$4 sm:$0xff]  }
 0x324   : > { %4312 = vmatmul.mubr.bf16.vlgmr.msra.gmra.mrb[40].mxu0 %v2249_v59 }
 0x325   : > { %4517 = vmatmul.mubr.bf16.vlgmr.msra.gmra.mrb[48].mxu1 %v2249_v59  ;;  %4321 = vmatpush1.bf16.msra.mxu0 %v5712_v24  ;;  %v5798_v24 = vld [vmem:[%s8446_s5 + $0x7c4] ss:$16 sps:$4 sm:$0xff]   ;;  %v5801_v59 = vld [vmem:[%s8446_s5 + $0x7cc] ss:$16 sps:$4 sm:$0xff]  }
 0x326   : > { %4352 = vmatprep.mubr.bf16.mxu0 %v2252_v21  ;;  %4526 = vmatpush1.bf16.msra.mxu1 %v5715_v8  ;;  %v5796_v8 = vld [vmem:[%s8446_s5 + $0x7c0] ss:$16 sps:$4 sm:$0xff]  }
 0x327   : > { %4557 = vmatprep.mubr.bf16.mxu1 %v2252_v21  ;;  %4322 = vmatprep.subr.bf16.mxu0 %v5720_v16  ;;  %v2190_v16 = vld [vmem:[#allocation2 + $0x8] sm:$0x3] }
 0x328   : > { %4527 = vmatprep.subr.bf16.mxu1 %v5723_v13  ;;  %v5799_v21 = vld [vmem:[%s8446_s5 + $0x7c8] ss:$16 sps:$4 sm:$0xff]   ;;  %v5804_v13 = vld [vmem:[%s8446_s5 + $0x7e4] ss:$16 sps:$4 sm:$0xff]  }
 0x329   : > { %4323 = vmatpush1.bf16.msra.mxu0 %v5718_v50  ;;  %v5807_v50 = vld [vmem:[%s8446_s5 + $0x7ec] ss:$16 sps:$4 sm:$0xff]  }
 0x32a   : > { %4528 = vmatpush1.bf16.msra.mxu1 %v5721_v35  ;;  %4324 = vmatprep.subr.bf16.mxu0 %v5726_v34  ;;  %v8210_v35 = vmul.f32 0.015625, %v2190_v16  ;;  %v5802_v34 = vld [vmem:[%s8446_s5 + $0x7e0] ss:$16 sps:$4 sm:$0xff]  }
 0x32b   : > { %4529 = vmatprep.subr.bf16.mxu1 %v5729_v42  ;;  %v5805_v42 = vld [vmem:[%s8446_s5 + $0x7e8] ss:$16 sps:$4 sm:$0xff]   ;;  %v5874_v16 = vld [vmem:[%s8446_s5 + $0x960] ss:$16 sps:$4 sm:$0xff]  }
 0x32d   : > { %4325 = vmatpush1.bf16.msra.mxu0 %v5724_v48  ;;  %v8542_v48 = vsub.s32 6, %v8538_v31 }
 0x32e   : > { %4530 = vmatpush1.bf16.msra.mxu1 %v5727_v39  ;;  %4326 = vmatprep.subr.bf16.mxu0 %v5732_v43  ;;  %v5810_v43 = vld [vmem:[%s8446_s5 + $0x804] ss:$16 sps:$4 sm:$0xff]  }
 0x32f   : > { %4531 = vmatprep.subr.bf16.mxu1 %v5735_v55  ;;  %v2222_v39 = vrot.slane %v7622_v6, %v8542_v48  ;;  %v5813_v55 = vld [vmem:[%s8446_s5 + $0x80c] ss:$16 sps:$4 sm:$0xff]   ;;  %v5811_v6 = vld [vmem:[%s8446_s5 + $0x808] ss:$16 sps:$4 sm:$0xff]   ;;  %v5888_v48 = vld [vmem:[%s8446_s5 + $0x9a4] ss:$16 sps:$4 sm:$0xff]  }
 0x331   : > { %4327 = vmatpush1.bf16.msra.mxu0 %v5730_v15  ;;  %v2234_v15 = vrot.slane %v8210_v35, %v8522_v38  ;;  %v2251_v31 = vpack.c.bf16 %v2222_v39, %v2222_v39  ;;  %v5891_v39 = vld [vmem:[%s8446_s5 + $0x9ac] ss:$16 sps:$4 sm:$0xff]  }
 0x332   : > { %4532 = vmatpush1.bf16.msra.mxu1 %v5733_v61  ;;  %4328 = vmatprep.subr.bf16.mxu0 %v5738_v9  ;;  %v5808_v61 = vld [vmem:[%s8446_s5 + $0x800] ss:$16 sps:$4 sm:$0xff]   ;;  %v5816_v9 = vld [vmem:[%s8446_s5 + $0x824] ss:$16 sps:$4 sm:$0xff]  }
 0x333   : > { %4533 = vmatprep.subr.bf16.mxu1 %v5741_v18  ;;  %v2254_v18 = vpack.c.bf16 %v2234_v15, %v2234_v15  ;;  %v5894_v15 = vld [vmem:[%s8446_s5 + $0x9c4] ss:$16 sps:$4 sm:$0xff]  }
 0x335   : > { %4329 = vmatpush1.bf16.msra.mxu0 %v5736_v2  ;;  %v5819_v2 = vld [vmem:[%s8446_s5 + $0x82c] ss:$16 sps:$4 sm:$0xff]  }
 0x336   : > { %4534 = vmatpush1.bf16.msra.mxu1 %v5739_v12  ;;  %4330 = vmatprep.subr.bf16.mxu0 %v5744_v47  ;;  %v5814_v12 = vld [vmem:[%s8446_s5 + $0x820] ss:$16 sps:$4 sm:$0xff]   ;;  %v5817_v47 = vld [vmem:[%s8446_s5 + $0x828] ss:$16 sps:$4 sm:$0xff]  }
 0x337   : > { %4535 = vmatprep.subr.bf16.mxu1 %v5747_v37  ;;  %v5822_v37 = vld [vmem:[%s8446_s5 + $0x844] ss:$16 sps:$4 sm:$0xff]  }
 0x339   : > { %4331 = vmatpush1.bf16.msra.mxu0 %v5742_v28  ;;  %v5825_v28 = vld [vmem:[%s8446_s5 + $0x84c] ss:$16 sps:$4 sm:$0xff]  }
 0x33a   : > { %4536 = vmatpush1.bf16.msra.mxu1 %v5745_v52  ;;  %4332 = vmatprep.subr.bf16.mxu0 %v5750_v7  ;;  %v5820_v52 = vld [vmem:[%s8446_s5 + $0x840] ss:$16 sps:$4 sm:$0xff]   ;;  %v5823_v7 = vld [vmem:[%s8446_s5 + $0x848] ss:$16 sps:$4 sm:$0xff]  }
 0x33b   : > { %4537 = vmatprep.subr.bf16.mxu1 %v5753_v0  ;;  %v5828_v0 = vld [vmem:[%s8446_s5 + $0x864] ss:$16 sps:$4 sm:$0xff]  }
 0x33d   : > { %4333 = vmatpush1.bf16.msra.mxu0 %v5748_v45  ;;  %v5831_v45 = vld [vmem:[%s8446_s5 + $0x86c] ss:$16 sps:$4 sm:$0xff]  }
 0x33e   : > { %4538 = vmatpush1.bf16.msra.mxu1 %v5751_v10  ;;  %4334 = vmatprep.subr.bf16.mxu0 %v5756_v56  ;;  %v5826_v10 = vld [vmem:[%s8446_s5 + $0x860] ss:$16 sps:$4 sm:$0xff]   ;;  %v5829_v56 = vld [vmem:[%s8446_s5 + $0x868] ss:$16 sps:$4 sm:$0xff]  }
 0x33f   : > { %4539 = vmatprep.subr.bf16.mxu1 %v5759_v36  ;;  %v5834_v36 = vld [vmem:[%s8446_s5 + $0x884] ss:$16 sps:$4 sm:$0xff]  }
 0x341   : > { %4335 = vmatpush1.bf16.msra.mxu0 %v5754_v3  ;;  %v5837_v3 = vld [vmem:[%s8446_s5 + $0x88c] ss:$16 sps:$4 sm:$0xff]  }
 0x342   : > { %4540 = vmatpush1.bf16.msra.mxu1 %v5757_v33  ;;  %4336 = vmatprep.subr.bf16.mxu0 %v5762_v62  ;;  %v5832_v33 = vld [vmem:[%s8446_s5 + $0x880] ss:$16 sps:$4 sm:$0xff]   ;;  %v5835_v62 = vld [vmem:[%s8446_s5 + $0x888] ss:$16 sps:$4 sm:$0xff]  }
 0x343   : > { %4541 = vmatprep.subr.bf16.mxu1 %v5765_v23  ;;  %v5840_v23 = vld [vmem:[%s8446_s5 + $0x8a4] ss:$16 sps:$4 sm:$0xff]  }
 0x345   : > { %4337 = vmatpush1.bf16.msra.mxu0 %v5760_v5  ;;  %v5843_v5 = vld [vmem:[%s8446_s5 + $0x8ac] ss:$16 sps:$4 sm:$0xff]  }
 0x346   : > { %4542 = vmatpush1.bf16.msra.mxu1 %v5763_v11  ;;  %4338 = vmatprep.subr.bf16.mxu0 %v5768_v22  ;;  %v5838_v11 = vld [vmem:[%s8446_s5 + $0x8a0] ss:$16 sps:$4 sm:$0xff]   ;;  %v5841_v22 = vld [vmem:[%s8446_s5 + $0x8a8] ss:$16 sps:$4 sm:$0xff]  }
 0x347   : > { %4543 = vmatprep.subr.bf16.mxu1 %v5771_v60  ;;  %v5846_v60 = vld [vmem:[%s8446_s5 + $0x8c4] ss:$16 sps:$4 sm:$0xff]  }
 0x349   : > { %4339 = vmatpush1.bf16.msra.mxu0 %v5766_v26  ;;  %v5849_v26 = vld [vmem:[%s8446_s5 + $0x8cc] ss:$16 sps:$4 sm:$0xff]  }
 0x34a   : > { %4544 = vmatpush1.bf16.msra.mxu1 %v5769_v27  ;;  %4340 = vmatprep.subr.bf16.mxu0 %v5774_v20  ;;  %v5844_v27 = vld [vmem:[%s8446_s5 + $0x8c0] ss:$16 sps:$4 sm:$0xff]   ;;  %v5847_v20 = vld [vmem:[%s8446_s5 + $0x8c8] ss:$16 sps:$4 sm:$0xff]  }
 0x34b   : > { %4545 = vmatprep.subr.bf16.mxu1 %v5777_v1  ;;  %v5852_v1 = vld [vmem:[%s8446_s5 + $0x8e4] ss:$16 sps:$4 sm:$0xff]  }
 0x34d   : > { %4341 = vmatpush1.bf16.msra.mxu0 %v5772_v40  ;;  %v5855_v40 = vld [vmem:[%s8446_s5 + $0x8ec] ss:$16 sps:$4 sm:$0xff]  }
 0x34e   : > { %4546 = vmatpush1.bf16.msra.mxu1 %v5775_v19  ;;  %4342 = vmatprep.subr.bf16.mxu0 %v5780_v25  ;;  %v5850_v19 = vld [vmem:[%s8446_s5 + $0x8e0] ss:$16 sps:$4 sm:$0xff]   ;;  %v5853_v25 = vld [vmem:[%s8446_s5 + $0x8e8] ss:$16 sps:$4 sm:$0xff]  }
 0x34f   : > { %4547 = vmatprep.subr.bf16.mxu1 %v5783_v17  ;;  %v5858_v17 = vld [vmem:[%s8446_s5 + $0x904] ss:$16 sps:$4 sm:$0xff]  }
 0x351   : > { %4343 = vmatpush1.bf16.msra.mxu0 %v5778_v58  ;;  %v5861_v58 = vld [vmem:[%s8446_s5 + $0x90c] ss:$16 sps:$4 sm:$0xff]  }
 0x352   : > { %4548 = vmatpush1.bf16.msra.mxu1 %v5781_v54  ;;  %4344 = vmatprep.subr.bf16.mxu0 %v5786_v46  ;;  %v5856_v54 = vld [vmem:[%s8446_s5 + $0x900] ss:$16 sps:$4 sm:$0xff]   ;;  %v5859_v46 = vld [vmem:[%s8446_s5 + $0x908] ss:$16 sps:$4 sm:$0xff]  }
 0x353   : > { %4549 = vmatprep.subr.bf16.mxu1 %v5789_v57  ;;  %v5864_v57 = vld [vmem:[%s8446_s5 + $0x924] ss:$16 sps:$4 sm:$0xff]  }
 0x355   : > { %4345 = vmatpush1.bf16.msra.mxu0 %v5784_v29  ;;  %v5867_v29 = vld [vmem:[%s8446_s5 + $0x92c] ss:$16 sps:$4 sm:$0xff]  }
 0x356   : > { %4550 = vmatpush1.bf16.msra.mxu1 %v5787_v30  ;;  %4346 = vmatprep.subr.bf16.mxu0 %v5792_v49  ;;  %v5862_v30 = vld [vmem:[%s8446_s5 + $0x920] ss:$16 sps:$4 sm:$0xff]   ;;  %v5865_v49 = vld [vmem:[%s8446_s5 + $0x928] ss:$16 sps:$4 sm:$0xff]  }
 0x357   : > { %4551 = vmatprep.subr.bf16.mxu1 %v5795_v14  ;;  %v5870_v14 = vld [vmem:[%s8446_s5 + $0x944] ss:$16 sps:$4 sm:$0xff]  }
 0x359   : > { %4347 = vmatpush1.bf16.msra.mxu0 %v5790_v41  ;;  %v5873_v41 = vld [vmem:[%s8446_s5 + $0x94c] ss:$16 sps:$4 sm:$0xff]  }
 0x35a   : > { %4552 = vmatpush1.bf16.msra.mxu1 %v5793_v44  ;;  %4348 = vmatprep.subr.bf16.mxu0 %v5798_v24  ;;  %v5868_v44 = vld [vmem:[%s8446_s5 + $0x940] ss:$16 sps:$4 sm:$0xff]   ;;  %v5871_v24 = vld [vmem:[%s8446_s5 + $0x948] ss:$16 sps:$4 sm:$0xff]  }
 0x35b   : > { %4553 = vmatprep.subr.bf16.mxu1 %v5801_v59  ;;  %v5876_v59 = vld [vmem:[%s8446_s5 + $0x964] ss:$16 sps:$4 sm:$0xff]  }
 0x35d   : > { %4349 = vmatpush1.bf16.msra.mxu0 %v5796_v8  ;;  %v5879_v8 = vld [vmem:[%s8446_s5 + $0x96c] ss:$16 sps:$4 sm:$0xff]  }
 0x35e   : > { %4554 = vmatpush1.bf16.msra.mxu1 %v5799_v21  ;;  %4350 = vmatprep.subr.bf16.mxu0 %v5804_v13  ;;  %v5877_v21 = vld [vmem:[%s8446_s5 + $0x968] ss:$16 sps:$4 sm:$0xff]   ;;  %v5882_v13 = vld [vmem:[%s8446_s5 + $0x984] ss:$16 sps:$4 sm:$0xff]  }
 0x35f   : > { %4555 = vmatprep.subr.bf16.mxu1 %v5807_v50  ;;  %v5885_v50 = vld [vmem:[%s8446_s5 + $0x98c] ss:$16 sps:$4 sm:$0xff]  }
 0x361   : > { %4351 = vmatpush1.bf16.msra.mxu0 %v5802_v34  ;;  %v5880_v34 = vld [vmem:[%s8446_s5 + $0x980] ss:$16 sps:$4 sm:$0xff]  }
 0x362   : > { %4556 = vmatpush1.bf16.msra.mxu1 %v5805_v42  ;;  %4361 = vmatprep.subr.bf16.mxu0 %v5810_v43  ;;  %v5883_v42 = vld [vmem:[%s8446_s5 + $0x988] ss:$16 sps:$4 sm:$0xff]   ;;  %v5886_v43 = vld [vmem:[%s8446_s5 + $0x9a0] ss:$16 sps:$4 sm:$0xff]  }
 0x363   : > { %4566 = vmatprep.subr.bf16.mxu1 %v5813_v55  ;;  %v5889_v55 = vld [vmem:[%s8446_s5 + $0x9a8] ss:$16 sps:$4 sm:$0xff]  }
 0x364   : > { %4353 = vmatmul.mubr.bf16.vlgmr.msra.gmra.mrb[40].mxu0 %v2251_v31 }
 0x365   : > { %4558 = vmatmul.mubr.bf16.vlgmr.msra.gmra.mrb[48].mxu1 %v2251_v31  ;;  %4362 = vmatpush1.bf16.msra.mxu0 %v5808_v61  ;;  %v5897_v61 = vld [vmem:[%s8446_s5 + $0x9cc] ss:$16 sps:$4 sm:$0xff]   ;;  %v5892_v31 = vld [vmem:[%s8446_s5 + $0x9c0] ss:$16 sps:$4 sm:$0xff]  }
 0x366   : > { %4393 = vmatprep.mubr.bf16.mxu0 %v2254_v18  ;;  %4567 = vmatpush1.bf16.msra.mxu1 %v5811_v6  ;;  %v5895_v6 = vld [vmem:[%s8446_s5 + $0x9c8] ss:$16 sps:$4 sm:$0xff]  }
 0x367   : > { %4598 = vmatprep.mubr.bf16.mxu1 %v2254_v18  ;;  %4363 = vmatprep.subr.bf16.mxu0 %v5816_v9  ;;  %v5900_v9 = vld [vmem:[%s8446_s5 + $0x9e4] ss:$16 sps:$4 sm:$0xff]   ;;  %v5903_v18 = vld [vmem:[%s8446_s5 + $0x9ec] ss:$16 sps:$4 sm:$0xff]  }
 0x368   : > { %4568 = vmatprep.subr.bf16.mxu1 %v5819_v2  ;;  %v5898_v2 = vld [vmem:[%s8446_s5 + $0x9e0] ss:$16 sps:$4 sm:$0xff]  }
 0x369   : > { %4364 = vmatpush1.bf16.msra.mxu0 %v5814_v12  ;;  %v5901_v12 = vld [vmem:[%s8446_s5 + $0x9e8] ss:$16 sps:$4 sm:$0xff]  }
 0x36a   : > { %4569 = vmatpush1.bf16.msra.mxu1 %v5817_v47  ;;  %4365 = vmatprep.subr.bf16.mxu0 %v5822_v37  ;;  %v2230_v47 = vrot.slane %v8210_v35, %v8521_v4 }
 0x36b   : > { %4570 = vmatprep.subr.bf16.mxu1 %v5825_v28  ;;  %v2575_v28 = vld [vmem:[%s8447_s6] sm:$0xf] }
 0x36c   : > { %v2253_v37 = vpack.c.bf16 %v2230_v47, %v2230_v47 }
 0x36d   : > { %4366 = vmatpush1.bf16.msra.mxu0 %v5820_v52  ;;  %v4180_v52 = vrot.slane %v2575_v28, %v8521_v4 }
 0x36e   : > { %4571 = vmatpush1.bf16.msra.mxu1 %v5823_v7  ;;  %4367 = vmatprep.subr.bf16.mxu0 %v5828_v0  ;;  %v4188_v7 = vrot.slane %v2575_v28, %v8537_v32  ;;  %v4184_v0 = vrot.slane %v2575_v28, %v8522_v38 }
 0x36f   : > { %4572 = vmatprep.subr.bf16.mxu1 %v5831_v45  ;;  %v4192_v45 = vrot.slane %v2575_v28, %v8536_v51 }
 0x371   : > { %4368 = vmatpush1.bf16.msra.mxu0 %v5826_v10 }
 0x372   : > { %4573 = vmatpush1.bf16.msra.mxu1 %v5829_v56  ;;  %4369 = vmatprep.subr.bf16.mxu0 %v5834_v36 }
 0x373   : > { %4574 = vmatprep.subr.bf16.mxu1 %v5837_v3 }
 0x375   : > { %4370 = vmatpush1.bf16.msra.mxu0 %v5832_v33 }
 0x376   : > { %4575 = vmatpush1.bf16.msra.mxu1 %v5835_v62  ;;  %4371 = vmatprep.subr.bf16.mxu0 %v5840_v23 }
 0x377   : > { %4576 = vmatprep.subr.bf16.mxu1 %v5843_v5 }
 0x379   : > { %4372 = vmatpush1.bf16.msra.mxu0 %v5838_v11 }
 0x37a   : > { %4577 = vmatpush1.bf16.msra.mxu1 %v5841_v22  ;;  %4373 = vmatprep.subr.bf16.mxu0 %v5846_v60 }
 0x37b   : > { %4578 = vmatprep.subr.bf16.mxu1 %v5849_v26 }
 0x37d   : > { %4374 = vmatpush1.bf16.msra.mxu0 %v5844_v27 }
 0x37e   : > { %4579 = vmatpush1.bf16.msra.mxu1 %v5847_v20  ;;  %4375 = vmatprep.subr.bf16.mxu0 %v5852_v1 }
 0x37f   : > { %4580 = vmatprep.subr.bf16.mxu1 %v5855_v40 }
 0x381   : > { %4376 = vmatpush1.bf16.msra.mxu0 %v5850_v19 }
 0x382   : > { %4581 = vmatpush1.bf16.msra.mxu1 %v5853_v25  ;;  %4377 = vmatprep.subr.bf16.mxu0 %v5858_v17 }
 0x383   : > { %4582 = vmatprep.subr.bf16.mxu1 %v5861_v58 }
 0x385   : > { %4378 = vmatpush1.bf16.msra.mxu0 %v5856_v54 }
 0x386   : > { %4583 = vmatpush1.bf16.msra.mxu1 %v5859_v46  ;;  %4379 = vmatprep.subr.bf16.mxu0 %v5864_v57 }
 0x387   : > { %4584 = vmatprep.subr.bf16.mxu1 %v5867_v29 }
 0x389   : > { %4380 = vmatpush1.bf16.msra.mxu0 %v5862_v30 }
 0x38a   : > { %4585 = vmatpush1.bf16.msra.mxu1 %v5865_v49  ;;  %4381 = vmatprep.subr.bf16.mxu0 %v5870_v14 }
 0x38b   : > { %4586 = vmatprep.subr.bf16.mxu1 %v5873_v41 }
 0x38d   : > { %4382 = vmatpush1.bf16.msra.mxu0 %v5868_v44 }
 0x38e   : > { %4587 = vmatpush1.bf16.msra.mxu1 %v5871_v24  ;;  %4383 = vmatprep.subr.bf16.mxu0 %v5876_v59 }
 0x38f   : > { %4588 = vmatprep.subr.bf16.mxu1 %v5879_v8 }
 0x391   : > { %4384 = vmatpush1.bf16.msra.mxu0 %v5874_v16 }
 0x392   : > { %4589 = vmatpush1.bf16.msra.mxu1 %v5877_v21  ;;  %4385 = vmatprep.subr.bf16.mxu0 %v5882_v13 }
 0x393   : > { %4590 = vmatprep.subr.bf16.mxu1 %v5885_v50 }
 0x395   : > { %4386 = vmatpush1.bf16.msra.mxu0 %v5880_v34 }
 0x396   : > { %4591 = vmatpush1.bf16.msra.mxu1 %v5883_v42  ;;  %4387 = vmatprep.subr.bf16.mxu0 %v5888_v48 }
 0x397   : > { %4592 = vmatprep.subr.bf16.mxu1 %v5891_v39 }
 0x399   : > { %4388 = vmatpush1.bf16.msra.mxu0 %v5886_v43 }
 0x39a   : > { %4593 = vmatpush1.bf16.msra.mxu1 %v5889_v55  ;;  %4389 = vmatprep.subr.bf16.mxu0 %v5894_v15 }
 0x39b   : > { %4594 = vmatprep.subr.bf16.mxu1 %v5897_v61 }
 0x39d   : > { %4390 = vmatpush1.bf16.msra.mxu0 %v5892_v31 }
 0x39e   : > { %4595 = vmatpush1.bf16.msra.mxu1 %v5895_v6  ;;  %4391 = vmatprep.subr.bf16.mxu0 %v5900_v9 }
 0x39f   : > { %4596 = vmatprep.subr.bf16.mxu1 %v5903_v18 }
 0x3a1   : > { %4392 = vmatpush1.bf16.msra.mxu0 %v5898_v2 }
 0x3a2   : > { %4597 = vmatpush1.bf16.msra.mxu1 %v5901_v12 }
 0x3a4   : > { %4394 = vmatmul.mubr.bf16.vlgmr.msra.gmra.mrb[40].mxu0 %v2253_v37 }
 0x3a5   : > { %4599 = vmatmul.mubr.bf16.vlgmr.msra.gmra.mrb[48].mxu1 %v2253_v37 }
 0x477   : > { %v4395_v35 = vpop.f32.mrb[40].mxu0 }
 0x478   : > { %v5234_v10 = vadd.f32 %v4395_v35, %v4180_v52  ;;  %v4600_v56 = vpop.f32.mrb[48].mxu1  ;;  %v4397_v36 = vpop.f32.mrb[41].mxu0 }
 0x479   : > { %v5236_v3 = vadd.f32 %v4600_v56, %v4188_v7  ;;  %v5235_v33 = vadd.f32 %v4397_v36, %v4184_v0  ;;  %v4602_v62 = vpop.f32.mrb[49].mxu1  ;;  %v4399_v23 = vpop.f32.mrb[42].mxu0 }
 0x47a   : > { %v5237_v5 = vadd.f32 %v4602_v62, %v4192_v45  ;;  %v4604_v11 = vpop.f32.mrb[50].mxu1  ;;  %v4400_v22 = vpop.f32.mrb[43].mxu0 }
 0x47b   : > { %v4611_v60 = vcombine.low %v5234_v10, %v5235_v33  ;;  %v4605_v4 = vpop.f32.mrb[51].mxu1 }
 0x47c   : > { %v4612_v26 = vcombine.low %v5236_v3, %v5237_v5 }
 0x47d   : > { %v4619_v32 = vrot.slane %v4611_v60, %v7281_v53 }
 0x47e   : > { %v4626_v38 = vrot.slane %v4612_v26, %v7281_v53 }
 0x480   : > { %v4627_v51 = vcombine.low %v4619_v32, %v4626_v38 }
 0x482   : > { %v4634_v27 = vrot.slane %v4627_v51, %v7281_v53 }
 0x484   : > { %4638 = vst.msk [vmem:[%s304_s30] sm:$0xf] %vm4636_vm4, %v4634_v27 }
 0x485 PF: > { %s17_s26 = sadd.s32 1, %s6278_s26   ;;  %s8543_s24 = smov %s6274_s25 }
 0x486   : > { %p14_p5 = scmp.ge.s32.totalorder %s17_s26, 6   ;;  %s8544_s25 = smov %s8546_s27 }
 0x488   :  { %16 = sbr.rel (!%p14_p5) target bundleno = 2 (0x2), region = 86 }

</bundles_post_ra>
